<compile_context>
chip_gen: v7x
topology: tpu7x:2x2x1
jax: 0.10.0
libtpu: 0.0.40
codegen_flags: <defaults>
</compile_context>

<pallas_src>
import jax
import jax.numpy as jnp
import numpy as np
from jax.experimental import pallas as pl
from jax.experimental.pallas import tpu as pltpu

IDIM = 512
ODIM = 512
NHEADS = 8
HEAD_DIM = ODIM // NHEADS          # 64
SCALE = 1.0 / (float(HEAD_DIM) ** 0.5)  # 0.125, exact power of two

# k @ q^T without an explicit transpose (same dimension_numbers the official
# TPU flash-attention kernel uses).
_NT_DIMS = (((1,), (1,)), ((), ()))


def _make_kernel(masked: bool):
    """Build the kernel; `masked` selects whether a block-diag bias ref is passed."""

    def kernel(*refs):
        if masked:
            x_ref, wv_ref, bv_ref, wc_ref, bc_ref, bias_ref, o_ref = refs
        else:
            x_ref, wv_ref, bv_ref, wc_ref, bc_ref, o_ref = refs
            bias_ref = None

        BT, nseg, D = x_ref.shape
        M = BT * nseg

        x = x_ref[...].reshape(M, D)           # leading-dim merge only (free)
        xb = x.astype(jnp.bfloat16)

        # Fused projections over the whole batch block: bf16 in, f32 accumulate,
        # biases added in f32.
        m_k = jnp.dot(xb, wv_ref[...], preferred_element_type=jnp.float32) + bv_ref[...]
        m_trans = jnp.dot(xb, wc_ref[...], preferred_element_type=jnp.float32) + bc_ref[...]

        # Cast once (not per head). Scaling m_q by 0.125 is exact and folds the
        # 1/sqrt(head_dim) attention scale before the score matmul.
        kb = m_k.astype(jnp.bfloat16)                            # (M, 512)
        qb = (m_trans[:, :ODIM] * SCALE).astype(jnp.bfloat16)    # (M, 512)
        vb = m_trans[:, ODIM:].astype(jnp.bfloat16)              # (M, 512)

        bias = bias_ref[...] if masked else None                 # (M, M) or None

        head_outs = []
        for h in range(NHEADS):
            lo, hi = h * HEAD_DIM, (h + 1) * HEAD_DIM
            # s = mk @ mq^T  (softmax over the mq index axis, as in PyTorch).
            s = jax.lax.dot_general(kb[:, lo:hi], qb[:, lo:hi], _NT_DIMS,
                                    preferred_element_type=jnp.float32)
            if masked:
                s = s + bias                           # mask cross-batch pairs
            s = s - jnp.max(s, axis=-1, keepdims=True)  # f32 softmax
            p = jnp.exp(s)
            p = p * pl.reciprocal(jnp.sum(p, axis=-1, keepdims=True), approx=True)
            head_outs.append(
                jnp.dot(p.astype(jnp.bfloat16), vb[:, lo:hi],
                        preferred_element_type=jnp.float32))

        r = jnp.concatenate(head_outs, axis=-1)        # (M, 512), head-major cols
        o_ref[...] = (x + r).reshape(BT, nseg, D)      # single lane-dense store

    return kernel


def _choose_bt(B, nseg, max_rows=256, max_bt=64):
    """Largest batch block with BT*nseg <= max_rows, preferring >= 2 grid steps."""
    cands = [d for d in range(1, min(B, max_bt) + 1)
             if B % d == 0 and d * nseg <= max_rows]
    if not cands:
        return 1
    multi = [d for d in cands if B // d >= 2]   # keep both v7x TensorCores busy
    return max(multi) if multi else max(cands)


def nonlocal_block(m_feats, wv, bv, wc, bc):
    """m_feats: (B, nseg, 512) f32. Weights stored (in, out). Returns (B, nseg, 512)."""
    B, nseg, D = m_feats.shape
    assert D == IDIM
    BT = _choose_bt(B, nseg)
    M = BT * nseg
    masked = BT > 1

    wv_b = wv.astype(jnp.bfloat16)
    wc_b = wc.astype(jnp.bfloat16)
    bv2 = bv.reshape(1, ODIM).astype(jnp.float32)
    bc2 = bc.reshape(1, 2 * ODIM).astype(jnp.float32)

    in_specs = [
        pl.BlockSpec((BT, nseg, D), lambda b: (b, 0, 0)),
        pl.BlockSpec((IDIM, ODIM), lambda b: (0, 0)),
        pl.BlockSpec((1, ODIM), lambda b: (0, 0)),
        pl.BlockSpec((IDIM, 2 * ODIM), lambda b: (0, 0)),
        pl.BlockSpec((1, 2 * ODIM), lambda b: (0, 0)),
    ]
    args = [m_feats, wv_b, bv2, wc_b, bc2]

    if masked:
        # Block-diagonal additive bias so BT batches share one (M, M) softmax.
        ids = jnp.arange(M, dtype=jnp.int32) // nseg
        bias = jnp.where(ids[:, None] == ids[None, :], 0.0, -1e30).astype(jnp.float32)
        in_specs.append(pl.BlockSpec((M, M), lambda b: (0, 0)))
        args.append(bias)

    # TODO(synk): if nseg ever grows to thousands, tile nseg as well (full-row
    # score blocks would blow v7x's 64 MiB VMEM); current smtan nseg is small.
    return pl.pallas_call(
        _make_kernel(masked),
        out_shape=jax.ShapeDtypeStruct((B, nseg, D), jnp.float32),
        grid_spec=pltpu.PrefetchScalarGridSpec(
            num_scalar_prefetch=0,
            grid=(B // BT,),
            in_specs=in_specs,
            out_specs=pl.BlockSpec((BT, nseg, D), lambda b: (b, 0, 0)),
        ),
        compiler_params=pltpu.CompilerParams(
            dimension_semantics=("parallel",)),
        input_output_aliases={0: 0},
    )(*args)


def nonlocal_block_ref(m_feats, wv, bv, wc, bc):
    """Pure-JAX f32 reference mirroring the PyTorch forward (dropout = identity)."""
    m_k = m_feats @ wv + bv
    m_trans = m_feats @ wc + bc
    m_q, m_v = m_trans[..., :ODIM], m_trans[..., ODIM:]
    outs = []
    for h in range(NHEADS):
        lo, hi = h * HEAD_DIM, (h + 1) * HEAD_DIM
        kh, qh, vh = m_k[..., lo:hi], m_q[..., lo:hi], m_v[..., lo:hi]
        s = jnp.einsum("bnd,bmd->bnm", kh, qh) / (HEAD_DIM ** 0.5)
        p = jax.nn.softmax(s, axis=2)
        outs.append(jnp.einsum("bnm,bmd->bnd", p, vh))
    r = jnp.concatenate(outs, axis=-1)
    return m_feats + r


if __name__ == "__main__":
    key = jax.random.PRNGKey(0)
    k_x, k_wv, k_bv, k_wc, k_bc = jax.random.split(key, 5)

    B, NSEG = 16, 8
    # Deterministic synthetic parameters (nn.Linear sizes, stored as (in, out)).
    x = jax.random.normal(k_x, (B, NSEG, IDIM), dtype=jnp.float32)
    wv = jax.random.normal(k_wv, (IDIM, ODIM), dtype=jnp.float32) * 0.02
    bv = jax.random.normal(k_bv, (ODIM,), dtype=jnp.float32) * 0.02
    wc = jax.random.normal(k_wc, (IDIM, 2 * ODIM), dtype=jnp.float32) * 0.02
    bc = jax.random.normal(k_bc, (2 * ODIM,), dtype=jnp.float32) * 0.02

    # Reference first (f32), then the kernel (bf16 matmuls, f32 accumulation).
    ref = jax.block_until_ready(nonlocal_block_ref(x, wv, bv, wc, bc))
    out = jax.block_until_ready(nonlocal_block(x, wv, bv, wc, bc))

    np.testing.assert_allclose(np.asarray(out), np.asarray(ref),
                               rtol=5e-2, atol=5e-2)

    print("KERNEL_OK")
</pallas_src>

<mosaic_0001>
module attributes {stable_mosaic.version = 11 : i64} {
  func.func @kernel(%arg0: i32, %arg1: memref<8x8x512xf32, #tpu.memory_space<vmem>>, %arg2: memref<512x512xbf16, #tpu.memory_space<vmem>>, %arg3: memref<1x512xf32, #tpu.memory_space<vmem>>, %arg4: memref<512x1024xbf16, #tpu.memory_space<vmem>>, %arg5: memref<1x1024xf32, #tpu.memory_space<vmem>>, %arg6: memref<64x64xf32, #tpu.memory_space<vmem>>, %arg7: memref<8x8x512xf32, #tpu.memory_space<vmem>>) attributes {dimension_semantics = [#tpu.dimension_semantics<parallel>], iteration_bounds = array<i64: 2>, scalar_prefetch = 0 : i64, scratch_operands = 0 : i64, tpu.core_type = #tpu.core_type<tc>, window_params = [{transform_indices = @transform_0, window_bounds = array<i64: 8, 8, 512>}, {pipeline_mode = #tpu.pipeline_mode<synchronous>, transform_indices = @transform_1, window_bounds = array<i64: 512, 512>}, {pipeline_mode = #tpu.pipeline_mode<synchronous>, transform_indices = @transform_2, window_bounds = array<i64: 1, 512>}, {pipeline_mode = #tpu.pipeline_mode<synchronous>, transform_indices = @transform_3, window_bounds = array<i64: 512, 1024>}, {pipeline_mode = #tpu.pipeline_mode<synchronous>, transform_indices = @transform_4, window_bounds = array<i64: 1, 1024>}, {pipeline_mode = #tpu.pipeline_mode<synchronous>, transform_indices = @transform_5, window_bounds = array<i64: 64, 64>}, {transform_indices = @transform_6, window_bounds = array<i64: 8, 8, 512>}]} {
    %c0 = arith.constant 0 : index
    %c0_0 = arith.constant 0 : index
    %c0_1 = arith.constant 0 : index
    %0 = vector.load %arg1[%c0, %c0_0, %c0_1] : memref<8x8x512xf32, #tpu.memory_space<vmem>>, vector<8x8x512xf32>
    %1 = vector.shape_cast %0 : vector<8x8x512xf32> to vector<64x512xf32>
    %2 = arith.truncf %1 : vector<64x512xf32> to vector<64x512xbf16>
    %c0_2 = arith.constant 0 : index
    %c0_3 = arith.constant 0 : index
    %3 = vector.load %arg2[%c0_2, %c0_3] : memref<512x512xbf16, #tpu.memory_space<vmem>>, vector<512x512xbf16>
    %cst = arith.constant dense<0.000000e+00> : vector<64x512xf32>
    %4 = tpu.matmul %2, %3, %cst {dimension_numbers = #tpu.dot_dimension_numbers<[1], [0], [0], [1], [0, 0, 1, 1], [], []>} : vector<64x512xbf16>, vector<512x512xbf16>, vector<64x512xf32> -> vector<64x512xf32>
    %c0_4 = arith.constant 0 : index
    %c0_5 = arith.constant 0 : index
    %5 = vector.load %arg3[%c0_4, %c0_5] : memref<1x512xf32, #tpu.memory_space<vmem>>, vector<1x512xf32>
    %6 = vector.broadcast %5 : vector<1x512xf32> to vector<64x512xf32>
    %7 = arith.addf %4, %6 : vector<64x512xf32>
    %c0_6 = arith.constant 0 : index
    %c0_7 = arith.constant 0 : index
    %8 = vector.load %arg4[%c0_6, %c0_7] : memref<512x1024xbf16, #tpu.memory_space<vmem>>, vector<512x1024xbf16>
    %cst_8 = arith.constant dense<0.000000e+00> : vector<64x1024xf32>
    %9 = tpu.matmul %2, %8, %cst_8 {dimension_numbers = #tpu.dot_dimension_numbers<[1], [0], [0], [1], [0, 0, 1, 1], [], []>} : vector<64x512xbf16>, vector<512x1024xbf16>, vector<64x1024xf32> -> vector<64x1024xf32>
    %c0_9 = arith.constant 0 : index
    %c0_10 = arith.constant 0 : index
    %10 = vector.load %arg5[%c0_9, %c0_10] : memref<1x1024xf32, #tpu.memory_space<vmem>>, vector<1x1024xf32>
    %11 = vector.broadcast %10 : vector<1x1024xf32> to vector<64x1024xf32>
    %12 = arith.addf %9, %11 : vector<64x1024xf32>
    %13 = arith.truncf %7 : vector<64x512xf32> to vector<64x512xbf16>
    %14 = vector.extract_strided_slice %12 {offsets = [0, 0], sizes = [64, 512], strides = [1, 1]} : vector<64x1024xf32> to vector<64x512xf32>
    %cst_11 = arith.constant 1.250000e-01 : f32
    %15 = vector.broadcast %cst_11 : f32 to vector<64x512xf32>
    %16 = arith.mulf %14, %15 : vector<64x512xf32>
    %17 = arith.truncf %16 : vector<64x512xf32> to vector<64x512xbf16>
    %18 = vector.extract_strided_slice %12 {offsets = [0, 512], sizes = [64, 512], strides = [1, 1]} : vector<64x1024xf32> to vector<64x512xf32>
    %19 = arith.truncf %18 : vector<64x512xf32> to vector<64x512xbf16>
    %c0_12 = arith.constant 0 : index
    %c0_13 = arith.constant 0 : index
    %20 = vector.load %arg6[%c0_12, %c0_13] : memref<64x64xf32, #tpu.memory_space<vmem>>, vector<64x64xf32>
    %21 = vector.extract_strided_slice %13 {offsets = [0, 0], sizes = [64, 64], strides = [1, 1]} : vector<64x512xbf16> to vector<64x64xbf16>
    %22 = vector.extract_strided_slice %17 {offsets = [0, 0], sizes = [64, 64], strides = [1, 1]} : vector<64x512xbf16> to vector<64x64xbf16>
    %cst_14 = arith.constant dense<0.000000e+00> : vector<64x64xf32>
    %23 = tpu.matmul %21, %22, %cst_14 {dimension_numbers = #tpu.dot_dimension_numbers<[1], [1], [0], [0], [0, 0, 1, 0], [], []>} : vector<64x64xbf16>, vector<64x64xbf16>, vector<64x64xf32> -> vector<64x64xf32>
    %24 = arith.addf %23, %20 : vector<64x64xf32>
    %cst_15 = arith.constant dense<0xFF800000> : vector<64xf32>
    %25 = vector.multi_reduction <maximumf>, %24, %cst_15 [1] : vector<64x64xf32> to vector<64xf32>
    %26 = vector.shape_cast %25 : vector<64xf32> to vector<64x1xf32>
    %27 = vector.broadcast %26 : vector<64x1xf32> to vector<64x64xf32>
    %28 = arith.subf %24, %27 : vector<64x64xf32>
    %29 = math.exp %28 : vector<64x64xf32>
    %cst_16 = arith.constant dense<0.000000e+00> : vector<64xf32>
    %30 = vector.multi_reduction <add>, %29, %cst_16 [1] : vector<64x64xf32> to vector<64xf32>
    %31 = vector.shape_cast %30 : vector<64xf32> to vector<64x1xf32>
    %32 = tpu.reciprocal %31 {approx = true} : vector<64x1xf32> -> vector<64x1xf32>
    %33 = vector.broadcast %32 : vector<64x1xf32> to vector<64x64xf32>
    %34 = arith.mulf %29, %33 : vector<64x64xf32>
    %35 = arith.truncf %34 : vector<64x64xf32> to vector<64x64xbf16>
    %36 = vector.extract_strided_slice %19 {offsets = [0, 0], sizes = [64, 64], strides = [1, 1]} : vector<64x512xbf16> to vector<64x64xbf16>
    %cst_17 = arith.constant dense<0.000000e+00> : vector<64x64xf32>
    %37 = tpu.matmul %35, %36, %cst_17 {dimension_numbers = #tpu.dot_dimension_numbers<[1], [0], [0], [1], [0, 0, 1, 1], [], []>} : vector<64x64xbf16>, vector<64x64xbf16>, vector<64x64xf32> -> vector<64x64xf32>
    %38 = vector.extract_strided_slice %13 {offsets = [0, 64], sizes = [64, 64], strides = [1, 1]} : vector<64x512xbf16> to vector<64x64xbf16>
    %39 = vector.extract_strided_slice %17 {offsets = [0, 64], sizes = [64, 64], strides = [1, 1]} : vector<64x512xbf16> to vector<64x64xbf16>
    %cst_18 = arith.constant dense<0.000000e+00> : vector<64x64xf32>
    %40 = tpu.matmul %38, %39, %cst_18 {dimension_numbers = #tpu.dot_dimension_numbers<[1], [1], [0], [0], [0, 0, 1, 0], [], []>} : vector<64x64xbf16>, vector<64x64xbf16>, vector<64x64xf32> -> vector<64x64xf32>
    %41 = arith.addf %40, %20 : vector<64x64xf32>
    %cst_19 = arith.constant dense<0xFF800000> : vector<64xf32>
    %42 = vector.multi_reduction <maximumf>, %41, %cst_19 [1] : vector<64x64xf32> to vector<64xf32>
    %43 = vector.shape_cast %42 : vector<64xf32> to vector<64x1xf32>
    %44 = vector.broadcast %43 : vector<64x1xf32> to vector<64x64xf32>
    %45 = arith.subf %41, %44 : vector<64x64xf32>
    %46 = math.exp %45 : vector<64x64xf32>
    %cst_20 = arith.constant dense<0.000000e+00> : vector<64xf32>
    %47 = vector.multi_reduction <add>, %46, %cst_20 [1] : vector<64x64xf32> to vector<64xf32>
    %48 = vector.shape_cast %47 : vector<64xf32> to vector<64x1xf32>
    %49 = tpu.reciprocal %48 {approx = true} : vector<64x1xf32> -> vector<64x1xf32>
    %50 = vector.broadcast %49 : vector<64x1xf32> to vector<64x64xf32>
    %51 = arith.mulf %46, %50 : vector<64x64xf32>
    %52 = arith.truncf %51 : vector<64x64xf32> to vector<64x64xbf16>
    %53 = vector.extract_strided_slice %19 {offsets = [0, 64], sizes = [64, 64], strides = [1, 1]} : vector<64x512xbf16> to vector<64x64xbf16>
    %cst_21 = arith.constant dense<0.000000e+00> : vector<64x64xf32>
    %54 = tpu.matmul %52, %53, %cst_21 {dimension_numbers = #tpu.dot_dimension_numbers<[1], [0], [0], [1], [0, 0, 1, 1], [], []>} : vector<64x64xbf16>, vector<64x64xbf16>, vector<64x64xf32> -> vector<64x64xf32>
    %55 = vector.extract_strided_slice %13 {offsets = [0, 128], sizes = [64, 64], strides = [1, 1]} : vector<64x512xbf16> to vector<64x64xbf16>
    %56 = vector.extract_strided_slice %17 {offsets = [0, 128], sizes = [64, 64], strides = [1, 1]} : vector<64x512xbf16> to vector<64x64xbf16>
    %cst_22 = arith.constant dense<0.000000e+00> : vector<64x64xf32>
    %57 = tpu.matmul %55, %56, %cst_22 {dimension_numbers = #tpu.dot_dimension_numbers<[1], [1], [0], [0], [0, 0, 1, 0], [], []>} : vector<64x64xbf16>, vector<64x64xbf16>, vector<64x64xf32> -> vector<64x64xf32>
    %58 = arith.addf %57, %20 : vector<64x64xf32>
    %cst_23 = arith.constant dense<0xFF800000> : vector<64xf32>
    %59 = vector.multi_reduction <maximumf>, %58, %cst_23 [1] : vector<64x64xf32> to vector<64xf32>
    %60 = vector.shape_cast %59 : vector<64xf32> to vector<64x1xf32>
    %61 = vector.broadcast %60 : vector<64x1xf32> to vector<64x64xf32>
    %62 = arith.subf %58, %61 : vector<64x64xf32>
    %63 = math.exp %62 : vector<64x64xf32>
    %cst_24 = arith.constant dense<0.000000e+00> : vector<64xf32>
    %64 = vector.multi_reduction <add>, %63, %cst_24 [1] : vector<64x64xf32> to vector<64xf32>
    %65 = vector.shape_cast %64 : vector<64xf32> to vector<64x1xf32>
    %66 = tpu.reciprocal %65 {approx = true} : vector<64x1xf32> -> vector<64x1xf32>
    %67 = vector.broadcast %66 : vector<64x1xf32> to vector<64x64xf32>
    %68 = arith.mulf %63, %67 : vector<64x64xf32>
    %69 = arith.truncf %68 : vector<64x64xf32> to vector<64x64xbf16>
    %70 = vector.extract_strided_slice %19 {offsets = [0, 128], sizes = [64, 64], strides = [1, 1]} : vector<64x512xbf16> to vector<64x64xbf16>
    %cst_25 = arith.constant dense<0.000000e+00> : vector<64x64xf32>
    %71 = tpu.matmul %69, %70, %cst_25 {dimension_numbers = #tpu.dot_dimension_numbers<[1], [0], [0], [1], [0, 0, 1, 1], [], []>} : vector<64x64xbf16>, vector<64x64xbf16>, vector<64x64xf32> -> vector<64x64xf32>
    %72 = vector.extract_strided_slice %13 {offsets = [0, 192], sizes = [64, 64], strides = [1, 1]} : vector<64x512xbf16> to vector<64x64xbf16>
    %73 = vector.extract_strided_slice %17 {offsets = [0, 192], sizes = [64, 64], strides = [1, 1]} : vector<64x512xbf16> to vector<64x64xbf16>
    %cst_26 = arith.constant dense<0.000000e+00> : vector<64x64xf32>
    %74 = tpu.matmul %72, %73, %cst_26 {dimension_numbers = #tpu.dot_dimension_numbers<[1], [1], [0], [0], [0, 0, 1, 0], [], []>} : vector<64x64xbf16>, vector<64x64xbf16>, vector<64x64xf32> -> vector<64x64xf32>
    %75 = arith.addf %74, %20 : vector<64x64xf32>
    %cst_27 = arith.constant dense<0xFF800000> : vector<64xf32>
    %76 = vector.multi_reduction <maximumf>, %75, %cst_27 [1] : vector<64x64xf32> to vector<64xf32>
    %77 = vector.shape_cast %76 : vector<64xf32> to vector<64x1xf32>
    %78 = vector.broadcast %77 : vector<64x1xf32> to vector<64x64xf32>
    %79 = arith.subf %75, %78 : vector<64x64xf32>
    %80 = math.exp %79 : vector<64x64xf32>
    %cst_28 = arith.constant dense<0.000000e+00> : vector<64xf32>
    %81 = vector.multi_reduction <add>, %80, %cst_28 [1] : vector<64x64xf32> to vector<64xf32>
    %82 = vector.shape_cast %81 : vector<64xf32> to vector<64x1xf32>
    %83 = tpu.reciprocal %82 {approx = true} : vector<64x1xf32> -> vector<64x1xf32>
    %84 = vector.broadcast %83 : vector<64x1xf32> to vector<64x64xf32>
    %85 = arith.mulf %80, %84 : vector<64x64xf32>
    %86 = arith.truncf %85 : vector<64x64xf32> to vector<64x64xbf16>
    %87 = vector.extract_strided_slice %19 {offsets = [0, 192], sizes = [64, 64], strides = [1, 1]} : vector<64x512xbf16> to vector<64x64xbf16>
    %cst_29 = arith.constant dense<0.000000e+00> : vector<64x64xf32>
    %88 = tpu.matmul %86, %87, %cst_29 {dimension_numbers = #tpu.dot_dimension_numbers<[1], [0], [0], [1], [0, 0, 1, 1], [], []>} : vector<64x64xbf16>, vector<64x64xbf16>, vector<64x64xf32> -> vector<64x64xf32>
    %89 = vector.extract_strided_slice %13 {offsets = [0, 256], sizes = [64, 64], strides = [1, 1]} : vector<64x512xbf16> to vector<64x64xbf16>
    %90 = vector.extract_strided_slice %17 {offsets = [0, 256], sizes = [64, 64], strides = [1, 1]} : vector<64x512xbf16> to vector<64x64xbf16>
    %cst_30 = arith.constant dense<0.000000e+00> : vector<64x64xf32>
    %91 = tpu.matmul %89, %90, %cst_30 {dimension_numbers = #tpu.dot_dimension_numbers<[1], [1], [0], [0], [0, 0, 1, 0], [], []>} : vector<64x64xbf16>, vector<64x64xbf16>, vector<64x64xf32> -> vector<64x64xf32>
    %92 = arith.addf %91, %20 : vector<64x64xf32>
    %cst_31 = arith.constant dense<0xFF800000> : vector<64xf32>
    %93 = vector.multi_reduction <maximumf>, %92, %cst_31 [1] : vector<64x64xf32> to vector<64xf32>
    %94 = vector.shape_cast %93 : vector<64xf32> to vector<64x1xf32>
    %95 = vector.broadcast %94 : vector<64x1xf32> to vector<64x64xf32>
    %96 = arith.subf %92, %95 : vector<64x64xf32>
    %97 = math.exp %96 : vector<64x64xf32>
    %cst_32 = arith.constant dense<0.000000e+00> : vector<64xf32>
    %98 = vector.multi_reduction <add>, %97, %cst_32 [1] : vector<64x64xf32> to vector<64xf32>
    %99 = vector.shape_cast %98 : vector<64xf32> to vector<64x1xf32>
    %100 = tpu.reciprocal %99 {approx = true} : vector<64x1xf32> -> vector<64x1xf32>
    %101 = vector.broadcast %100 : vector<64x1xf32> to vector<64x64xf32>
    %102 = arith.mulf %97, %101 : vector<64x64xf32>
    %103 = arith.truncf %102 : vector<64x64xf32> to vector<64x64xbf16>
    %104 = vector.extract_strided_slice %19 {offsets = [0, 256], sizes = [64, 64], strides = [1, 1]} : vector<64x512xbf16> to vector<64x64xbf16>
    %cst_33 = arith.constant dense<0.000000e+00> : vector<64x64xf32>
    %105 = tpu.matmul %103, %104, %cst_33 {dimension_numbers = #tpu.dot_dimension_numbers<[1], [0], [0], [1], [0, 0, 1, 1], [], []>} : vector<64x64xbf16>, vector<64x64xbf16>, vector<64x64xf32> -> vector<64x64xf32>
    %106 = vector.extract_strided_slice %13 {offsets = [0, 320], sizes = [64, 64], strides = [1, 1]} : vector<64x512xbf16> to vector<64x64xbf16>
    %107 = vector.extract_strided_slice %17 {offsets = [0, 320], sizes = [64, 64], strides = [1, 1]} : vector<64x512xbf16> to vector<64x64xbf16>
    %cst_34 = arith.constant dense<0.000000e+00> : vector<64x64xf32>
    %108 = tpu.matmul %106, %107, %cst_34 {dimension_numbers = #tpu.dot_dimension_numbers<[1], [1], [0], [0], [0, 0, 1, 0], [], []>} : vector<64x64xbf16>, vector<64x64xbf16>, vector<64x64xf32> -> vector<64x64xf32>
    %109 = arith.addf %108, %20 : vector<64x64xf32>
    %cst_35 = arith.constant dense<0xFF800000> : vector<64xf32>
    %110 = vector.multi_reduction <maximumf>, %109, %cst_35 [1] : vector<64x64xf32> to vector<64xf32>
    %111 = vector.shape_cast %110 : vector<64xf32> to vector<64x1xf32>
    %112 = vector.broadcast %111 : vector<64x1xf32> to vector<64x64xf32>
    %113 = arith.subf %109, %112 : vector<64x64xf32>
    %114 = math.exp %113 : vector<64x64xf32>
    %cst_36 = arith.constant dense<0.000000e+00> : vector<64xf32>
    %115 = vector.multi_reduction <add>, %114, %cst_36 [1] : vector<64x64xf32> to vector<64xf32>
    %116 = vector.shape_cast %115 : vector<64xf32> to vector<64x1xf32>
    %117 = tpu.reciprocal %116 {approx = true} : vector<64x1xf32> -> vector<64x1xf32>
    %118 = vector.broadcast %117 : vector<64x1xf32> to vector<64x64xf32>
    %119 = arith.mulf %114, %118 : vector<64x64xf32>
    %120 = arith.truncf %119 : vector<64x64xf32> to vector<64x64xbf16>
    %121 = vector.extract_strided_slice %19 {offsets = [0, 320], sizes = [64, 64], strides = [1, 1]} : vector<64x512xbf16> to vector<64x64xbf16>
    %cst_37 = arith.constant dense<0.000000e+00> : vector<64x64xf32>
    %122 = tpu.matmul %120, %121, %cst_37 {dimension_numbers = #tpu.dot_dimension_numbers<[1], [0], [0], [1], [0, 0, 1, 1], [], []>} : vector<64x64xbf16>, vector<64x64xbf16>, vector<64x64xf32> -> vector<64x64xf32>
    %123 = vector.extract_strided_slice %13 {offsets = [0, 384], sizes = [64, 64], strides = [1, 1]} : vector<64x512xbf16> to vector<64x64xbf16>
    %124 = vector.extract_strided_slice %17 {offsets = [0, 384], sizes = [64, 64], strides = [1, 1]} : vector<64x512xbf16> to vector<64x64xbf16>
    %cst_38 = arith.constant dense<0.000000e+00> : vector<64x64xf32>
    %125 = tpu.matmul %123, %124, %cst_38 {dimension_numbers = #tpu.dot_dimension_numbers<[1], [1], [0], [0], [0, 0, 1, 0], [], []>} : vector<64x64xbf16>, vector<64x64xbf16>, vector<64x64xf32> -> vector<64x64xf32>
    %126 = arith.addf %125, %20 : vector<64x64xf32>
    %cst_39 = arith.constant dense<0xFF800000> : vector<64xf32>
    %127 = vector.multi_reduction <maximumf>, %126, %cst_39 [1] : vector<64x64xf32> to vector<64xf32>
    %128 = vector.shape_cast %127 : vector<64xf32> to vector<64x1xf32>
    %129 = vector.broadcast %128 : vector<64x1xf32> to vector<64x64xf32>
    %130 = arith.subf %126, %129 : vector<64x64xf32>
    %131 = math.exp %130 : vector<64x64xf32>
    %cst_40 = arith.constant dense<0.000000e+00> : vector<64xf32>
    %132 = vector.multi_reduction <add>, %131, %cst_40 [1] : vector<64x64xf32> to vector<64xf32>
    %133 = vector.shape_cast %132 : vector<64xf32> to vector<64x1xf32>
    %134 = tpu.reciprocal %133 {approx = true} : vector<64x1xf32> -> vector<64x1xf32>
    %135 = vector.broadcast %134 : vector<64x1xf32> to vector<64x64xf32>
    %136 = arith.mulf %131, %135 : vector<64x64xf32>
    %137 = arith.truncf %136 : vector<64x64xf32> to vector<64x64xbf16>
    %138 = vector.extract_strided_slice %19 {offsets = [0, 384], sizes = [64, 64], strides = [1, 1]} : vector<64x512xbf16> to vector<64x64xbf16>
    %cst_41 = arith.constant dense<0.000000e+00> : vector<64x64xf32>
    %139 = tpu.matmul %137, %138, %cst_41 {dimension_numbers = #tpu.dot_dimension_numbers<[1], [0], [0], [1], [0, 0, 1, 1], [], []>} : vector<64x64xbf16>, vector<64x64xbf16>, vector<64x64xf32> -> vector<64x64xf32>
    %140 = vector.extract_strided_slice %13 {offsets = [0, 448], sizes = [64, 64], strides = [1, 1]} : vector<64x512xbf16> to vector<64x64xbf16>
    %141 = vector.extract_strided_slice %17 {offsets = [0, 448], sizes = [64, 64], strides = [1, 1]} : vector<64x512xbf16> to vector<64x64xbf16>
    %cst_42 = arith.constant dense<0.000000e+00> : vector<64x64xf32>
    %142 = tpu.matmul %140, %141, %cst_42 {dimension_numbers = #tpu.dot_dimension_numbers<[1], [1], [0], [0], [0, 0, 1, 0], [], []>} : vector<64x64xbf16>, vector<64x64xbf16>, vector<64x64xf32> -> vector<64x64xf32>
    %143 = arith.addf %142, %20 : vector<64x64xf32>
    %cst_43 = arith.constant dense<0xFF800000> : vector<64xf32>
    %144 = vector.multi_reduction <maximumf>, %143, %cst_43 [1] : vector<64x64xf32> to vector<64xf32>
    %145 = vector.shape_cast %144 : vector<64xf32> to vector<64x1xf32>
    %146 = vector.broadcast %145 : vector<64x1xf32> to vector<64x64xf32>
    %147 = arith.subf %143, %146 : vector<64x64xf32>
    %148 = math.exp %147 : vector<64x64xf32>
    %cst_44 = arith.constant dense<0.000000e+00> : vector<64xf32>
    %149 = vector.multi_reduction <add>, %148, %cst_44 [1] : vector<64x64xf32> to vector<64xf32>
    %150 = vector.shape_cast %149 : vector<64xf32> to vector<64x1xf32>
    %151 = tpu.reciprocal %150 {approx = true} : vector<64x1xf32> -> vector<64x1xf32>
    %152 = vector.broadcast %151 : vector<64x1xf32> to vector<64x64xf32>
    %153 = arith.mulf %148, %152 : vector<64x64xf32>
    %154 = arith.truncf %153 : vector<64x64xf32> to vector<64x64xbf16>
    %155 = vector.extract_strided_slice %19 {offsets = [0, 448], sizes = [64, 64], strides = [1, 1]} : vector<64x512xbf16> to vector<64x64xbf16>
    %cst_45 = arith.constant dense<0.000000e+00> : vector<64x64xf32>
    %156 = tpu.matmul %154, %155, %cst_45 {dimension_numbers = #tpu.dot_dimension_numbers<[1], [0], [0], [1], [0, 0, 1, 1], [], []>} : vector<64x64xbf16>, vector<64x64xbf16>, vector<64x64xf32> -> vector<64x64xf32>
    %157 = tpu.concatenate %37, %54, %71, %88, %105, %122, %139, %156 in 1 : vector<64x64xf32>, vector<64x64xf32>, vector<64x64xf32>, vector<64x64xf32>, vector<64x64xf32>, vector<64x64xf32>, vector<64x64xf32>, vector<64x64xf32> -> vector<64x512xf32>
    %158 = arith.addf %1, %157 : vector<64x512xf32>
    %159 = vector.shape_cast %158 : vector<64x512xf32> to vector<8x8x512xf32>
    %c0_46 = arith.constant 0 : index
    %c0_47 = arith.constant 0 : index
    %c0_48 = arith.constant 0 : index
    %160 = vector.load %arg7[%c0_46, %c0_47, %c0_48] : memref<8x8x512xf32, #tpu.memory_space<vmem>>, vector<8x8x512xf32>
    tpu.vector_store %arg7[%c0_46, %c0_47, %c0_48], %159 {strides = array<i32>} : memref<8x8x512xf32, #tpu.memory_space<vmem>>, vector<8x8x512xf32>,
    return
  }
  func.func @transform_0(%arg0: i32) -> (i32, i32, i32) {
    %c0_i32 = arith.constant 0 : i32
    %c0_i32_0 = arith.constant 0 : i32
    %c0_i32_1 = arith.constant 0 : i32
    return %arg0, %c0_i32, %c0_i32_0 : i32, i32, i32
  }
  func.func @transform_1(%arg0: i32) -> (i32, i32) {
    %c0_i32 = arith.constant 0 : i32
    %c0_i32_0 = arith.constant 0 : i32
    %c0_i32_1 = arith.constant 0 : i32
    return %c0_i32, %c0_i32_0 : i32, i32
  }
  func.func @transform_2(%arg0: i32) -> (i32, i32) {
    %c0_i32 = arith.constant 0 : i32
    %c0_i32_0 = arith.constant 0 : i32
    %c0_i32_1 = arith.constant 0 : i32
    return %c0_i32, %c0_i32_0 : i32, i32
  }
  func.func @transform_3(%arg0: i32) -> (i32, i32) {
    %c0_i32 = arith.constant 0 : i32
    %c0_i32_0 = arith.constant 0 : i32
    %c0_i32_1 = arith.constant 0 : i32
    return %c0_i32, %c0_i32_0 : i32, i32
  }
  func.func @transform_4(%arg0: i32) -> (i32, i32) {
    %c0_i32 = arith.constant 0 : i32
    %c0_i32_0 = arith.constant 0 : i32
    %c0_i32_1 = arith.constant 0 : i32
    return %c0_i32, %c0_i32_0 : i32, i32
  }
  func.func @transform_5(%arg0: i32) -> (i32, i32) {
    %c0_i32 = arith.constant 0 : i32
    %c0_i32_0 = arith.constant 0 : i32
    %c0_i32_1 = arith.constant 0 : i32
    return %c0_i32, %c0_i32_0 : i32, i32
  }
  func.func @transform_6(%arg0: i32) -> (i32, i32, i32) {
    %c0_i32 = arith.constant 0 : i32
    %c0_i32_0 = arith.constant 0 : i32
    %c0_i32_1 = arith.constant 0 : i32
    return %arg0, %c0_i32, %c0_i32_0 : i32, i32, i32
  }
}

</mosaic_0001>

<bundles_post_ra>
// kernel: tpu_custom_call.1
= control target key start
LH: loop header
LB: loop body
LE: loop exit
PB: predicated region body
PF: predicated region fallthrough
CT: control target
= control target key end

     0   :  { %11 = vsyncpa [#allocation3], 0  ;;  %s10209_s0 = inlined_call_operand.hbm [shape: f32[16,8,512], index: 0, kind: input, shape index: {}, may-alias: {0,6}]   ;;  %s10210_s1 = inlined_call_operand.vmem [shape: bf16[512,512], index: 1, kind: input, shape index: {}]   ;;  %s10211_s2 = inlined_call_operand.hbm [shape: f32[1,512], index: 2, kind: input, shape index: {}]   ;;  %s10212_s3 = inlined_call_operand.hbm [shape: bf16[512,1024], index: 3, kind: input, shape index: {}]   ;;  %s10213_s4 = inlined_call_operand.vmem [shape: f32[1,1024], index: 4, kind: input, shape index: {}]   ;;  %s10214_s5 = inlined_call_operand.hbm [shape: f32[64,64], index: 5, kind: input, shape index: {}]   ;;  %s10215_s6 = inlined_call_operand.hbm [shape: f32[16,8,512], index: 6, kind: output, shape index: {}, may-alias: {0,6}]  }
   0x1   :  { %13 = vsyncpa [#allocation3 + $0x1], 0 }
   0x2   :  { %14 = vsyncpa [#allocation6], 0 }
   0x3   :  { %15 = vsyncpa [#allocation9], 0 }
   0x4   :  { %16 = vsyncpa [#allocation4], 0 }
   0x5   :  { %18 = vsyncpa [#allocation4 + $0x1], 0  ;;  %s8163_s21 = smov 0   ;;  %s8165_s22 = smov 0  }
   0x6   :  { %s8167_s23 = smov 0   ;;  %s8169_s24 = smov 0  }
   0x7 LB: > { %s8184_s25 = sadd.s32 4294967295, %s8114_s24   ;;  %s6262_s26 = sadd.s32 4294967294, %s8114_s24   ;;  %s8114_s24 = sphi %s8169_s24, %s10308_s24   ;;  %s8110_s23 = sphi %s8167_s23, %s10307_s23   ;;  %s8106_s22 = sphi %s8165_s22, %s10306_s22   ;;  %s8102_s21 = sphi %s8163_s21, %s10305_s21  }
   0x8   : > { %p44_p0 = scmp.ne.s32.totalorder %s8106_s22, %s8102_s21  ;;  %p10216_p1 = scmp.eq.s32.totalorder %s8184_s25, 0 }
   0x9   : > { %p179_p3 = scmp.eq.s32.totalorder %s6262_s26, 1  ;;  %p6263_p5 = scmp.ge.s32.totalorder %s8114_s24, 1 }
   0xa   : > { %p8193_p4 = por %p10216_p1, %p44_p0  ;;  %p186_p7 = scmp.lt.s32.totalorder %s8114_s24, 3 }
   0xb   : > { %p8198_p6 = por %p179_p3, %p44_p0  ;;  %s8116_s30 = smov [#allocation5]  }
   0xc   : > { %s10227_s27 = scalar_select %p8193_p4, 1, 0 }
   0xd   : > { %s10228_s28 = scalar_select %p8198_p6, 1, 0 }
   0xe   : > { %p8203_p8 = pnand %p6263_p5, %p186_p7  ;;  %s202_s7 = sshll.u32 %s8116_s30, 4  ;;  %s203_s7 = int_to_ptr.vmem [resolvable:$true] %s202_s7 }
   0xf   : > { %s8117_s8 = smov [#allocation7]   ;;  %s8118_s11 = smov [#allocation8]  }
  0x10   : > { %s10229_s29 = scalar_select %p8203_p8, 1, 0 }
  0x11   : > { %p7360_p10 = pneg %p8203_p8  ;;  %s212_s9 = sshll.u32 %s8117_s8, 4  ;;  %s8216_s9 = int_to_ptr.vmem [resolvable:$true] %s212_s9 }
  0x12   : > { %s8218_s12 = sshll.u32 %s8118_s11, 4  ;;  %s7926_s15 = scalar_lea.hbm %s10211_s2, 64  ;;  %s229_s12 = int_to_ptr.vmem [resolvable:$true] %s8218_s12 }
  0x13   : > { %p8212_p11 = pnand %p7360_p10, %p10216_p1  ;;  %p7927_p12 = scmp.ne.s32.totalorder %s10211_s2, %s7926_s15 }
  0x14   : > { %p7933_p5 = scmp.lt.u32.totalorder %s7926_s15, %s10211_s2 }
  0x15   : > { %p8228_p13 = pneg %p8212_p11 }
  0x17   : > { %p7929_p0 = pnand %p8228_p13, %p7927_p12 }
  0x19   : > { %p7930_p3 = pneg %p7929_p0 }
  0x1b   : > { %p7935_p7 = pnand %p7933_p5, %p7930_p3 }
  0x1d   : > { %7938 = shalt.err (!%p7935_p7)
}
  0x1e   : > { %s7939_s26 = scalar_lea.vmem %s203_s7, 64  ;;  %p7947_p2 = scmp.lt.s32.totalorder %s203_s7, %s203_s7 }
  0x1f   : > { %p7940_p10 = scmp.ne.s32.totalorder %s203_s7, %s7939_s26  ;;  %p7948_p6 = scmp.lt.s32.totalorder %s7939_s26, %s7939_s26 }
  0x21   : > { %p7942_p9 = pnand %p7940_p10, %p8228_p13  ;;  %p7949_p4 = por %p7948_p6, %p7947_p2 }
  0x23   : > { %p7943_p1 = pneg %p7942_p9 }
  0x25   : > { %p7950_p8 = pnand %p7949_p4, %p7943_p1 }
  0x27   : > { %7953 = shalt.err (!%p7950_p8)
}
  0x28   : > { %7363 = dma.hbm_to_vmem [thread:$0]  (!%p8212_p11), %s10211_s2, 64, %s203_s7, [#allocation6]  }
  0x29   : > { %s7954_s14 = scalar_lea.hbm %s10212_s3, 32768 }
  0x2a   : > { %p7955_p9 = scmp.ne.s32.totalorder %s10212_s3, %s7954_s14  ;;  %p7961_p1 = scmp.lt.u32.totalorder %s7954_s14, %s10212_s3 }
  0x2c   : > { %p7957_p12 = pnand %p7955_p9, %p8228_p13 }
  0x2e   : > { %p7958_p2 = pneg %p7957_p12 }
  0x30   : > { %p7963_p4 = pnand %p7961_p1, %p7958_p2 }
  0x32   : > { %7966 = shalt.err (!%p7963_p4)
}
  0x33   : > { %s7967_s7 = scalar_lea.vmem %s8216_s9, 32768  ;;  %p7975_p3 = scmp.lt.s32.totalorder %s8216_s9, %s8216_s9 }
  0x34   : > { %p7968_p6 = scmp.ne.s32.totalorder %s8216_s9, %s7967_s7  ;;  %p7976_p5 = scmp.lt.s32.totalorder %s7967_s7, %s7967_s7 }
  0x36   : > { %p7970_p8 = pnand %p7968_p6, %p8228_p13  ;;  %p7977_p7 = por %p7976_p5, %p7975_p3 }
  0x38   : > { %p7971_p0 = pneg %p7970_p8 }
  0x3a   : > { %p7978_p10 = pnand %p7977_p7, %p7971_p0 }
  0x3c   : > { %7981 = shalt.err (!%p7978_p10)
}
  0x3d   : > { %s8119_s20 = smov 512   ;;  %s8120_s26 = smov 32  }
  0x3e   : > { %7366 = dma.hbm_to_vmem [thread:$0]  (!%p8212_p11), %s10212_s3, 32768, %s8216_s9, [#allocation6], %s8119_s20, %s8119_s20, %s8120_s26  }
  0x3f   : > { %s7982_s14 = scalar_lea.hbm %s10214_s5, 1024 }
  0x40   : > { %p7983_p9 = scmp.ne.s32.totalorder %s10214_s5, %s7982_s14  ;;  %p7989_p1 = scmp.lt.u32.totalorder %s7982_s14, %s10214_s5 }
  0x42   : > { %p7985_p12 = pnand %p7983_p9, %p8228_p13 }
  0x44   : > { %p7986_p2 = pneg %p7985_p12 }
  0x46   : > { %p7991_p4 = pnand %p7989_p1, %p7986_p2 }
  0x48   : > { %7994 = shalt.err (!%p7991_p4)
}
  0x49   : > { %s7995_s7 = scalar_lea.vmem %s229_s12, 1024  ;;  %p8003_p3 = scmp.lt.s32.totalorder %s229_s12, %s229_s12 }
  0x4a   : > { %p7996_p6 = scmp.ne.s32.totalorder %s229_s12, %s7995_s7  ;;  %p8004_p5 = scmp.lt.s32.totalorder %s7995_s7, %s7995_s7 }
  0x4c   : > { %p7998_p8 = pnand %p7996_p6, %p8228_p13  ;;  %p8005_p7 = por %p8004_p5, %p8003_p3 }
  0x4e   : > { %p7999_p0 = pneg %p7998_p8 }
  0x50   : > { %p8006_p10 = pnand %p8005_p7, %p7999_p0 }
  0x52   : > { %8009 = shalt.err (!%p8006_p10)
}
  0x53   : > { %s8121_s9 = smov 128   ;;  %s8122_s18 = smov 8  }
  0x54   : > { %7369 = dma.hbm_to_vmem [thread:$0]  (!%p8212_p11), %s10214_s5, 1024, %s229_s12, [#allocation9], %s8121_s9, %s8121_s9, %s8122_s18  }
  0x55   : > { %s8290_s11 = sadd.s32 1, %s8114_s24   ;;  %s31_s14 = sadd.s32 1, %s8110_s23 }
  0x56   : > { %s28_s13 = ssub.s32 %s8114_s24, %s8290_s11  ;;  %p38_p9 = scmp.ne.s32.totalorder %s8110_s23, %s8106_s22 }
  0x57   : > { %p29_p13 = scmp.eq.s32.totalorder %s28_s13, 0  ;;  %p39_p12 = scmp.eq.s32.totalorder %s8114_s24, 0 }
  0x58   : > { %p7381_p2 = scmp.lt.s32.totalorder %s8114_s24, 2  ;;  %p10232_p4 = scmp.eq.s32.totalorder %s8184_s25, 1 }
  0x59   : > { %s8300_s15 = scalar_select %p29_p13, %s8110_s23, %s31_s14  }
  0x5a   : > { %p40_p1 = por %p39_p12, %p38_p9  ;;  %p8304_p6 = por %p10232_p4, %p38_p9 }
  0x5b   : > { %s242_s10 = sand.u32 1, %s8110_s23   ;;  %s6733_s17 = sshll.u32 %s8114_s24, 12 }
  0x5c   : > { %s6268_s12 = sshll.u32 %s242_s10, 8  ;;  %s8313_s9 = scalar_lea.hbm %s10209_s0, %s6733_s17 }
  0x5d   : > { %s246_s18 = scalar_lea.vmem [#allocation2], %s6268_s12  ;;  %p8315_p11 = pnand %p7381_p2, %p40_p1 }
  0x5e   : > { %s254_s30 = sshll.u32 %s246_s18, 4  ;;  %s8321_s13 = scalar_lea.sflag [#allocation3], %s242_s10  ;;  %s8319_s30 = int_to_ptr.vmem [resolvable:$true] %s254_s30 }
  0x5f   : > { %s8010_s14 = scalar_lea.hbm %s8313_s9, 4096  ;;  %p8012_p0 = pneg %p8315_p11 }
  0x60   : > { %p8011_p8 = scmp.ne.s32.totalorder %s8313_s9, %s8010_s14  ;;  %s8015_s19 = scalar_lea.hbm %s10209_s0, 8192 }
  0x61   : > { %p8016_p7 = scmp.lt.u32.totalorder %s8313_s9, %s10209_s0  ;;  %p8017_p10 = scmp.lt.u32.totalorder %s8015_s19, %s8010_s14 }
  0x62   : > { %p8013_p3 = pnand %p8012_p0, %p8011_p8  ;;  %p8019_p9 = scmp.lt.u32.totalorder %s8010_s14, %s8313_s9 }
  0x63   : > { %p8018_p13 = por %p8017_p10, %p8016_p7 }
  0x64   : > { %p8014_p5 = pneg %p8013_p3 }
  0x65   : > { %p8020_p12 = por %p8019_p9, %p8018_p13 }
  0x67   : > { %p8021_p2 = pnand %p8020_p12, %p8014_p5 }
  0x69   : > { %8024 = shalt.err (!%p8021_p2)
}
  0x6a   : > { %s8025_s10 = scalar_lea.vmem %s8319_s30, 4096  ;;  %s8123_s17 = smov [#allocation2]  }
  0x6b   : > { %p8026_p1 = scmp.ne.s32.totalorder %s8319_s30, %s8025_s10  ;;  %s8030_s12 = sshll.u32 %s8123_s17, 4  ;;  %s8031_s12 = int_to_ptr.vmem [resolvable:$false] %s8030_s12 }
  0x6c   : > { %s8032_s7 = scalar_lea.vmem %s8031_s12, 8192  ;;  %p8033_p3 = scmp.lt.s32.totalorder %s8319_s30, %s8031_s12 }
  0x6d   : > { %p8028_p4 = pnand %p8026_p1, %p8012_p0  ;;  %p8034_p7 = scmp.lt.s32.totalorder %s8032_s7, %s8025_s10 }
  0x6f   : > { %p8029_p8 = pneg %p8028_p4  ;;  %p8035_p10 = por %p8034_p7, %p8033_p3 }
  0x71   : > { %p8036_p13 = pnand %p8035_p10, %p8029_p8 }
  0x73   : > { %8039 = shalt.err (!%p8036_p13)
}
  0x74   : > { %7373 = dma.hbm_to_vmem [thread:$0]  (!%p8315_p11), %s8313_s9, 4096, %s8319_s30, %s8321_s13, %s8119_s20, %s8119_s20, %s8120_s26  }
  0x75   : > { %p10235_p0 = scmp.ne.s32.totalorder %s10229_s29, 0 }
  0x77   : > { %266 = sbr.rel (%p10235_p0) target bundleno = 5320 (0x14c8), region = 44 }
  0x7e   : > { %s8355_s14 = sand.u32 1, %s8106_s22   ;;  %p10236_p5 = scmp.ne.s32.totalorder %s10227_s27, 0 }
  0x7f   : > { %s6273_s19 = sshll.u32 %s8355_s14, 8  ;;  %s269_s18 = scalar_lea.sflag [#allocation3], %s8355_s14 }
  0x80   : > { %s8361_s8 = scalar_lea.vmem [#allocation2], %s6273_s19 }
  0x81   : > { %8085 = dma.done.wait (%p10236_p5), %s269_s18, 4096  }
  0x82   : > { %8087 = vsyncadd (%p10236_p5), %s269_s18, 4294963200  ;;  %p10237_p11 = scmp.eq.s32.totalorder %s8184_s25, 0 }
  0x84   : > { %8089 = dma.done.wait (%p10237_p11), [#allocation6], 32832   ;;  %p10238_p9 = pmov %p10237_p11 }
  0x86   : > { %8091 = vsyncadd (%p10238_p9), [#allocation6], 4294934464  ;;  %p10239_p12 = pmov %p10238_p9 }
  0x87   : > { %p10240_p2 = pmov %p10238_p9 }
  0x88   : > { %8093 = dma.done.wait (%p10239_p12), [#allocation9], 1024  }
  0x89   : > { %8095 = vsyncadd (%p10240_p2), [#allocation9], 4294966272  ;;  %v7428_v0 = vld [vmem:[%s10210_s1 + $0x4] ss:$16 sps:$4 sm:$0xff]   ;;  %v7430_v1 = vld [vmem:[%s10210_s1] ss:$16 sps:$4 sm:$0xff]  }
  0x8a   : > { %1154 = vmatprep.subr.bf16.mxu0 %v7428_v0  ;;  %v7431_v2 = vld [vmem:[%s10210_s1 + $0x24] ss:$16 sps:$4 sm:$0xff]   ;;  %v7433_v3 = vld [vmem:[%s10210_s1 + $0x20] ss:$16 sps:$4 sm:$0xff]   ;;  %v317_v13 = vld [vmem:[%s8361_s8 + $0x8] sm:$0xff]  ;;  %vm3696_vm0 = vcmask 523264  }
  0x8b   : > { %1155 = vmatpush1.bf16.msra.mxu0 %v7430_v1  ;;  %v7434_v4 = vld [vmem:[%s10210_s1 + $0x44] ss:$16 sps:$4 sm:$0xff]   ;;  %v7436_v5 = vld [vmem:[%s10210_s1 + $0x40] ss:$16 sps:$4 sm:$0xff]   ;;  %v321_v14 = vld [vmem:[%s8361_s8 + $0x28] sm:$0xff]  ;;  %s8124_s13 = smov 64  }
  0x8c   : > { %1156 = vmatprep.subr.bf16.mxu0 %v7431_v2  ;;  %v7437_v6 = vld [vmem:[%s10210_s1 + $0x64] ss:$16 sps:$4 sm:$0xff]   ;;  %v7439_v7 = vld [vmem:[%s10210_s1 + $0x60] ss:$16 sps:$4 sm:$0xff]   ;;  %v8416_v15 = vpack.c.bf16 %v321_v14, %v317_v13  ;;  %v325_v38 = vld [vmem:[%s8361_s8 + $0x48] sm:$0xff]  ;;  %s10018_s12 = scalar_lea.vmem [#allocation10], %s6273_s19 }
  0x8d   : > { %v7440_v8 = vld [vmem:[%s10210_s1 + $0x84] ss:$16 sps:$4 sm:$0xff]   ;;  %v7442_v9 = vld [vmem:[%s10210_s1 + $0x80] ss:$16 sps:$4 sm:$0xff]   ;;  %v329_v39 = vld [vmem:[%s8361_s8 + $0x68] sm:$0xff]  ;;  %s6735_s19 = sshll.u32 %s8184_s25, 12 }
  0x8e   : > { %v7443_v10 = vld [vmem:[%s10210_s1 + $0xa4] ss:$16 sps:$4 sm:$0xff]   ;;  %v7445_v11 = vld [vmem:[%s10210_s1 + $0xa0] ss:$16 sps:$4 sm:$0xff]   ;;  %1186 = vmatprep.mubr.bf16.mxu0 %v8416_v15  ;;  %1332 = vmatprep.mubr.bf16.mxu1 %v8416_v15  ;;  %v8489_v42 = vpack.c.bf16 %v329_v39, %v325_v38  ;;  %v333_v48 = vld [vmem:[%s8361_s8 + $0x88] sm:$0xff]  ;;  %s6160_s7 = sshll.u32 %s10018_s12, 4  ;;  %s10160_s20 = scalar_lea.hbm %s10215_s6, %s6735_s19  ;;  %s10162_s7 = int_to_ptr.vmem [resolvable:$true] %s6160_s7 }
  0x8f   : > { %1157 = vmatpush1.bf16.msra.mxu0 %v7433_v3  ;;  %v7446_v12 = vld [vmem:[%s10210_s1 + $0xc4] ss:$16 sps:$4 sm:$0xff]   ;;  %v7448_v16 = vld [vmem:[%s10210_s1 + $0xc0] ss:$16 sps:$4 sm:$0xff]   ;;  %v337_v49 = vld [vmem:[%s8361_s8 + $0xa8] sm:$0xff]  ;;  %s6146_s25 = scalar_lea.sflag [#allocation4], %s8355_s14 }
  0x90   : > { %1158 = vmatprep.subr.bf16.mxu0 %v7434_v4  ;;  %v7449_v17 = vld [vmem:[%s10210_s1 + $0xe4] ss:$16 sps:$4 sm:$0xff]   ;;  %v7451_v18 = vld [vmem:[%s10210_s1 + $0xe0] ss:$16 sps:$4 sm:$0xff]   ;;  %v8514_v53 = vpack.c.bf16 %v337_v49, %v333_v48  ;;  %v341_v58 = vld [vmem:[%s8361_s8 + $0xc8] sm:$0xff]  ;;  %s8040_s26 = scalar_lea.vmem %s10162_s7, 4096 }
  0x91   : > { %v7452_v19 = vld [vmem:[%s10210_s1 + $0x104] ss:$16 sps:$4 sm:$0xff]   ;;  %v7454_v20 = vld [vmem:[%s10210_s1 + $0x100] ss:$16 sps:$4 sm:$0xff]   ;;  %v345_v59 = vld [vmem:[%s8361_s8 + $0xe8] sm:$0xff]  ;;  %p8041_p1 = scmp.ne.s32.totalorder %s10162_s7, %s8040_s26  ;;  %s8125_s9 = smov [#allocation10]  }
  0x92   : > { %v7455_v21 = vld [vmem:[%s10210_s1 + $0x124] ss:$16 sps:$4 sm:$0xff]   ;;  %v7457_v22 = vld [vmem:[%s10210_s1 + $0x120] ss:$16 sps:$4 sm:$0xff]   ;;  %v8536_v63 = vpack.c.bf16 %v345_v59, %v341_v58  ;;  %v319_v4 = vld [vmem:[%s8361_s8 + $0x18] sm:$0xff]  ;;  %s8044_s27 = sshll.u32 %s8125_s9, 4  ;;  %s8045_s27 = int_to_ptr.vmem [resolvable:$false] %s8044_s27 }
  0x93   : > { %1159 = vmatpush1.bf16.msra.mxu0 %v7436_v5  ;;  %v7458_v23 = vld [vmem:[%s10210_s1 + $0x144] ss:$16 sps:$4 sm:$0xff]   ;;  %v7460_v24 = vld [vmem:[%s10210_s1 + $0x140] ss:$16 sps:$4 sm:$0xff]   ;;  %v323_v5 = vld [vmem:[%s8361_s8 + $0x38] sm:$0xff]  ;;  %p8042_p4 = pnand %p8041_p1, %p8304_p6  ;;  %s8046_s30 = scalar_lea.vmem %s8045_s27, 8192 }
  0x94   : > { %1160 = vmatprep.subr.bf16.mxu0 %v7437_v6  ;;  %v7461_v25 = vld [vmem:[%s10210_s1 + $0x164] ss:$16 sps:$4 sm:$0xff]   ;;  %v7463_v26 = vld [vmem:[%s10210_s1 + $0x160] ss:$16 sps:$4 sm:$0xff]   ;;  %v335_v49 = vld [vmem:[%s8361_s8 + $0x98] sm:$0xff]  ;;  %p8047_p3 = scmp.lt.s32.totalorder %s10162_s7, %s8045_s27  ;;  %p8048_p7 = scmp.lt.s32.totalorder %s8046_s30, %s8040_s26 }
  0x95   : > { %v7464_v27 = vld [vmem:[%s10210_s1 + $0x184] ss:$16 sps:$4 sm:$0xff]   ;;  %v7466_v28 = vld [vmem:[%s10210_s1 + $0x180] ss:$16 sps:$4 sm:$0xff]   ;;  %p8043_p8 = pneg %p8042_p4 }
  0x96   : > { %v7467_v29 = vld [vmem:[%s10210_s1 + $0x1a4] ss:$16 sps:$4 sm:$0xff]   ;;  %v7469_v30 = vld [vmem:[%s10210_s1 + $0x1a0] ss:$16 sps:$4 sm:$0xff]   ;;  %p8049_p10 = por %p8048_p7, %p8047_p3 }
  0x97   : > { %1161 = vmatpush1.bf16.msra.mxu0 %v7439_v7  ;;  %v7470_v31 = vld [vmem:[%s10210_s1 + $0x1c4] ss:$16 sps:$4 sm:$0xff]   ;;  %v7472_v32 = vld [vmem:[%s10210_s1 + $0x1c0] ss:$16 sps:$4 sm:$0xff]  }
  0x98   : > { %1162 = vmatprep.subr.bf16.mxu0 %v7440_v8  ;;  %v7473_v33 = vld [vmem:[%s10210_s1 + $0x1e4] ss:$16 sps:$4 sm:$0xff]   ;;  %v7475_v34 = vld [vmem:[%s10210_s1 + $0x1e0] ss:$16 sps:$4 sm:$0xff]   ;;  %p8050_p13 = pnand %p8049_p10, %p8043_p8 }
  0x99   : > { %v316_v35 = vld [vmem:[%s8361_s8] sm:$0xff] }
  0x9a   : > { %v320_v36 = vld [vmem:[%s8361_s8 + $0x20] sm:$0xff] }
  0x9b   : > { %1163 = vmatpush1.bf16.msra.mxu0 %v7442_v9  ;;  %v7478_v37 = vld [vmem:[%s10210_s1 + $0x204] ss:$16 sps:$4 sm:$0xff]   ;;  %v8484_v40 = vpack.c.bf16 %v320_v36, %v316_v35  ;;  %v7476_v41 = vld [vmem:[%s10210_s1 + $0x200] ss:$16 sps:$4 sm:$0xff]   ;;  %v8558_v9 = vpack.c.bf16 %v323_v5, %v319_v4  ;;  %v347_v4 = vld [vmem:[%s8361_s8 + $0xf8] sm:$0xff] }
  0x9c   : > { %1164 = vmatprep.subr.bf16.mxu0 %v7443_v10  ;;  %v7481_v43 = vld [vmem:[%s10210_s1 + $0x224] ss:$16 sps:$4 sm:$0xff]   ;;  %v7479_v44 = vld [vmem:[%s10210_s1 + $0x220] ss:$16 sps:$4 sm:$0xff]  }
  0x9d   : > { %v324_v45 = vld [vmem:[%s8361_s8 + $0x40] sm:$0xff] }
  0x9e   : > { %v328_v46 = vld [vmem:[%s8361_s8 + $0x60] sm:$0xff] }
  0x9f   : > { %1165 = vmatpush1.bf16.msra.mxu0 %v7445_v11  ;;  %v7484_v47 = vld [vmem:[%s10210_s1 + $0x244] ss:$16 sps:$4 sm:$0xff]   ;;  %v8506_v50 = vpack.c.bf16 %v328_v46, %v324_v45  ;;  %v7482_v51 = vld [vmem:[%s10210_s1 + $0x240] ss:$16 sps:$4 sm:$0xff]  }
  0xa0   : > { %1166 = vmatprep.subr.bf16.mxu0 %v7446_v12  ;;  %v7487_v52 = vld [vmem:[%s10210_s1 + $0x264] ss:$16 sps:$4 sm:$0xff]   ;;  %v7485_v54 = vld [vmem:[%s10210_s1 + $0x260] ss:$16 sps:$4 sm:$0xff]  }
  0xa1   : > { %v332_v55 = vld [vmem:[%s8361_s8 + $0x80] sm:$0xff]  ;;  %v326_v46 = vld [vmem:[%s8361_s8 + $0x50] sm:$0xff] }
  0xa2   : > { %v336_v56 = vld [vmem:[%s8361_s8 + $0xa0] sm:$0xff] }
  0xa3   : > { %1167 = vmatpush1.bf16.msra.mxu0 %v7448_v16  ;;  %v7490_v57 = vld [vmem:[%s10210_s1 + $0x284] ss:$16 sps:$4 sm:$0xff]   ;;  %v8528_v60 = vpack.c.bf16 %v336_v56, %v332_v55  ;;  %v7488_v61 = vld [vmem:[%s10210_s1 + $0x280] ss:$16 sps:$4 sm:$0xff]  }
  0xa4   : > { %1168 = vmatprep.subr.bf16.mxu0 %v7449_v17  ;;  %v7493_v62 = vld [vmem:[%s10210_s1 + $0x2a4] ss:$16 sps:$4 sm:$0xff]   ;;  %v7491_v0 = vld [vmem:[%s10210_s1 + $0x2a0] ss:$16 sps:$4 sm:$0xff]  }
  0xa5   : > { %v340_v1 = vld [vmem:[%s8361_s8 + $0xc0] sm:$0xff] }
  0xa6   : > { %v344_v2 = vld [vmem:[%s8361_s8 + $0xe0] sm:$0xff] }
  0xa7   : > { %1169 = vmatpush1.bf16.msra.mxu0 %v7451_v18  ;;  %v7496_v3 = vld [vmem:[%s10210_s1 + $0x2c4] ss:$16 sps:$4 sm:$0xff]   ;;  %v8550_v6 = vpack.c.bf16 %v344_v2, %v340_v1  ;;  %v7494_v7 = vld [vmem:[%s10210_s1 + $0x2c0] ss:$16 sps:$4 sm:$0xff]  }
  0xa8   : > { %1170 = vmatprep.subr.bf16.mxu0 %v7452_v19  ;;  %v7499_v8 = vld [vmem:[%s10210_s1 + $0x2e4] ss:$16 sps:$4 sm:$0xff]   ;;  %v7497_v10 = vld [vmem:[%s10210_s1 + $0x2e0] ss:$16 sps:$4 sm:$0xff]  }
  0xa9   : > { %v7502_v11 = vld [vmem:[%s10210_s1 + $0x304] ss:$16 sps:$4 sm:$0xff]   ;;  %v7500_v12 = vld [vmem:[%s10210_s1 + $0x300] ss:$16 sps:$4 sm:$0xff]  }
  0xaa   : > { %v7505_v13 = vld [vmem:[%s10210_s1 + $0x324] ss:$16 sps:$4 sm:$0xff]   ;;  %v7503_v14 = vld [vmem:[%s10210_s1 + $0x320] ss:$16 sps:$4 sm:$0xff]  }
  0xab   : > { %1171 = vmatpush1.bf16.msra.mxu0 %v7454_v20  ;;  %v7508_v16 = vld [vmem:[%s10210_s1 + $0x344] ss:$16 sps:$4 sm:$0xff]   ;;  %v7506_v17 = vld [vmem:[%s10210_s1 + $0x340] ss:$16 sps:$4 sm:$0xff]  }
  0xac   : > { %1172 = vmatprep.subr.bf16.mxu0 %v7455_v21  ;;  %v7511_v18 = vld [vmem:[%s10210_s1 + $0x364] ss:$16 sps:$4 sm:$0xff]   ;;  %v7509_v19 = vld [vmem:[%s10210_s1 + $0x360] ss:$16 sps:$4 sm:$0xff]  }
  0xad   : > { %v7514_v20 = vld [vmem:[%s10210_s1 + $0x384] ss:$16 sps:$4 sm:$0xff]   ;;  %v7512_v21 = vld [vmem:[%s10210_s1 + $0x380] ss:$16 sps:$4 sm:$0xff]  }
  0xae   : > { %v1454_v35 = vld [vmem:[#allocation7 + $0x40] sm:$0xff]  ;;  %v338_v1 = vld [vmem:[%s8361_s8 + $0xb0] sm:$0xff] }
  0xaf   : > { %1173 = vmatpush1.bf16.msra.mxu0 %v7457_v22  ;;  %v7517_v22 = vld [vmem:[%s10210_s1 + $0x3a4] ss:$16 sps:$4 sm:$0xff]  }
  0xb0   : > { %1174 = vmatprep.subr.bf16.mxu0 %v7458_v23  ;;  %v7515_v23 = vld [vmem:[%s10210_s1 + $0x3a0] ss:$16 sps:$4 sm:$0xff]   ;;  %v1458_v36 = vld [vmem:[#allocation7 + $0x60] sm:$0xff] }
  0xb1   : > { %v6414_v45 = vcombine.low %v1454_v35, %v1458_v36  ;;  %v1478_v59 = vld [vmem:[#allocation7 + $0x100] sm:$0xff] }
  0xb2   : > { %v1486_v5 = vld [vmem:[#allocation7 + $0x140] sm:$0xff] }
  0xb3   : > { %1175 = vmatpush1.bf16.msra.mxu0 %v7460_v24  ;;  %v7520_v24 = vld [vmem:[%s10210_s1 + $0x3c4] ss:$16 sps:$4 sm:$0xff]  }
  0xb4   : > { %1176 = vmatprep.subr.bf16.mxu0 %v7461_v25  ;;  %v7518_v25 = vld [vmem:[%s10210_s1 + $0x3c0] ss:$16 sps:$4 sm:$0xff]  }
  0xb7   : > { %1177 = vmatpush1.bf16.msra.mxu0 %v7463_v26  ;;  %v7523_v26 = vld [vmem:[%s10210_s1 + $0x3e4] ss:$16 sps:$4 sm:$0xff]  }
  0xb8   : > { %1178 = vmatprep.subr.bf16.mxu0 %v7464_v27  ;;  %v1446_v27 = vld [vmem:[#allocation7] sm:$0xff] }
  0xbb   : > { %1179 = vmatpush1.bf16.msra.mxu0 %v7466_v28  ;;  %v1450_v28 = vld [vmem:[#allocation7 + $0x20] sm:$0xff] }
  0xbc   : > { %1180 = vmatprep.subr.bf16.mxu0 %v7467_v29  ;;  %v7521_v29 = vld [vmem:[%s10210_s1 + $0x3e0] ss:$16 sps:$4 sm:$0xff]   ;;  %v6406_v38 = vcombine.low %v1446_v27, %v1450_v28 }
  0xbf   : > { %1181 = vmatpush1.bf16.msra.mxu0 %v7469_v30  ;;  %v318_v30 = vld [vmem:[%s8361_s8 + $0x10] sm:$0xff] }
  0xc0   : > { %1182 = vmatprep.subr.bf16.mxu0 %v7470_v31  ;;  %v322_v31 = vld [vmem:[%s8361_s8 + $0x30] sm:$0xff] }
  0xc3   : > { %1183 = vmatpush1.bf16.msra.mxu0 %v7472_v32  ;;  %v6407_v32 = vcombine.high %v1446_v27, %v1450_v28 }
  0xc4   : > { %1184 = vmatprep.subr.bf16.mxu0 %v7473_v33  ;;  %v327_v33 = vld [vmem:[%s8361_s8 + $0x58] sm:$0xff] }
  0xc7   : > { %1185 = vmatpush1.bf16.msra.mxu0 %v7475_v34  ;;  %v331_v34 = vld [vmem:[%s8361_s8 + $0x78] sm:$0xff] }
  0xc8   : > { %1227 = vmatprep.subr.bf16.mxu0 %v7478_v37  ;;  %v8617_v37 = vpack.c.bf16 %v322_v31, %v318_v30  ;;  %v8619_v39 = vpack.c.bf16 %v331_v34, %v327_v33  ;;  %v1522_v30 = vld [vmem:[#allocation7 + $0x260] sm:$0xff] }
  0xc9   : > { %v1526_v33 = vld [vmem:[#allocation7 + $0x280] sm:$0xff] }
  0xca   : > { %1187 = vmatmul.mubr.bf16.vlgmr.msra.gmra.mrb[0].mxu0 %v8484_v40  ;;  %v1530_v34 = vld [vmem:[#allocation7 + $0x2a0] sm:$0xff] }
  0xcb   : > { %1228 = vmatpush1.bf16.msra.mxu0 %v7476_v41  ;;  %1196 = vmatprep.mubr.bf16.mxu0 %v8489_v42  ;;  %v6415_v41 = vcombine.high %v1454_v35, %v1458_v36  ;;  %v6487_v36 = vcombine.high %v1526_v33, %v1530_v34 }
  0xcc   : > { %1229 = vmatprep.subr.bf16.mxu0 %v7481_v43  ;;  %v1462_v43 = vld [vmem:[#allocation7 + $0x80] sm:$0xff] }
  0xcf   : > { %1230 = vmatpush1.bf16.msra.mxu0 %v7479_v44  ;;  %v1466_v44 = vld [vmem:[#allocation7 + $0xa0] sm:$0xff] }
  0xd0   : > { %1231 = vmatprep.subr.bf16.mxu0 %v7484_v47  ;;  %v330_v47 = vld [vmem:[%s8361_s8 + $0x70] sm:$0xff]  ;;  %v6423_v48 = vcombine.high %v1462_v43, %v1466_v44  ;;  %v6422_v56 = vcombine.low %v1462_v43, %v1466_v44  ;;  %v6486_v43 = vcombine.low %v1526_v33, %v1530_v34  ;;  %v7532_v33 = vld [vmem:[%s10210_s1 + $0x48] ss:$16 sps:$4 sm:$0xff]  }
  0xd1   : > { %v8627_v55 = vpack.c.bf16 %v330_v47, %v326_v46  ;;  %v1546_v46 = vld [vmem:[#allocation7 + $0x320] sm:$0xff] }
  0xd2   : > { %1197 = vmatmul.mubr.bf16.gmra.mrb[4].mxu0 %v8506_v50 }
  0xd3   : > { %1232 = vmatpush1.bf16.msra.mxu0 %v7482_v51  ;;  %1206 = vmatprep.mubr.bf16.mxu0 %v8514_v53  ;;  %v339_v51 = vld [vmem:[%s8361_s8 + $0xb8] sm:$0xff] }
  0xd4   : > { %1233 = vmatprep.subr.bf16.mxu0 %v7487_v52  ;;  %v1470_v52 = vld [vmem:[#allocation7 + $0xc0] sm:$0xff] }
  0xd7   : > { %1234 = vmatpush1.bf16.msra.mxu0 %v7485_v54  ;;  %v1474_v54 = vld [vmem:[#allocation7 + $0xe0] sm:$0xff] }
  0xd8   : > { %1235 = vmatprep.subr.bf16.mxu0 %v7490_v57  ;;  %v8629_v57 = vpack.c.bf16 %v339_v51, %v335_v49  ;;  %v6431_v58 = vcombine.high %v1470_v52, %v1474_v54  ;;  %v1550_v49 = vld [vmem:[#allocation7 + $0x340] sm:$0xff] }
  0xd9   : > { %v1554_v51 = vld [vmem:[#allocation7 + $0x360] sm:$0xff] }
  0xda   : > { %1207 = vmatmul.mubr.bf16.gmra.mrb[8].mxu0 %v8528_v60 }
  0xdb   : > { %1236 = vmatpush1.bf16.msra.mxu0 %v7488_v61  ;;  %1216 = vmatprep.mubr.bf16.mxu0 %v8536_v63  ;;  %v1482_v61 = vld [vmem:[#allocation7 + $0x120] sm:$0xff] }
  0xdc   : > { %1237 = vmatprep.subr.bf16.mxu0 %v7493_v62  ;;  %v6430_v62 = vcombine.low %v1470_v52, %v1474_v54  ;;  %v6439_v2 = vcombine.high %v1478_v59, %v1482_v61  ;;  %v6511_v54 = vcombine.high %v1550_v49, %v1554_v51 }
  0xdf   : > { %1238 = vmatpush1.bf16.msra.mxu0 %v7491_v0  ;;  %v334_v0 = vld [vmem:[%s8361_s8 + $0x90] sm:$0xff] }
  0xe0   : > { %1239 = vmatprep.subr.bf16.mxu0 %v7496_v3  ;;  %v343_v3 = vld [vmem:[%s8361_s8 + $0xd8] sm:$0xff] }
  0xe2   : > { %1217 = vmatmul.mubr.bf16.gmra.mrb[12].mxu0 %v8550_v6 }
  0xe3   : > { %1240 = vmatpush1.bf16.msra.mxu0 %v7494_v7  ;;  %1259 = vmatprep.mubr.bf16.mxu0 %v8558_v9  ;;  %v1490_v7 = vld [vmem:[#allocation7 + $0x160] sm:$0xff] }
  0xe4   : > { %1241 = vmatprep.subr.bf16.mxu0 %v7499_v8  ;;  %v8637_v8 = vpack.c.bf16 %v338_v1, %v334_v0  ;;  %v1570_v0 = vld [vmem:[#allocation7 + $0x3e0] sm:$0xff] }
  0xe7   : > { %1242 = vmatpush1.bf16.msra.mxu0 %v7497_v10  ;;  %v6438_v10 = vcombine.low %v1478_v59, %v1482_v61  ;;  %v6510_v59 = vcombine.low %v1550_v49, %v1554_v51  ;;  %v7538_v49 = vld [vmem:[%s10210_s1 + $0x88] ss:$16 sps:$4 sm:$0xff]  }
  0xe8   : > { %1243 = vmatprep.subr.bf16.mxu0 %v7502_v11  ;;  %v8639_v11 = vpack.c.bf16 %v347_v4, %v343_v3  ;;  %v1574_v3 = vld [vmem:[#allocation7 + $0x400] sm:$0xff] }
  0xe9   : > { %v1578_v4 = vld [vmem:[#allocation7 + $0x420] sm:$0xff] }
  0xeb   : > { %1244 = vmatpush1.bf16.msra.mxu0 %v7500_v12  ;;  %v6447_v12 = vcombine.high %v1486_v5, %v1490_v7 }
  0xec   : > { %1245 = vmatprep.subr.bf16.mxu0 %v7505_v13  ;;  %v1494_v13 = vld [vmem:[#allocation7 + $0x180] sm:$0xff] }
  0xef   : > { %1246 = vmatpush1.bf16.msra.mxu0 %v7503_v14  ;;  %v1498_v14 = vld [vmem:[#allocation7 + $0x1a0] sm:$0xff] }
  0xf0   : > { %1247 = vmatprep.subr.bf16.mxu0 %v7508_v16  ;;  %v6446_v16 = vcombine.low %v1486_v5, %v1490_v7  ;;  %v6535_v7 = vcombine.high %v1574_v3, %v1578_v4 }
  0xf3   : > { %1248 = vmatpush1.bf16.msra.mxu0 %v7506_v17  ;;  %v342_v17 = vld [vmem:[%s8361_s8 + $0xd0] sm:$0xff] }
  0xf4   : > { %1249 = vmatprep.subr.bf16.mxu0 %v7511_v18  ;;  %v346_v18 = vld [vmem:[%s8361_s8 + $0xf0] sm:$0xff] }
  0xf7   : > { %1250 = vmatpush1.bf16.msra.mxu0 %v7509_v19  ;;  %v6455_v19 = vcombine.high %v1494_v13, %v1498_v14 }
  0xf8   : > { %1251 = vmatprep.subr.bf16.mxu0 %v7514_v20  ;;  %v1502_v20 = vld [vmem:[#allocation7 + $0x1c0] sm:$0xff] }
  0xfb   : > { %1252 = vmatpush1.bf16.msra.mxu0 %v7512_v21  ;;  %v1506_v21 = vld [vmem:[#allocation7 + $0x1e0] sm:$0xff] }
  0xfc   : > { %1253 = vmatprep.subr.bf16.mxu0 %v7517_v22  ;;  %v8645_v22 = vpack.c.bf16 %v346_v18, %v342_v17  ;;  %v6462_v27 = vcombine.low %v1502_v20, %v1506_v21  ;;  %v1594_v17 = vld [vmem:[#allocation7 + $0x4a0] sm:$0xff]  ;;  %v7524_v18 = vld [vmem:[%s10210_s1 + $0xc] ss:$16 sps:$4 sm:$0xff]  }
  0xfd   : > { %1300 = vmatprep.subr.bf16.mxu1 %v7524_v18  ;;  %v7548_v18 = vld [vmem:[%s10210_s1 + $0x10c] ss:$16 sps:$4 sm:$0xff]  }
  0xff   : > { %1254 = vmatpush1.bf16.msra.mxu0 %v7515_v23  ;;  %v6454_v23 = vcombine.low %v1494_v13, %v1498_v14  ;;  %v6534_v13 = vcombine.low %v1574_v3, %v1578_v4  ;;  %v7544_v3 = vld [vmem:[%s10210_s1 + $0xc8] ss:$16 sps:$4 sm:$0xff]  }
 0x100   : > { %1255 = vmatprep.subr.bf16.mxu0 %v7520_v24  ;;  %v6463_v24 = vcombine.high %v1502_v20, %v1506_v21  ;;  %v7526_v20 = vld [vmem:[%s10210_s1 + $0x8] ss:$16 sps:$4 sm:$0xff]  }
 0x101   : > { %1301 = vmatpush1.bf16.msra.mxu1 %v7526_v20  ;;  %v7550_v20 = vld [vmem:[%s10210_s1 + $0x108] ss:$16 sps:$4 sm:$0xff]  }
 0x103   : > { %1256 = vmatpush1.bf16.msra.mxu0 %v7518_v25  ;;  %v1510_v25 = vld [vmem:[#allocation7 + $0x200] sm:$0xff] }
 0x104   : > { %1257 = vmatprep.subr.bf16.mxu0 %v7523_v26  ;;  %v1514_v26 = vld [vmem:[#allocation7 + $0x220] sm:$0xff] }
 0x105   : > { %v6471_v28 = vcombine.high %v1510_v25, %v1514_v26  ;;  %v6470_v31 = vcombine.low %v1510_v25, %v1514_v26  ;;  %v7527_v25 = vld [vmem:[%s10210_s1 + $0x2c] ss:$16 sps:$4 sm:$0xff]  }
 0x106   : > { %1302 = vmatprep.subr.bf16.mxu1 %v7527_v25  ;;  %v7551_v25 = vld [vmem:[%s10210_s1 + $0x12c] ss:$16 sps:$4 sm:$0xff]  }
 0x107   : > { %1258 = vmatpush1.bf16.msra.mxu0 %v7521_v29  ;;  %v1518_v29 = vld [vmem:[#allocation7 + $0x240] sm:$0xff] }
 0x108   : > { %3024 = vmatprep.subr.bf16.mxu0 %v6407_v32  ;;  %v6479_v32 = vcombine.high %v1518_v29, %v1522_v30  ;;  %v6478_v35 = vcombine.low %v1518_v29, %v1522_v30  ;;  %v1606_v29 = vld [vmem:[#allocation7 + $0x500] sm:$0xff] }
 0x109   : > { %v1610_v30 = vld [vmem:[#allocation7 + $0x520] sm:$0xff] }
 0x10a   : > { %1260 = vmatmul.mubr.bf16.vlgmr.msra.gmra.mrb[0].mxu0 %v8617_v37  ;;  %v6567_v34 = vcombine.high %v1606_v29, %v1610_v30 }
 0x10b   : > { %3025 = vmatpush1.bf16.msra.mxu0 %v6406_v38  ;;  %1269 = vmatprep.mubr.bf16.mxu0 %v8619_v39  ;;  %v1534_v38 = vld [vmem:[#allocation7 + $0x2c0] sm:$0xff] }
 0x10c   : > { %3026 = vmatprep.subr.bf16.mxu0 %v6415_v41  ;;  %v1538_v41 = vld [vmem:[#allocation7 + $0x2e0] sm:$0xff] }
 0x10d   : > { %v6495_v44 = vcombine.high %v1534_v38, %v1538_v41  ;;  %v6494_v47 = vcombine.low %v1534_v38, %v1538_v41  ;;  %v7533_v38 = vld [vmem:[%s10210_s1 + $0x6c] ss:$16 sps:$4 sm:$0xff]   ;;  %v6566_v41 = vcombine.low %v1606_v29, %v1610_v30  ;;  %v1670_v29 = vld [vmem:[#allocation7 + $0x700] sm:$0xff] }
 0x10e   : > { %v1674_v30 = vld [vmem:[#allocation7 + $0x720] sm:$0xff] }
 0x10f   : > { %3027 = vmatpush1.bf16.msra.mxu0 %v6414_v45  ;;  %v1542_v45 = vld [vmem:[#allocation7 + $0x300] sm:$0xff] }
 0x110   : > { %3028 = vmatprep.subr.bf16.mxu0 %v6423_v48  ;;  %v6503_v48 = vcombine.high %v1542_v45, %v1546_v46  ;;  %v6502_v52 = vcombine.low %v1542_v45, %v1546_v46  ;;  %v1622_v45 = vld [vmem:[#allocation7 + $0x580] sm:$0xff] }
 0x111   : > { %v1626_v46 = vld [vmem:[#allocation7 + $0x5a0] sm:$0xff] }
 0x112   : > { %1270 = vmatmul.mubr.bf16.gmra.mrb[4].mxu0 %v8627_v55  ;;  %v6583_v51 = vcombine.high %v1622_v45, %v1626_v46 }
 0x113   : > { %3029 = vmatpush1.bf16.msra.mxu0 %v6422_v56  ;;  %1279 = vmatprep.mubr.bf16.mxu0 %v8629_v57  ;;  %v1558_v56 = vld [vmem:[#allocation7 + $0x380] sm:$0xff] }
 0x114   : > { %3030 = vmatprep.subr.bf16.mxu0 %v6431_v58  ;;  %v1562_v58 = vld [vmem:[#allocation7 + $0x3a0] sm:$0xff] }
 0x115   : > { %v6519_v61 = vcombine.high %v1558_v56, %v1562_v58  ;;  %v6518_v1 = vcombine.low %v1558_v56, %v1562_v58  ;;  %v7539_v56 = vld [vmem:[%s10210_s1 + $0xac] ss:$16 sps:$4 sm:$0xff]   ;;  %v6582_v58 = vcombine.low %v1622_v45, %v1626_v46  ;;  %v1686_v45 = vld [vmem:[#allocation7 + $0x780] sm:$0xff] }
 0x116   : > { %v1690_v46 = vld [vmem:[#allocation7 + $0x7a0] sm:$0xff] }
 0x117   : > { %3031 = vmatpush1.bf16.msra.mxu0 %v6430_v62  ;;  %v1566_v62 = vld [vmem:[#allocation7 + $0x3c0] sm:$0xff] }
 0x118   : > { %3032 = vmatprep.subr.bf16.mxu0 %v6439_v2  ;;  %v6527_v2 = vcombine.high %v1566_v62, %v1570_v0  ;;  %v6526_v5 = vcombine.low %v1566_v62, %v1570_v0  ;;  %v1638_v62 = vld [vmem:[#allocation7 + $0x600] sm:$0xff] }
 0x119   : > { %v1642_v0 = vld [vmem:[#allocation7 + $0x620] sm:$0xff] }
 0x11a   : > { %1280 = vmatmul.mubr.bf16.gmra.mrb[8].mxu0 %v8637_v8  ;;  %v6599_v4 = vcombine.high %v1638_v62, %v1642_v0 }
 0x11b   : > { %3033 = vmatpush1.bf16.msra.mxu0 %v6438_v10  ;;  %1289 = vmatprep.mubr.bf16.mxu0 %v8639_v11  ;;  %v1582_v10 = vld [vmem:[#allocation7 + $0x440] sm:$0xff] }
 0x11c   : > { %3034 = vmatprep.subr.bf16.mxu0 %v6447_v12  ;;  %v1586_v12 = vld [vmem:[#allocation7 + $0x460] sm:$0xff] }
 0x11d   : > { %v6543_v14 = vcombine.high %v1582_v10, %v1586_v12 }
 0x11f   : > { %3035 = vmatpush1.bf16.msra.mxu0 %v6446_v16  ;;  %v1590_v16 = vld [vmem:[#allocation7 + $0x480] sm:$0xff] }
 0x120   : > { %3036 = vmatprep.subr.bf16.mxu0 %v6455_v19  ;;  %v6542_v19 = vcombine.low %v1582_v10, %v1586_v12  ;;  %v6551_v21 = vcombine.high %v1590_v16, %v1594_v17  ;;  %v6550_v26 = vcombine.low %v1590_v16, %v1594_v17  ;;  %v7545_v10 = vld [vmem:[%s10210_s1 + $0xec] ss:$16 sps:$4 sm:$0xff]   ;;  %v6598_v12 = vcombine.low %v1638_v62, %v1642_v0  ;;  %v1654_v16 = vld [vmem:[#allocation7 + $0x680] sm:$0xff]  ;;  %v1448_v62 = vld [vmem:[#allocation7 + $0x10] sm:$0xff] }
 0x121   : > { %v1658_v17 = vld [vmem:[#allocation7 + $0x6a0] sm:$0xff]  ;;  %v1452_v0 = vld [vmem:[#allocation7 + $0x30] sm:$0xff] }
 0x122   : > { %1290 = vmatmul.mubr.bf16.gmra.mrb[12].mxu0 %v8645_v22 }
 0x123   : > { %3037 = vmatpush1.bf16.msra.mxu0 %v6454_v23  ;;  %3056 = vmatprep.mubr.bf16.mxu0 %v8416_v15  ;;  %v1598_v23 = vld [vmem:[#allocation7 + $0x4c0] sm:$0xff] }
 0x124   : > { %3038 = vmatprep.subr.bf16.mxu0 %v6463_v24  ;;  %v1602_v24 = vld [vmem:[#allocation7 + $0x4e0] sm:$0xff] }
 0x127   : > { %3039 = vmatpush1.bf16.msra.mxu0 %v6462_v27  ;;  %v7529_v27 = vld [vmem:[%s10210_s1 + $0x28] ss:$16 sps:$4 sm:$0xff]  }
 0x128   : > { %3040 = vmatprep.subr.bf16.mxu0 %v6471_v28  ;;  %v6559_v28 = vcombine.high %v1598_v23, %v1602_v24  ;;  %1303 = vmatpush1.bf16.msra.mxu1 %v7529_v27  ;;  %v7553_v27 = vld [vmem:[%s10210_s1 + $0x128] ss:$16 sps:$4 sm:$0xff]  }
 0x12b   : > { %3041 = vmatpush1.bf16.msra.mxu0 %v6470_v31  ;;  %v7530_v31 = vld [vmem:[%s10210_s1 + $0x4c] ss:$16 sps:$4 sm:$0xff]  }
 0x12c   : > { %3042 = vmatprep.subr.bf16.mxu0 %v6479_v32  ;;  %v6558_v32 = vcombine.low %v1598_v23, %v1602_v24  ;;  %1304 = vmatprep.subr.bf16.mxu1 %v7530_v31  ;;  %v1662_v23 = vld [vmem:[#allocation7 + $0x6c0] sm:$0xff]  ;;  %v7554_v31 = vld [vmem:[%s10210_s1 + $0x14c] ss:$16 sps:$4 sm:$0xff]  }
 0x12d   : > { %1305 = vmatpush1.bf16.msra.mxu1 %v7532_v33  ;;  %v1666_v24 = vld [vmem:[#allocation7 + $0x6e0] sm:$0xff] }
 0x12e   : > { %1306 = vmatprep.subr.bf16.mxu1 %v7533_v38  ;;  %v7556_v33 = vld [vmem:[%s10210_s1 + $0x148] ss:$16 sps:$4 sm:$0xff]   ;;  %v7557_v38 = vld [vmem:[%s10210_s1 + $0x16c] ss:$16 sps:$4 sm:$0xff]  }
 0x12f   : > { %3043 = vmatpush1.bf16.msra.mxu0 %v6478_v35  ;;  %v1614_v35 = vld [vmem:[#allocation7 + $0x540] sm:$0xff] }
 0x130   : > { %3044 = vmatprep.subr.bf16.mxu0 %v6487_v36  ;;  %v1618_v36 = vld [vmem:[#allocation7 + $0x560] sm:$0xff] }
 0x133   : > { %3045 = vmatpush1.bf16.msra.mxu0 %v6486_v43  ;;  %v7535_v43 = vld [vmem:[%s10210_s1 + $0x68] ss:$16 sps:$4 sm:$0xff]  }
 0x134   : > { %3046 = vmatprep.subr.bf16.mxu0 %v6495_v44  ;;  %v6575_v44 = vcombine.high %v1614_v35, %v1618_v36  ;;  %1307 = vmatpush1.bf16.msra.mxu1 %v7535_v43  ;;  %v7559_v43 = vld [vmem:[%s10210_s1 + $0x168] ss:$16 sps:$4 sm:$0xff]  }
 0x137   : > { %3047 = vmatpush1.bf16.msra.mxu0 %v6494_v47  ;;  %v7536_v47 = vld [vmem:[%s10210_s1 + $0x8c] ss:$16 sps:$4 sm:$0xff]  }
 0x138   : > { %3048 = vmatprep.subr.bf16.mxu0 %v6503_v48  ;;  %v6574_v48 = vcombine.low %v1614_v35, %v1618_v36  ;;  %1308 = vmatprep.subr.bf16.mxu1 %v7536_v47  ;;  %v1678_v35 = vld [vmem:[#allocation7 + $0x740] sm:$0xff]  ;;  %v7560_v47 = vld [vmem:[%s10210_s1 + $0x18c] ss:$16 sps:$4 sm:$0xff]  }
 0x139   : > { %1309 = vmatpush1.bf16.msra.mxu1 %v7538_v49  ;;  %v1682_v36 = vld [vmem:[#allocation7 + $0x760] sm:$0xff] }
 0x13a   : > { %1310 = vmatprep.subr.bf16.mxu1 %v7539_v56  ;;  %v7562_v49 = vld [vmem:[%s10210_s1 + $0x188] ss:$16 sps:$4 sm:$0xff]   ;;  %v7563_v56 = vld [vmem:[%s10210_s1 + $0x1ac] ss:$16 sps:$4 sm:$0xff]  }
 0x13b   : > { %3049 = vmatpush1.bf16.msra.mxu0 %v6502_v52  ;;  %v1630_v52 = vld [vmem:[#allocation7 + $0x5c0] sm:$0xff] }
 0x13c   : > { %3050 = vmatprep.subr.bf16.mxu0 %v6511_v54  ;;  %v1634_v54 = vld [vmem:[#allocation7 + $0x5e0] sm:$0xff] }
 0x13f   : > { %3051 = vmatpush1.bf16.msra.mxu0 %v6510_v59  ;;  %v7541_v59 = vld [vmem:[%s10210_s1 + $0xa8] ss:$16 sps:$4 sm:$0xff]  }
 0x140   : > { %3052 = vmatprep.subr.bf16.mxu0 %v6519_v61  ;;  %v6591_v61 = vcombine.high %v1630_v52, %v1634_v54  ;;  %1311 = vmatpush1.bf16.msra.mxu1 %v7541_v59  ;;  %v7565_v59 = vld [vmem:[%s10210_s1 + $0x1a8] ss:$16 sps:$4 sm:$0xff]  }
 0x143   : > { %3053 = vmatpush1.bf16.msra.mxu0 %v6518_v1  ;;  %v7542_v1 = vld [vmem:[%s10210_s1 + $0xcc] ss:$16 sps:$4 sm:$0xff]  }
 0x144   : > { %3054 = vmatprep.subr.bf16.mxu0 %v6527_v2  ;;  %v6590_v2 = vcombine.low %v1630_v52, %v1634_v54  ;;  %1312 = vmatprep.subr.bf16.mxu1 %v7542_v1  ;;  %v1694_v52 = vld [vmem:[#allocation7 + $0x7c0] sm:$0xff]  ;;  %v7566_v1 = vld [vmem:[%s10210_s1 + $0x1cc] ss:$16 sps:$4 sm:$0xff]  }
 0x145   : > { %1313 = vmatpush1.bf16.msra.mxu1 %v7544_v3  ;;  %v1698_v54 = vld [vmem:[#allocation7 + $0x7e0] sm:$0xff] }
 0x146   : > { %1314 = vmatprep.subr.bf16.mxu1 %v7545_v10  ;;  %v7568_v3 = vld [vmem:[%s10210_s1 + $0x1c8] ss:$16 sps:$4 sm:$0xff]   ;;  %v7569_v10 = vld [vmem:[%s10210_s1 + $0x1ec] ss:$16 sps:$4 sm:$0xff]  }
 0x147   : > { %3055 = vmatpush1.bf16.msra.mxu0 %v6526_v5  ;;  %v1646_v5 = vld [vmem:[#allocation7 + $0x640] sm:$0xff] }
 0x148   : > { %3097 = vmatprep.subr.bf16.mxu0 %v6535_v7  ;;  %v1650_v7 = vld [vmem:[#allocation7 + $0x660] sm:$0xff] }
 0x14a   : > { %3057 = vmatmul.mubr.bf16.vlgmr.msra.gmra.mrb[16].mxu0 %v8484_v40 }
 0x14b   : > { %3098 = vmatpush1.bf16.msra.mxu0 %v6534_v13  ;;  %3066 = vmatprep.mubr.bf16.mxu0 %v8489_v42  ;;  %v7547_v13 = vld [vmem:[%s10210_s1 + $0xe8] ss:$16 sps:$4 sm:$0xff]  }
 0x14c   : > { %3099 = vmatprep.subr.bf16.mxu0 %v6543_v14  ;;  %v6607_v14 = vcombine.high %v1646_v5, %v1650_v7  ;;  %1315 = vmatpush1.bf16.msra.mxu1 %v7547_v13  ;;  %v7571_v13 = vld [vmem:[%s10210_s1 + $0x1e8] ss:$16 sps:$4 sm:$0xff]  }
 0x14d   : > { %1316 = vmatprep.subr.bf16.mxu1 %v7548_v18  ;;  %v7572_v18 = vld [vmem:[%s10210_s1 + $0x208] ss:$16 sps:$4 sm:$0xff]  }
 0x14f   : > { %3100 = vmatpush1.bf16.msra.mxu0 %v6542_v19  ;;  %v6606_v19 = vcombine.low %v1646_v5, %v1650_v7  ;;  %v1456_v5 = vld [vmem:[#allocation7 + $0x50] sm:$0xff] }
 0x150   : > { %3101 = vmatprep.subr.bf16.mxu0 %v6551_v21  ;;  %v6615_v21 = vcombine.high %v1654_v16, %v1658_v17  ;;  %1317 = vmatpush1.bf16.msra.mxu1 %v7550_v20  ;;  %v1460_v7 = vld [vmem:[#allocation7 + $0x70] sm:$0xff] }
 0x151   : > { %1318 = vmatprep.subr.bf16.mxu1 %v7551_v25  ;;  %v6418_v20 = vcombine.low %v1456_v5, %v1460_v7  ;;  %v1476_v25 = vld [vmem:[#allocation7 + $0xf0] sm:$0xff] }
 0x152   : > { %3067 = vmatmul.mubr.bf16.gmra.mrb[20].mxu0 %v8506_v50 }
 0x153   : > { %3102 = vmatpush1.bf16.msra.mxu0 %v6550_v26  ;;  %3076 = vmatprep.mubr.bf16.mxu0 %v8514_v53  ;;  %v6614_v26 = vcombine.low %v1654_v16, %v1658_v17  ;;  %v1464_v16 = vld [vmem:[#allocation7 + $0x90] sm:$0xff] }
 0x154   : > { %3103 = vmatprep.subr.bf16.mxu0 %v6559_v28  ;;  %v6623_v28 = vcombine.high %v1662_v23, %v1666_v24  ;;  %1319 = vmatpush1.bf16.msra.mxu1 %v7553_v27  ;;  %v1468_v17 = vld [vmem:[#allocation7 + $0xb0] sm:$0xff] }
 0x155   : > { %1320 = vmatprep.subr.bf16.mxu1 %v7554_v31  ;;  %v6426_v27 = vcombine.low %v1464_v16, %v1468_v17  ;;  %v7578_v31 = vld [vmem:[%s10210_s1 + $0x248] ss:$16 sps:$4 sm:$0xff]  }
 0x157   : > { %3104 = vmatpush1.bf16.msra.mxu0 %v6558_v32  ;;  %v6622_v32 = vcombine.low %v1662_v23, %v1666_v24  ;;  %v6427_v23 = vcombine.high %v1464_v16, %v1468_v17  ;;  %v1472_v24 = vld [vmem:[#allocation7 + $0xd0] sm:$0xff] }
 0x158   : > { %3105 = vmatprep.subr.bf16.mxu0 %v6567_v34  ;;  %v6631_v34 = vcombine.high %v1670_v29, %v1674_v30  ;;  %1321 = vmatpush1.bf16.msra.mxu1 %v7556_v33  ;;  %v6434_v33 = vcombine.low %v1472_v24, %v1476_v25  ;;  %v1528_v17 = vld [vmem:[#allocation7 + $0x290] sm:$0xff] }
 0x159   : > { %1322 = vmatprep.subr.bf16.mxu1 %v7557_v38  ;;  %v1492_v38 = vld [vmem:[#allocation7 + $0x170] sm:$0xff] }
 0x15a   : > { %3077 = vmatmul.mubr.bf16.gmra.mrb[24].mxu0 %v8528_v60 }
 0x15b   : > { %3106 = vmatpush1.bf16.msra.mxu0 %v6566_v41  ;;  %3086 = vmatprep.mubr.bf16.mxu0 %v8536_v63  ;;  %v6630_v41 = vcombine.low %v1670_v29, %v1674_v30  ;;  %v1480_v29 = vld [vmem:[#allocation7 + $0x110] sm:$0xff] }
 0x15c   : > { %3107 = vmatprep.subr.bf16.mxu0 %v6575_v44  ;;  %v6639_v44 = vcombine.high %v1678_v35, %v1682_v36  ;;  %1323 = vmatpush1.bf16.msra.mxu1 %v7559_v43  ;;  %v1484_v30 = vld [vmem:[#allocation7 + $0x130] sm:$0xff] }
 0x15d   : > { %1324 = vmatprep.subr.bf16.mxu1 %v7560_v47  ;;  %v6442_v43 = vcombine.low %v1480_v29, %v1484_v30  ;;  %v7584_v47 = vld [vmem:[%s10210_s1 + $0x288] ss:$16 sps:$4 sm:$0xff]  }
 0x15f   : > { %3108 = vmatpush1.bf16.msra.mxu0 %v6574_v48  ;;  %v6638_v48 = vcombine.low %v1678_v35, %v1682_v36  ;;  %v6443_v35 = vcombine.high %v1480_v29, %v1484_v30  ;;  %v1488_v36 = vld [vmem:[#allocation7 + $0x150] sm:$0xff] }
 0x160   : > { %3109 = vmatprep.subr.bf16.mxu0 %v6583_v51  ;;  %v6647_v51 = vcombine.high %v1686_v45, %v1690_v46  ;;  %1325 = vmatpush1.bf16.msra.mxu1 %v7562_v49  ;;  %v6450_v49 = vcombine.low %v1488_v36, %v1492_v38  ;;  %v1544_v30 = vld [vmem:[#allocation7 + $0x310] sm:$0xff] }
 0x161   : > { %1326 = vmatprep.subr.bf16.mxu1 %v7563_v56  ;;  %v1508_v56 = vld [vmem:[#allocation7 + $0x1f0] sm:$0xff] }
 0x162   : > { %3087 = vmatmul.mubr.bf16.gmra.mrb[28].mxu0 %v8550_v6 }
 0x163   : > { %3110 = vmatpush1.bf16.msra.mxu0 %v6582_v58  ;;  %3129 = vmatprep.mubr.bf16.mxu0 %v8558_v9  ;;  %v6646_v58 = vcombine.low %v1686_v45, %v1690_v46  ;;  %v1496_v45 = vld [vmem:[#allocation7 + $0x190] sm:$0xff] }
 0x164   : > { %3111 = vmatprep.subr.bf16.mxu0 %v6591_v61  ;;  %v6655_v61 = vcombine.high %v1694_v52, %v1698_v54  ;;  %1327 = vmatpush1.bf16.msra.mxu1 %v7565_v59  ;;  %v1500_v46 = vld [vmem:[#allocation7 + $0x1b0] sm:$0xff] }
 0x165   : > { %1328 = vmatprep.subr.bf16.mxu1 %v7566_v1  ;;  %v6458_v59 = vcombine.low %v1496_v45, %v1500_v46  ;;  %v7592_v1 = vld [vmem:[%s10210_s1 + $0x2cc] ss:$16 sps:$4 sm:$0xff]  }
 0x167   : > { %3112 = vmatpush1.bf16.msra.mxu0 %v6590_v2  ;;  %v6654_v2 = vcombine.low %v1694_v52, %v1698_v54  ;;  %v6459_v52 = vcombine.high %v1496_v45, %v1500_v46  ;;  %v1504_v54 = vld [vmem:[#allocation7 + $0x1d0] sm:$0xff] }
 0x168   : > { %3113 = vmatprep.subr.bf16.mxu0 %v6599_v4  ;;  %v6411_v4 = vcombine.high %v1448_v62, %v1452_v0  ;;  %1329 = vmatpush1.bf16.msra.mxu1 %v7568_v3  ;;  %v7590_v3 = vld [vmem:[%s10210_s1 + $0x2c8] ss:$16 sps:$4 sm:$0xff]  }
 0x169   : > { %1330 = vmatprep.subr.bf16.mxu1 %v7569_v10  ;;  %v1524_v10 = vld [vmem:[#allocation7 + $0x270] sm:$0xff] }
 0x16a   : > { %v1560_v46 = vld [vmem:[#allocation7 + $0x390] sm:$0xff] }
 0x16b   : > { %3114 = vmatpush1.bf16.msra.mxu0 %v6598_v12  ;;  %v6410_v12 = vcombine.low %v1448_v62, %v1452_v0  ;;  %v1512_v62 = vld [vmem:[#allocation7 + $0x210] sm:$0xff] }
 0x16c   : > { %3115 = vmatprep.subr.bf16.mxu0 %v6607_v14  ;;  %v6419_v14 = vcombine.high %v1456_v5, %v1460_v7  ;;  %1331 = vmatpush1.bf16.msra.mxu1 %v7571_v13  ;;  %v1516_v0 = vld [vmem:[#allocation7 + $0x230] sm:$0xff] }
 0x16d   : > { %v6475_v5 = vcombine.high %v1512_v62, %v1516_v0  ;;  %v1520_v7 = vld [vmem:[#allocation7 + $0x250] sm:$0xff]  ;;  %v6474_v13 = vcombine.low %v1512_v62, %v1516_v0 }
 0x16e   : > { %v6483_v16 = vcombine.high %v1520_v7, %v1524_v10  ;;  %v1576_v0 = vld [vmem:[#allocation7 + $0x410] sm:$0xff] }
 0x16f   : > { %3116 = vmatpush1.bf16.msra.mxu0 %v6606_v19  ;;  %v7574_v19 = vld [vmem:[%s10210_s1 + $0x20c] ss:$16 sps:$4 sm:$0xff]   ;;  %1333 = vmatmul.mubr.bf16.vlgmr.msra.gmra.mrb[0].mxu1 %v8484_v40 }
 0x170   : > { %3117 = vmatprep.subr.bf16.mxu0 %v6615_v21  ;;  %v7577_v21 = vld [vmem:[%s10210_s1 + $0x22c] ss:$16 sps:$4 sm:$0xff]   ;;  %1373 = vmatprep.subr.bf16.mxu1 %v7574_v19  ;;  %v7596_v19 = vld [vmem:[%s10210_s1 + $0x308] ss:$16 sps:$4 sm:$0xff]  }
 0x171   : > { %1374 = vmatpush1.bf16.msra.mxu1 %v7572_v18  ;;  %1342 = vmatprep.mubr.bf16.mxu1 %v8489_v42  ;;  %v1532_v18 = vld [vmem:[#allocation7 + $0x2b0] sm:$0xff] }
 0x172   : > { %1375 = vmatprep.subr.bf16.mxu1 %v7577_v21  ;;  %v7601_v21 = vld [vmem:[%s10210_s1 + $0x32c] ss:$16 sps:$4 sm:$0xff]  }
 0x173   : > { %3118 = vmatpush1.bf16.msra.mxu0 %v6614_v26  ;;  %v7575_v26 = vld [vmem:[%s10210_s1 + $0x228] ss:$16 sps:$4 sm:$0xff]  }
 0x174   : > { %3119 = vmatprep.subr.bf16.mxu0 %v6623_v28  ;;  %v6435_v28 = vcombine.high %v1472_v24, %v1476_v25  ;;  %v1536_v24 = vld [vmem:[#allocation7 + $0x2d0] sm:$0xff] }
 0x175   : > { %1376 = vmatpush1.bf16.msra.mxu1 %v7575_v26  ;;  %v1540_v25 = vld [vmem:[#allocation7 + $0x2f0] sm:$0xff] }
 0x176   : > { %v7599_v26 = vld [vmem:[%s10210_s1 + $0x328] ss:$16 sps:$4 sm:$0xff]   ;;  %v6499_v29 = vcombine.high %v1536_v24, %v1540_v25 }
 0x177   : > { %3120 = vmatpush1.bf16.msra.mxu0 %v6622_v32  ;;  %v7580_v32 = vld [vmem:[%s10210_s1 + $0x24c] ss:$16 sps:$4 sm:$0xff]   ;;  %1343 = vmatmul.mubr.bf16.gmra.mrb[4].mxu1 %v8506_v50 }
 0x178   : > { %3121 = vmatprep.subr.bf16.mxu0 %v6631_v34  ;;  %v7583_v34 = vld [vmem:[%s10210_s1 + $0x26c] ss:$16 sps:$4 sm:$0xff]   ;;  %1377 = vmatprep.subr.bf16.mxu1 %v7580_v32  ;;  %v7602_v32 = vld [vmem:[%s10210_s1 + $0x348] ss:$16 sps:$4 sm:$0xff]  }
 0x179   : > { %1378 = vmatpush1.bf16.msra.mxu1 %v7578_v31  ;;  %1352 = vmatprep.mubr.bf16.mxu1 %v8514_v53  ;;  %v1548_v31 = vld [vmem:[#allocation7 + $0x330] sm:$0xff] }
 0x17a   : > { %1379 = vmatprep.subr.bf16.mxu1 %v7583_v34  ;;  %v7607_v34 = vld [vmem:[%s10210_s1 + $0x36c] ss:$16 sps:$4 sm:$0xff]  }
 0x17b   : > { %3122 = vmatpush1.bf16.msra.mxu0 %v6630_v41  ;;  %v7581_v41 = vld [vmem:[%s10210_s1 + $0x268] ss:$16 sps:$4 sm:$0xff]  }
 0x17c   : > { %3123 = vmatprep.subr.bf16.mxu0 %v6639_v44  ;;  %v6451_v44 = vcombine.high %v1488_v36, %v1492_v38  ;;  %v1552_v36 = vld [vmem:[#allocation7 + $0x350] sm:$0xff] }
 0x17d   : > { %1380 = vmatpush1.bf16.msra.mxu1 %v7581_v41  ;;  %v1556_v38 = vld [vmem:[#allocation7 + $0x370] sm:$0xff] }
 0x17e   : > { %v7605_v41 = vld [vmem:[%s10210_s1 + $0x368] ss:$16 sps:$4 sm:$0xff]   ;;  %v6515_v45 = vcombine.high %v1552_v36, %v1556_v38 }
 0x17f   : > { %3124 = vmatpush1.bf16.msra.mxu0 %v6638_v48  ;;  %v7586_v48 = vld [vmem:[%s10210_s1 + $0x28c] ss:$16 sps:$4 sm:$0xff]   ;;  %1353 = vmatmul.mubr.bf16.gmra.mrb[8].mxu1 %v8528_v60 }
 0x180   : > { %3125 = vmatprep.subr.bf16.mxu0 %v6647_v51  ;;  %v7589_v51 = vld [vmem:[%s10210_s1 + $0x2ac] ss:$16 sps:$4 sm:$0xff]   ;;  %1381 = vmatprep.subr.bf16.mxu1 %v7586_v48  ;;  %v7608_v48 = vld [vmem:[%s10210_s1 + $0x388] ss:$16 sps:$4 sm:$0xff]  }
 0x181   : > { %1382 = vmatpush1.bf16.msra.mxu1 %v7584_v47  ;;  %1362 = vmatprep.mubr.bf16.mxu1 %v8536_v63  ;;  %v1564_v47 = vld [vmem:[#allocation7 + $0x3b0] sm:$0xff] }
 0x182   : > { %1383 = vmatprep.subr.bf16.mxu1 %v7589_v51  ;;  %v7613_v51 = vld [vmem:[%s10210_s1 + $0x3ac] ss:$16 sps:$4 sm:$0xff]  }
 0x183   : > { %3126 = vmatpush1.bf16.msra.mxu0 %v6646_v58  ;;  %v7587_v58 = vld [vmem:[%s10210_s1 + $0x2a8] ss:$16 sps:$4 sm:$0xff]  }
 0x184   : > { %3127 = vmatprep.subr.bf16.mxu0 %v6655_v61  ;;  %v6467_v61 = vcombine.high %v1504_v54, %v1508_v56 }
 0x185   : > { %1384 = vmatpush1.bf16.msra.mxu1 %v7587_v58  ;;  %v7611_v58 = vld [vmem:[%s10210_s1 + $0x3a8] ss:$16 sps:$4 sm:$0xff]  }
 0x186   : > { %1385 = vmatprep.subr.bf16.mxu1 %v7592_v1  ;;  %v1580_v1 = vld [vmem:[#allocation7 + $0x430] sm:$0xff] }
 0x187   : > { %3128 = vmatpush1.bf16.msra.mxu0 %v6654_v2  ;;  %v6466_v2 = vcombine.low %v1504_v54, %v1508_v56  ;;  %1363 = vmatmul.mubr.bf16.gmra.mrb[12].mxu1 %v8550_v6  ;;  %v1568_v54 = vld [vmem:[#allocation7 + $0x3d0] sm:$0xff] }
 0x188   : > { %3316 = vmatprep.subr.bf16.mxu0 %v6411_v4  ;;  %v7595_v4 = vld [vmem:[%s10210_s1 + $0x2ec] ss:$16 sps:$4 sm:$0xff]   ;;  %1405 = vmatprep.mubr.bf16.mxu1 %v8558_v9  ;;  %v1572_v56 = vld [vmem:[#allocation7 + $0x3f0] sm:$0xff] }
 0x189   : > { %1386 = vmatpush1.bf16.msra.mxu1 %v7590_v3  ;;  %v6531_v62 = vcombine.high %v1568_v54, %v1572_v56  ;;  %v6530_v3 = vcombine.low %v1568_v54, %v1572_v56  ;;  %v1479_v54 = vld [vmem:[#allocation7 + $0x108] sm:$0xff] }
 0x18a   : > { %3130 = vmatmul.mubr.bf16.vlgmr.msra.gmra.mrb[16].mxu0 %v8617_v37  ;;  %1387 = vmatprep.subr.bf16.mxu1 %v7595_v4  ;;  %v7619_v4 = vld [vmem:[%s10210_s1 + $0x3ec] ss:$16 sps:$4 sm:$0xff]  }
 0x18b   : > { %3317 = vmatpush1.bf16.msra.mxu0 %v6410_v12  ;;  %3139 = vmatprep.mubr.bf16.mxu0 %v8619_v39  ;;  %v7593_v12 = vld [vmem:[%s10210_s1 + $0x2e8] ss:$16 sps:$4 sm:$0xff]   ;;  %v1483_v56 = vld [vmem:[#allocation7 + $0x128] sm:$0xff] }
 0x18c   : > { %3318 = vmatprep.subr.bf16.mxu0 %v6419_v14  ;;  %v7598_v14 = vld [vmem:[%s10210_s1 + $0x30c] ss:$16 sps:$4 sm:$0xff]  }
 0x18d   : > { %1388 = vmatpush1.bf16.msra.mxu1 %v7593_v12  ;;  %v1447_v12 = vld [vmem:[#allocation7 + $0x8] sm:$0xff] }
 0x18e   : > { %1389 = vmatprep.subr.bf16.mxu1 %v7598_v14  ;;  %v7617_v14 = vld [vmem:[%s10210_s1 + $0x3e8] ss:$16 sps:$4 sm:$0xff]  }
 0x18f   : > { %3319 = vmatpush1.bf16.msra.mxu0 %v6418_v20  ;;  %v6482_v20 = vcombine.low %v1520_v7, %v1524_v10  ;;  %v1584_v7 = vld [vmem:[#allocation7 + $0x450] sm:$0xff] }
 0x190   : > { %3320 = vmatprep.subr.bf16.mxu0 %v6427_v23  ;;  %v6491_v23 = vcombine.high %v1528_v17, %v1532_v18  ;;  %v1588_v10 = vld [vmem:[#allocation7 + $0x470] sm:$0xff] }
 0x191   : > { %1390 = vmatpush1.bf16.msra.mxu1 %v7596_v19  ;;  %v1455_v19 = vld [vmem:[#allocation7 + $0x48] sm:$0xff] }
 0x192   : > { %3140 = vmatmul.mubr.bf16.gmra.mrb[20].mxu0 %v8627_v55  ;;  %1391 = vmatprep.subr.bf16.mxu1 %v7601_v21  ;;  %v1592_v21 = vld [vmem:[#allocation7 + $0x490] sm:$0xff] }
 0x193   : > { %3321 = vmatpush1.bf16.msra.mxu0 %v6426_v27  ;;  %3149 = vmatprep.mubr.bf16.mxu0 %v8629_v57  ;;  %v6490_v27 = vcombine.low %v1528_v17, %v1532_v18  ;;  %v6547_v17 = vcombine.high %v1584_v7, %v1588_v10 }
 0x194   : > { %3322 = vmatprep.subr.bf16.mxu0 %v6435_v28  ;;  %v7604_v28 = vld [vmem:[%s10210_s1 + $0x34c] ss:$16 sps:$4 sm:$0xff]  }
 0x195   : > { %1392 = vmatpush1.bf16.msra.mxu1 %v7599_v26 }
 0x196   : > { %1393 = vmatprep.subr.bf16.mxu1 %v7604_v28  ;;  %v1600_v28 = vld [vmem:[#allocation7 + $0x4d0] sm:$0xff] }
 0x197   : > { %3323 = vmatpush1.bf16.msra.mxu0 %v6434_v33  ;;  %v6498_v33 = vcombine.low %v1536_v24, %v1540_v25  ;;  %v6546_v25 = vcombine.low %v1584_v7, %v1588_v10 }
 0x198   : > { %3324 = vmatprep.subr.bf16.mxu0 %v6443_v35  ;;  %v6507_v35 = vcombine.high %v1544_v30, %v1548_v31 }
 0x199   : > { %1394 = vmatpush1.bf16.msra.mxu1 %v7602_v32 }
 0x19a   : > { %3150 = vmatmul.mubr.bf16.gmra.mrb[24].mxu0 %v8637_v8  ;;  %1395 = vmatprep.subr.bf16.mxu1 %v7607_v34 }
 0x19b   : > { %3325 = vmatpush1.bf16.msra.mxu0 %v6442_v43  ;;  %3159 = vmatprep.mubr.bf16.mxu0 %v8639_v11  ;;  %v6506_v43 = vcombine.low %v1544_v30, %v1548_v31  ;;  %v1463_v30 = vld [vmem:[#allocation7 + $0x88] sm:$0xff] }
 0x19c   : > { %3326 = vmatprep.subr.bf16.mxu0 %v6451_v44  ;;  %v7610_v44 = vld [vmem:[%s10210_s1 + $0x38c] ss:$16 sps:$4 sm:$0xff]  }
 0x19d   : > { %1396 = vmatpush1.bf16.msra.mxu1 %v7605_v41  ;;  %v1467_v31 = vld [vmem:[#allocation7 + $0xa8] sm:$0xff] }
 0x19e   : > { %1397 = vmatprep.subr.bf16.mxu1 %v7610_v44  ;;  %v1475_v41 = vld [vmem:[#allocation7 + $0xe8] sm:$0xff]  ;;  %v1612_v44 = vld [vmem:[#allocation7 + $0x530] sm:$0xff] }
 0x19f   : > { %3327 = vmatpush1.bf16.msra.mxu0 %v6450_v49  ;;  %v6514_v49 = vcombine.low %v1552_v36, %v1556_v38  ;;  %v6425_v36 = vcombine.high %v1463_v30, %v1467_v31  ;;  %v1471_v38 = vld [vmem:[#allocation7 + $0xc8] sm:$0xff] }
 0x1a0   : > { %3328 = vmatprep.subr.bf16.mxu0 %v6459_v52  ;;  %v6523_v52 = vcombine.high %v1560_v46, %v1564_v47 }
 0x1a1   : > { %1398 = vmatpush1.bf16.msra.mxu1 %v7608_v48 }
 0x1a2   : > { %3160 = vmatmul.mubr.bf16.gmra.mrb[28].mxu0 %v8645_v22  ;;  %1399 = vmatprep.subr.bf16.mxu1 %v7613_v51  ;;  %v1616_v51 = vld [vmem:[#allocation7 + $0x550] sm:$0xff] }
 0x1a3   : > { %3329 = vmatpush1.bf16.msra.mxu0 %v6458_v59  ;;  %3348 = vmatprep.mubr.bf16.mxu0 %v8416_v15  ;;  %v6522_v59 = vcombine.low %v1560_v46, %v1564_v47  ;;  %v6433_v47 = vcombine.high %v1471_v38, %v1475_v41 }
 0x1a4   : > { %3330 = vmatprep.subr.bf16.mxu0 %v6467_v61  ;;  %v7616_v61 = vld [vmem:[%s10210_s1 + $0x3cc] ss:$16 sps:$4 sm:$0xff]  }
 0x1a5   : > { %1400 = vmatpush1.bf16.msra.mxu1 %v7611_v58  ;;  %v6432_v58 = vcombine.low %v1471_v38, %v1475_v41 }
 0x1a6   : > { %1401 = vmatprep.subr.bf16.mxu1 %v7616_v61 }
 0x1a7   : > { %3331 = vmatpush1.bf16.msra.mxu0 %v6466_v2  ;;  %v7614_v2 = vld [vmem:[%s10210_s1 + $0x3c8] ss:$16 sps:$4 sm:$0xff]  }
 0x1a8   : > { %3332 = vmatprep.subr.bf16.mxu0 %v6475_v5  ;;  %v6539_v5 = vcombine.high %v1576_v0, %v1580_v1 }
 0x1a9   : > { %1402 = vmatpush1.bf16.msra.mxu1 %v7614_v2 }
 0x1aa   : > { %1403 = vmatprep.subr.bf16.mxu1 %v7619_v4  ;;  %v1628_v4 = vld [vmem:[#allocation7 + $0x5b0] sm:$0xff] }
 0x1ab   : > { %3333 = vmatpush1.bf16.msra.mxu0 %v6474_v13  ;;  %v1451_v13 = vld [vmem:[#allocation7 + $0x28] sm:$0xff] }
 0x1ac   : > { %3334 = vmatprep.subr.bf16.mxu0 %v6483_v16  ;;  %v6538_v16 = vcombine.low %v1576_v0, %v1580_v1  ;;  %v6409_v18 = vcombine.high %v1447_v12, %v1451_v13  ;;  %v6408_v24 = vcombine.low %v1447_v12, %v1451_v13  ;;  %v6441_v0 = vcombine.high %v1479_v54, %v1483_v56  ;;  %v492_v1 = vld [vmem:[#allocation5] sm:$0xf]  ;;  %v1632_v13 = vld [vmem:[#allocation7 + $0x5d0] sm:$0xff] }
 0x1ad   : > { %1404 = vmatpush1.bf16.msra.mxu1 %v7617_v14 }
 0x1ae   : > { %3170 = vmatprep.subr.bf16.mxu1 %v6409_v18  ;;  %v1487_v18 = vld [vmem:[#allocation7 + $0x148] sm:$0xff] }
 0x1af   : > { %3335 = vmatpush1.bf16.msra.mxu0 %v6482_v20  ;;  %v1459_v20 = vld [vmem:[#allocation7 + $0x68] sm:$0xff] }
 0x1b0   : > { %3336 = vmatprep.subr.bf16.mxu0 %v6491_v23  ;;  %v1596_v23 = vld [vmem:[#allocation7 + $0x4b0] sm:$0xff]  ;;  %v6417_v26 = vcombine.high %v1455_v19, %v1459_v20  ;;  %1406 = vmatmul.mubr.bf16.vlgmr.msra.gmra.mrb[0].mxu1 %v8617_v37  ;;  %v6416_v32 = vcombine.low %v1455_v19, %v1459_v20  ;;  %v1491_v19 = vld [vmem:[#allocation7 + $0x168] sm:$0xff] }
 0x1b1   : > { %3171 = vmatpush1.bf16.msra.mxu1 %v6408_v24  ;;  %1415 = vmatprep.mubr.bf16.mxu1 %v8619_v39 }
 0x1b2   : > { %3172 = vmatprep.subr.bf16.mxu1 %v6417_v26 }
 0x1b3   : > { %3337 = vmatpush1.bf16.msra.mxu0 %v6490_v27  ;;  %v6555_v27 = vcombine.high %v1592_v21, %v1596_v23 }
 0x1b4   : > { %3338 = vmatprep.subr.bf16.mxu0 %v6499_v29  ;;  %v1604_v29 = vld [vmem:[#allocation7 + $0x4f0] sm:$0xff] }
 0x1b5   : > { %v6563_v34 = vcombine.high %v1600_v28, %v1604_v29  ;;  %3173 = vmatpush1.bf16.msra.mxu1 %v6416_v32  ;;  %v6562_v46 = vcombine.low %v1600_v28, %v1604_v29 }
 0x1b6   : > { %3174 = vmatprep.subr.bf16.mxu1 %v6425_v36 }
 0x1b7   : > { %3339 = vmatpush1.bf16.msra.mxu0 %v6498_v33  ;;  %v6554_v33 = vcombine.low %v1592_v21, %v1596_v23  ;;  %v6449_v21 = vcombine.high %v1487_v18, %v1491_v19 }
 0x1b8   : > { %3340 = vmatprep.subr.bf16.mxu0 %v6507_v35  ;;  %v494_v35 = vlaneseq  ;;  %1416 = vmatmul.mubr.bf16.gmra.mrb[4].mxu1 %v8627_v55 }
 0x1b9   : > { %1425 = vmatprep.mubr.bf16.mxu1 %v8629_v57 }
 0x1bb   : > { %3341 = vmatpush1.bf16.msra.mxu0 %v6506_v43  ;;  %v1608_v43 = vld [vmem:[#allocation7 + $0x510] sm:$0xff] }
 0x1bc   : > { %3342 = vmatprep.subr.bf16.mxu0 %v6515_v45  ;;  %v6424_v45 = vcombine.low %v1463_v30, %v1467_v31  ;;  %v6571_v48 = vcombine.high %v1608_v43, %v1612_v44  ;;  %v1640_v30 = vld [vmem:[#allocation7 + $0x610] sm:$0xff] }
 0x1be   : > { %3175 = vmatpush1.bf16.msra.mxu1 %v6424_v45 }
 0x1bf   : > { %3343 = vmatpush1.bf16.msra.mxu0 %v6514_v49  ;;  %v8871_v49 = vshrl.u32 %v494_v35, 7  ;;  %3176 = vmatprep.subr.bf16.mxu1 %v6433_v47  ;;  %v1499_v35 = vld [vmem:[#allocation7 + $0x1a8] sm:$0xff] }
 0x1c0   : > { %3344 = vmatprep.subr.bf16.mxu0 %v6523_v52  ;;  %v1620_v52 = vld [vmem:[#allocation7 + $0x570] sm:$0xff]  ;;  %1426 = vmatmul.mubr.bf16.gmra.mrb[8].mxu1 %v8637_v8 }
 0x1c1   : > { %v496_v61 = vsub.s32 0, %v8871_v49  ;;  %v500_v2 = vsub.s32 1, %v8871_v49  ;;  %v6578_v7 = vcombine.low %v1616_v51, %v1620_v52  ;;  %1435 = vmatprep.mubr.bf16.mxu1 %v8639_v11 }
 0x1c2   : > { %3177 = vmatpush1.bf16.msra.mxu1 %v6432_v58 }
 0x1c3   : > { %3345 = vmatpush1.bf16.msra.mxu0 %v6522_v59  ;;  %v6570_v59 = vcombine.low %v1608_v43, %v1612_v44  ;;  %v8881_v10 = vrot.slane %v492_v1, %v496_v61  ;;  %3178 = vmatprep.subr.bf16.mxu1 %v6441_v0 }
 0x1c4   : > { %3346 = vmatprep.subr.bf16.mxu0 %v6531_v62  ;;  %v6579_v62 = vcombine.high %v1616_v51, %v1620_v52  ;;  %v1503_v51 = vld [vmem:[#allocation7 + $0x1c8] sm:$0xff] }
 0x1c5   : > { %v1507_v52 = vld [vmem:[#allocation7 + $0x1e8] sm:$0xff] }
 0x1c6   : > { %v6465_v58 = vcombine.high %v1503_v51, %v1507_v52  ;;  %v6464_v0 = vcombine.low %v1503_v51, %v1507_v52  ;;  %v1527_v51 = vld [vmem:[#allocation7 + $0x288] sm:$0xff] }
 0x1c7   : > { %3347 = vmatpush1.bf16.msra.mxu0 %v6530_v3  ;;  %v1624_v3 = vld [vmem:[#allocation7 + $0x590] sm:$0xff]  ;;  %v1531_v52 = vld [vmem:[#allocation7 + $0x2a8] sm:$0xff] }
 0x1c8   : > { %3389 = vmatprep.subr.bf16.mxu0 %v6539_v5  ;;  %v6440_v5 = vcombine.low %v1479_v54, %v1483_v56  ;;  %v6587_v12 = vcombine.high %v1624_v3, %v1628_v4  ;;  %v6586_v24 = vcombine.low %v1624_v3, %v1628_v4  ;;  %1436 = vmatmul.mubr.bf16.gmra.mrb[12].mxu1 %v8645_v22 }
 0x1c9   : > { %3202 = vmatprep.mubr.bf16.mxu1 %v8416_v15 }
 0x1ca   : > { %3349 = vmatmul.mubr.bf16.vlgmr.msra.gmra.mrb[32].mxu0 %v8484_v40  ;;  %3179 = vmatpush1.bf16.msra.mxu1 %v6440_v5  ;;  %v1656_v5 = vld [vmem:[#allocation7 + $0x690] sm:$0xff] }
 0x1cb   : > { %3390 = vmatpush1.bf16.msra.mxu0 %v6538_v16  ;;  %3358 = vmatprep.mubr.bf16.mxu0 %v8489_v42  ;;  %v8885_v16 = vrot.slane %v492_v1, %v500_v2 }
 0x1cc   : > { %3391 = vmatprep.subr.bf16.mxu0 %v6547_v17  ;;  %v1636_v17 = vld [vmem:[#allocation7 + $0x5f0] sm:$0xff]  ;;  %3180 = vmatprep.subr.bf16.mxu1 %v6449_v21 }
 0x1cd   : > { %v6595_v29 = vcombine.high %v1632_v13, %v1636_v17  ;;  %v6594_v43 = vcombine.low %v1632_v13, %v1636_v17  ;;  %v1660_v13 = vld [vmem:[#allocation7 + $0x6b0] sm:$0xff]  ;;  %v1515_v17 = vld [vmem:[#allocation7 + $0x228] sm:$0xff] }
 0x1cf   : > { %3392 = vmatpush1.bf16.msra.mxu0 %v6546_v25  ;;  %v6448_v25 = vcombine.low %v1487_v18, %v1491_v19 }
 0x1d0   : > { %3393 = vmatprep.subr.bf16.mxu0 %v6555_v27 }
 0x1d1   : > { %3181 = vmatpush1.bf16.msra.mxu1 %v6448_v25  ;;  %v1664_v25 = vld [vmem:[#allocation7 + $0x6d0] sm:$0xff] }
 0x1d2   : > { %3359 = vmatmul.mubr.bf16.gmra.mrb[36].mxu0 %v8506_v50 }
 0x1d3   : > { %3394 = vmatpush1.bf16.msra.mxu0 %v6554_v33  ;;  %3368 = vmatprep.mubr.bf16.mxu0 %v8514_v53  ;;  %v1644_v33 = vld [vmem:[#allocation7 + $0x630] sm:$0xff] }
 0x1d4   : > { %3395 = vmatprep.subr.bf16.mxu0 %v6563_v34  ;;  %v1495_v34 = vld [vmem:[#allocation7 + $0x188] sm:$0xff]  ;;  %v6603_v45 = vcombine.high %v1640_v30, %v1644_v33 }
 0x1d5   : > { %v6457_v38 = vcombine.high %v1495_v34, %v1499_v35  ;;  %v6456_v44 = vcombine.low %v1495_v34, %v1499_v35  ;;  %v6618_v34 = vcombine.low %v1656_v5, %v1660_v13 }
 0x1d7   : > { %3396 = vmatpush1.bf16.msra.mxu0 %v6562_v46  ;;  %v1648_v46 = vld [vmem:[#allocation7 + $0x650] sm:$0xff]  ;;  %3182 = vmatprep.subr.bf16.mxu1 %v6457_v38 }
 0x1d8   : > { %3397 = vmatprep.subr.bf16.mxu0 %v6571_v48  ;;  %v1652_v48 = vld [vmem:[#allocation7 + $0x670] sm:$0xff]  ;;  %3183 = vmatpush1.bf16.msra.mxu1 %v6456_v44 }
 0x1d9   : > { %v6611_v4 = vcombine.high %v1648_v46, %v1652_v48  ;;  %3184 = vmatprep.subr.bf16.mxu1 %v6465_v58  ;;  %v6610_v21 = vcombine.low %v1648_v46, %v1652_v48  ;;  %v1676_v48 = vld [vmem:[#allocation7 + $0x730] sm:$0xff] }
 0x1da   : > { %3369 = vmatmul.mubr.bf16.gmra.mrb[40].mxu0 %v8528_v60 }
 0x1db   : > { %3398 = vmatpush1.bf16.msra.mxu0 %v6570_v59  ;;  %3378 = vmatprep.mubr.bf16.mxu0 %v8536_v63 }
 0x1dc   : > { %3399 = vmatprep.subr.bf16.mxu0 %v6579_v62  ;;  %v6602_v62 = vcombine.low %v1640_v30, %v1644_v33  ;;  %3185 = vmatpush1.bf16.msra.mxu1 %v6464_v0 }
 0x1dd   : > { %v1261_v14 = vpop.f32.mrb[0].mxu0 }
 0x1de   : > { %v1263_v20 = vpop.f32.mrb[1].mxu0  ;;  %v7120_v26 = vadd.f32 %v1261_v14, %v8881_v10  ;;  %v1511_v14 = vld [vmem:[#allocation7 + $0x208] sm:$0xff] }
 0x1df   : > { %v1265_v23 = vpop.f32.mrb[2].mxu0  ;;  %3400 = vmatpush1.bf16.msra.mxu0 %v6578_v7  ;;  %v7121_v31 = vadd.f32 %v1263_v20, %v8885_v16  ;;  %v6473_v19 = vcombine.high %v1511_v14, %v1515_v17 }
 0x1e0   : > { %v7122_v27 = vadd.f32 %v1265_v23, %v8881_v10  ;;  %v1267_v28 = vpop.f32.mrb[3].mxu0  ;;  %3401 = vmatprep.subr.bf16.mxu0 %v6587_v12  ;;  %v6472_v23 = vcombine.low %v1511_v14, %v1515_v17 }
 0x1e1   : > { %v7123_v32 = vadd.f32 %v1267_v28, %v8885_v16  ;;  %3186 = vmatprep.subr.bf16.mxu1 %v6473_v19  ;;  %v1519_v28 = vld [vmem:[#allocation7 + $0x248] sm:$0xff] }
 0x1e2   : > { %v8893_v36 = vpack.c.bf16 %v7122_v27, %v7120_v26  ;;  %3379 = vmatmul.mubr.bf16.gmra.mrb[44].mxu0 %v8550_v6  ;;  %v1668_v27 = vld [vmem:[#allocation7 + $0x6f0] sm:$0xff]  ;;  %3187 = vmatpush1.bf16.msra.mxu1 %v6472_v23 }
 0x1e3   : > { %v8896_v41 = vpack.c.bf16 %v7123_v32, %v7121_v31  ;;  %3402 = vmatpush1.bf16.msra.mxu0 %v6586_v24  ;;  %3421 = vmatprep.mubr.bf16.mxu0 %v8558_v9  ;;  %v6619_v24 = vcombine.high %v1656_v5, %v1660_v13  ;;  %v6627_v44 = vcombine.high %v1664_v25, %v1668_v27  ;;  %v1539_v13 = vld [vmem:[#allocation7 + $0x2e8] sm:$0xff] }
 0x1e4   : > { %3403 = vmatprep.subr.bf16.mxu0 %v6595_v29  ;;  %v1523_v29 = vld [vmem:[#allocation7 + $0x268] sm:$0xff] }
 0x1e5   : > { %v1271_v47 = vpop.f32.mrb[4].mxu0  ;;  %v6481_v32 = vcombine.high %v1519_v28, %v1523_v29  ;;  %v6480_v35 = vcombine.low %v1519_v28, %v1523_v29  ;;  %v1688_v28 = vld [vmem:[#allocation7 + $0x790] sm:$0xff] }
 0x1e6   : > { %v7124_v54 = vadd.f32 %v1271_v47, %v8881_v10  ;;  %v1273_v56 = vpop.f32.mrb[5].mxu0  ;;  %v1692_v29 = vld [vmem:[#allocation7 + $0x7b0] sm:$0xff] }
 0x1e7   : > { %v1275_v59 = vpop.f32.mrb[6].mxu0  ;;  %3404 = vmatpush1.bf16.msra.mxu0 %v6594_v43  ;;  %v7125_v7 = vadd.f32 %v1273_v56, %v8885_v16  ;;  %3188 = vmatprep.subr.bf16.mxu1 %v6481_v32  ;;  %v6489_v56 = vcombine.high %v1527_v51, %v1531_v52  ;;  %v1547_v32 = vld [vmem:[#allocation7 + $0x328] sm:$0xff] }
 0x1e8   : > { %v7126_v1 = vadd.f32 %v1275_v59, %v8881_v10  ;;  %v1277_v3 = vpop.f32.mrb[7].mxu0  ;;  %3405 = vmatprep.subr.bf16.mxu0 %v6603_v45  ;;  %v1672_v45 = vld [vmem:[#allocation7 + $0x710] sm:$0xff]  ;;  %3189 = vmatpush1.bf16.msra.mxu1 %v6480_v35  ;;  %v6626_v59 = vcombine.low %v1664_v25, %v1668_v27  ;;  %v6651_v35 = vcombine.high %v1688_v28, %v1692_v29 }
 0x1e9   : > { %v7127_v12 = vadd.f32 %v1277_v3, %v8885_v16  ;;  %v6635_v0 = vcombine.high %v1672_v45, %v1676_v48  ;;  %3190 = vmatprep.subr.bf16.mxu1 %v6489_v56  ;;  %v1680_v3 = vld [vmem:[#allocation7 + $0x750] sm:$0xff]  ;;  %v6634_v17 = vcombine.low %v1672_v45, %v1676_v48  ;;  %v1555_v45 = vld [vmem:[#allocation7 + $0x368] sm:$0xff] }
 0x1ea   : > { %v8905_v18 = vpack.c.bf16 %v7126_v1, %v7124_v54  ;;  %v1563_v56 = vld [vmem:[#allocation7 + $0x3a8] sm:$0xff] }
 0x1eb   : > { %v8907_v20 = vpack.c.bf16 %v7127_v12, %v7125_v7  ;;  %3406 = vmatpush1.bf16.msra.mxu0 %v6602_v62  ;;  %v6488_v62 = vcombine.low %v1527_v51, %v1531_v52  ;;  %v1535_v12 = vld [vmem:[#allocation7 + $0x2c8] sm:$0xff] }
 0x1ec   : > { %3407 = vmatprep.subr.bf16.mxu0 %v6611_v4  ;;  %v1684_v4 = vld [vmem:[#allocation7 + $0x770] sm:$0xff]  ;;  %v6497_v19 = vcombine.high %v1535_v12, %v1539_v13  ;;  %v6496_v25 = vcombine.low %v1535_v12, %v1539_v13  ;;  %v1559_v52 = vld [vmem:[#allocation7 + $0x388] sm:$0xff] }
 0x1ed   : > { %v1281_v26 = vpop.f32.mrb[8].mxu0  ;;  %3191 = vmatpush1.bf16.msra.mxu1 %v6488_v62  ;;  %v6520_v62 = vcombine.low %v1559_v52, %v1563_v56  ;;  %v1579_v12 = vld [vmem:[#allocation7 + $0x428] sm:$0xff] }
 0x1ee   : > { %v7128_v30 = vadd.f32 %v1281_v26, %v8881_v10  ;;  %v1283_v31 = vpop.f32.mrb[9].mxu0  ;;  %3192 = vmatprep.subr.bf16.mxu1 %v6497_v19  ;;  %v1587_v19 = vld [vmem:[#allocation7 + $0x468] sm:$0xff] }
 0x1ef   : > { %v1285_v33 = vpop.f32.mrb[10].mxu0  ;;  %3408 = vmatpush1.bf16.msra.mxu0 %v6610_v21  ;;  %v7129_v46 = vadd.f32 %v1283_v31, %v8885_v16  ;;  %v1543_v31 = vld [vmem:[#allocation7 + $0x308] sm:$0xff] }
 0x1f0   : > { %v7130_v38 = vadd.f32 %v1285_v33, %v8881_v10  ;;  %v1287_v43 = vpop.f32.mrb[11].mxu0  ;;  %3409 = vmatprep.subr.bf16.mxu0 %v6619_v24  ;;  %v6643_v24 = vcombine.high %v1680_v3, %v1684_v4 }
 0x1f1   : > { %v7131_v47 = vadd.f32 %v1287_v43, %v8885_v16  ;;  %3193 = vmatpush1.bf16.msra.mxu1 %v6496_v25  ;;  %v1696_v43 = vld [vmem:[#allocation7 + $0x7d0] sm:$0xff]  ;;  %v1595_v25 = vld [vmem:[#allocation7 + $0x4a8] sm:$0xff] }
 0x1f2   : > { %v8913_v54 = vpack.c.bf16 %v7130_v38, %v7128_v30  ;;  %v6504_v38 = vcombine.low %v1543_v31, %v1547_v32 }
 0x1f3   : > { %v8915_v58 = vpack.c.bf16 %v7131_v47, %v7129_v46  ;;  %3410 = vmatpush1.bf16.msra.mxu0 %v6618_v34  ;;  %v6505_v34 = vcombine.high %v1543_v31, %v1547_v32  ;;  %v6650_v46 = vcombine.low %v1688_v28, %v1692_v29  ;;  %v1603_v28 = vld [vmem:[#allocation7 + $0x4e8] sm:$0xff] }
 0x1f4   : > { %3411 = vmatprep.subr.bf16.mxu0 %v6627_v44  ;;  %v1700_v44 = vld [vmem:[#allocation7 + $0x7f0] sm:$0xff]  ;;  %v1607_v32 = vld [vmem:[#allocation7 + $0x508] sm:$0xff] }
 0x1f5   : > { %v1291_v1 = vpop.f32.mrb[12].mxu0  ;;  %3194 = vmatprep.subr.bf16.mxu1 %v6505_v34  ;;  %v6659_v51 = vcombine.high %v1696_v43, %v1700_v44 }
 0x1f6   : > { %v7132_v5 = vadd.f32 %v1291_v1, %v8881_v10  ;;  %v1293_v7 = vpop.f32.mrb[13].mxu0  ;;  %3195 = vmatpush1.bf16.msra.mxu1 %v6504_v38  ;;  %v1567_v1 = vld [vmem:[#allocation7 + $0x3c8] sm:$0xff] }
 0x1f7   : > { %v1295_v14 = vpop.f32.mrb[14].mxu0  ;;  %3412 = vmatpush1.bf16.msra.mxu0 %v6626_v59  ;;  %v7133_v26 = vadd.f32 %v1293_v7, %v8885_v16  ;;  %v6658_v59 = vcombine.low %v1696_v43, %v1700_v44  ;;  %v1575_v7 = vld [vmem:[#allocation7 + $0x408] sm:$0xff] }
 0x1f8   : > { %v7134_v21 = vadd.f32 %v1295_v14, %v8881_v10  ;;  %v1297_v23 = vpop.f32.mrb[15].mxu0  ;;  %3413 = vmatprep.subr.bf16.mxu0 %v6635_v0  ;;  %v6642_v10 = vcombine.low %v1680_v3, %v1684_v4  ;;  %v6521_v0 = vcombine.high %v1559_v52, %v1563_v56  ;;  %v1571_v3 = vld [vmem:[#allocation7 + $0x3e8] sm:$0xff]  ;;  %v6537_v13 = vcombine.high %v1575_v7, %v1579_v12 }
 0x1f9   : > { %v7135_v27 = vadd.f32 %v1297_v23, %v8885_v16  ;;  %v1551_v16 = vld [vmem:[#allocation7 + $0x348] sm:$0xff]  ;;  %v6528_v4 = vcombine.low %v1567_v1, %v1571_v3  ;;  %v6536_v14 = vcombine.low %v1575_v7, %v1579_v12 }
 0x1fa   : > { %v8921_v30 = vpack.c.bf16 %v7134_v21, %v7132_v5  ;;  %v6512_v47 = vcombine.low %v1551_v16, %v1555_v45  ;;  %v6513_v48 = vcombine.high %v1551_v16, %v1555_v45  ;;  %v6529_v5 = vcombine.high %v1567_v1, %v1571_v3  ;;  %v1591_v21 = vld [vmem:[#allocation7 + $0x488] sm:$0xff] }
 0x1fb   : > { %v8923_v33 = vpack.c.bf16 %v7135_v27, %v7133_v26  ;;  %3414 = vmatpush1.bf16.msra.mxu0 %v6634_v17  ;;  %v1583_v17 = vld [vmem:[#allocation7 + $0x448] sm:$0xff]  ;;  %v6553_v26 = vcombine.high %v1591_v21, %v1595_v25  ;;  %v6552_v29 = vcombine.low %v1591_v21, %v1595_v25 }
 0x1fc   : > { %3415 = vmatprep.subr.bf16.mxu0 %v6643_v24  ;;  %3196 = vmatprep.subr.bf16.mxu1 %v6513_v48  ;;  %v6544_v23 = vcombine.low %v1583_v17, %v1587_v19  ;;  %v6545_v24 = vcombine.high %v1583_v17, %v1587_v19  ;;  %v1599_v27 = vld [vmem:[#allocation7 + $0x4c8] sm:$0xff] }
 0x1fd   : > { %3197 = vmatpush1.bf16.msra.mxu1 %v6512_v47  ;;  %v6561_v31 = vcombine.high %v1599_v27, %v1603_v28  ;;  %v6560_v34 = vcombine.low %v1599_v27, %v1603_v28  ;;  %v1615_v38 = vld [vmem:[#allocation7 + $0x548] sm:$0xff] }
 0x1fe   : > { %3198 = vmatprep.subr.bf16.mxu1 %v6521_v0  ;;  %v1619_v43 = vld [vmem:[#allocation7 + $0x568] sm:$0xff] }
 0x1ff   : > { %3416 = vmatpush1.bf16.msra.mxu0 %v6642_v10  ;;  %v1611_v10 = vld [vmem:[#allocation7 + $0x528] sm:$0xff]  ;;  %v6577_v16 = vcombine.high %v1615_v38, %v1619_v43  ;;  %v6576_v47 = vcombine.low %v1615_v38, %v1619_v43 }
 0x200   : > { %3417 = vmatprep.subr.bf16.mxu0 %v6651_v35  ;;  %v6569_v35 = vcombine.high %v1607_v32, %v1611_v10  ;;  %v6568_v44 = vcombine.low %v1607_v32, %v1611_v10  ;;  %v1623_v45 = vld [vmem:[#allocation7 + $0x588] sm:$0xff] }
 0x201   : > { %3199 = vmatpush1.bf16.msra.mxu1 %v6520_v62  ;;  %v1635_v52 = vld [vmem:[#allocation7 + $0x5e8] sm:$0xff] }
 0x202   : > { %3200 = vmatprep.subr.bf16.mxu1 %v6529_v5  ;;  %v1639_v62 = vld [vmem:[#allocation7 + $0x608] sm:$0xff] }
 0x203   : > { %3418 = vmatpush1.bf16.msra.mxu0 %v6650_v46  ;;  %v1627_v46 = vld [vmem:[#allocation7 + $0x5a8] sm:$0xff] }
 0x204   : > { %3419 = vmatprep.subr.bf16.mxu0 %v6659_v51  ;;  %v6585_v48 = vcombine.high %v1623_v45, %v1627_v46  ;;  %v1631_v51 = vld [vmem:[#allocation7 + $0x5c8] sm:$0xff]  ;;  %v6584_v56 = vcombine.low %v1623_v45, %v1627_v46 }
 0x205   : > { %3201 = vmatpush1.bf16.msra.mxu1 %v6528_v4  ;;  %v1643_v0 = vld [vmem:[#allocation7 + $0x628] sm:$0xff]  ;;  %v6592_v1 = vcombine.low %v1631_v51, %v1635_v52 }
 0x206   : > { %3243 = vmatprep.subr.bf16.mxu1 %v6537_v13  ;;  %v6601_v3 = vcombine.high %v1639_v62, %v1643_v0  ;;  %v1647_v4 = vld [vmem:[#allocation7 + $0x648] sm:$0xff]  ;;  %v6600_v7 = vcombine.low %v1639_v62, %v1643_v0  ;;  %v1461_v62 = vld [vmem:[#allocation7 + $0x78] sm:$0xff] }
 0x207   : > { %3420 = vmatpush1.bf16.msra.mxu0 %v6658_v59  ;;  %v6593_v59 = vcombine.high %v1631_v51, %v1635_v52  ;;  %v1651_v5 = vld [vmem:[#allocation7 + $0x668] sm:$0xff]  ;;  %v1453_v51 = vld [vmem:[#allocation7 + $0x38] sm:$0xff] }
 0x208   : > { %3203 = vmatmul.mubr.bf16.vlgmr.msra.gmra.mrb[16].mxu1 %v8484_v40  ;;  %v6609_v12 = vcombine.high %v1647_v4, %v1651_v5  ;;  %v1655_v13 = vld [vmem:[#allocation7 + $0x688] sm:$0xff]  ;;  %v6608_v17 = vcombine.low %v1647_v4, %v1651_v5  ;;  %v1469_v4 = vld [vmem:[#allocation7 + $0xb8] sm:$0xff] }
 0x209   : > { %3244 = vmatpush1.bf16.msra.mxu1 %v6536_v14  ;;  %3212 = vmatprep.mubr.bf16.mxu1 %v8489_v42  ;;  %v1659_v14 = vld [vmem:[#allocation7 + $0x6a8] sm:$0xff] }
 0x20a   : > { %3422 = vmatmul.mubr.bf16.vlgmr.msra.gmra.mrb[32].mxu0 %v8617_v37  ;;  %3245 = vmatprep.subr.bf16.mxu1 %v6545_v24  ;;  %v6617_v19 = vcombine.high %v1655_v13, %v1659_v14  ;;  %v1663_v21 = vld [vmem:[#allocation7 + $0x6c8] sm:$0xff]  ;;  %v6616_v24 = vcombine.low %v1655_v13, %v1659_v14  ;;  %v1477_v13 = vld [vmem:[#allocation7 + $0xf8] sm:$0xff] }
 0x20b   : > { %3431 = vmatprep.mubr.bf16.mxu0 %v8619_v39  ;;  %v1675_v27 = vld [vmem:[#allocation7 + $0x728] sm:$0xff] }
 0x20c   : > { %v1683_v32 = vld [vmem:[#allocation7 + $0x768] sm:$0xff] }
 0x20d   : > { %3246 = vmatpush1.bf16.msra.mxu1 %v6544_v23  ;;  %v1667_v23 = vld [vmem:[#allocation7 + $0x6e8] sm:$0xff] }
 0x20e   : > { %3247 = vmatprep.subr.bf16.mxu1 %v6553_v26  ;;  %v6625_v25 = vcombine.high %v1663_v21, %v1667_v23  ;;  %v1671_v26 = vld [vmem:[#allocation7 + $0x708] sm:$0xff]  ;;  %v6624_v28 = vcombine.low %v1663_v21, %v1667_v23  ;;  %v8949_v21 = vld [vmem:[%s10213_s4] sm:$0xff] }
 0x20f   : > { %v6632_v10 = vcombine.low %v1671_v26, %v1675_v27  ;;  %v1691_v38 = vld [vmem:[#allocation7 + $0x7a8] sm:$0xff]  ;;  %v8954_v23 = vrot.slane %v8949_v21, %v496_v61 }
 0x210   : > { %3213 = vmatmul.mubr.bf16.gmra.mrb[20].mxu1 %v8506_v50  ;;  %v1699_v45 = vld [vmem:[#allocation7 + $0x7e8] sm:$0xff] }
 0x211   : > { %3248 = vmatpush1.bf16.msra.mxu1 %v6552_v29  ;;  %3222 = vmatprep.mubr.bf16.mxu1 %v8514_v53  ;;  %v6633_v29 = vcombine.high %v1671_v26, %v1675_v27  ;;  %v1489_v26 = vld [vmem:[#allocation7 + $0x158] sm:$0xff]  ;;  %v8959_v27 = vrot.slane %v8949_v21, %v500_v2 }
 0x212   : > { %3432 = vmatmul.mubr.bf16.gmra.mrb[36].mxu0 %v8627_v55  ;;  %3249 = vmatprep.subr.bf16.mxu1 %v6561_v31  ;;  %v1679_v31 = vld [vmem:[#allocation7 + $0x748] sm:$0xff] }
 0x213   : > { %3441 = vmatprep.mubr.bf16.mxu0 %v8629_v57  ;;  %v6640_v43 = vcombine.low %v1679_v31, %v1683_v32 }
 0x215   : > { %3250 = vmatpush1.bf16.msra.mxu1 %v6560_v34  ;;  %v6641_v34 = vcombine.high %v1679_v31, %v1683_v32  ;;  %v1493_v31 = vld [vmem:[#allocation7 + $0x178] sm:$0xff] }
 0x216   : > { %3251 = vmatprep.subr.bf16.mxu1 %v6569_v35  ;;  %v1687_v35 = vld [vmem:[#allocation7 + $0x788] sm:$0xff]  ;;  %v6453_v32 = vcombine.high %v1489_v26, %v1493_v31 }
 0x217   : > { %v6648_v46 = vcombine.low %v1687_v35, %v1691_v38 }
 0x218   : > { %3223 = vmatmul.mubr.bf16.gmra.mrb[24].mxu1 %v8528_v60 }
 0x219   : > { %3252 = vmatpush1.bf16.msra.mxu1 %v6568_v44  ;;  %3232 = vmatprep.mubr.bf16.mxu1 %v8536_v63  ;;  %v6649_v44 = vcombine.high %v1687_v35, %v1691_v38  ;;  %v6452_v35 = vcombine.low %v1489_v26, %v1493_v31  ;;  %v1513_v31 = vld [vmem:[#allocation7 + $0x218] sm:$0xff] }
 0x21a   : > { %3442 = vmatmul.mubr.bf16.gmra.mrb[40].mxu0 %v8637_v8  ;;  %3253 = vmatprep.subr.bf16.mxu1 %v6577_v16  ;;  %v1695_v16 = vld [vmem:[#allocation7 + $0x7c8] sm:$0xff] }
 0x21b   : > { %3451 = vmatprep.mubr.bf16.mxu0 %v8639_v11  ;;  %v6656_v52 = vcombine.low %v1695_v16, %v1699_v45 }
 0x21d   : > { %3254 = vmatpush1.bf16.msra.mxu1 %v6576_v47  ;;  %v6657_v47 = vcombine.high %v1695_v16, %v1699_v45 }
 0x21e   : > { %3255 = vmatprep.subr.bf16.mxu1 %v6585_v48  ;;  %v1449_v48 = vld [vmem:[#allocation7 + $0x18] sm:$0xff] }
 0x21f   : > { %v6412_v0 = vcombine.low %v1449_v48, %v1453_v51 }
 0x220   : > { %3233 = vmatmul.mubr.bf16.gmra.mrb[28].mxu1 %v8550_v6 }
 0x221   : > { %3256 = vmatpush1.bf16.msra.mxu1 %v6584_v56  ;;  %3275 = vmatprep.mubr.bf16.mxu1 %v8558_v9  ;;  %v6413_v56 = vcombine.high %v1449_v48, %v1453_v51  ;;  %v1501_v48 = vld [vmem:[#allocation7 + $0x1b8] sm:$0xff] }
 0x222   : > { %3452 = vmatmul.mubr.bf16.gmra.mrb[44].mxu0 %v8645_v22  ;;  %3257 = vmatprep.subr.bf16.mxu1 %v6593_v59  ;;  %v1457_v59 = vld [vmem:[#allocation7 + $0x58] sm:$0xff] }
 0x223   : > { %6872 = vmatprep.mubr.msk.bf16.mxu0 %vm3696_vm0, %v8893_v36  ;;  %v6420_v5 = vcombine.low %v1457_v59, %v1461_v62 }
 0x225   : > { %3258 = vmatpush1.bf16.msra.mxu1 %v6592_v1  ;;  %v6421_v1 = vcombine.high %v1457_v59, %v1461_v62 }
 0x226   : > { %3259 = vmatprep.subr.bf16.mxu1 %v6601_v3  ;;  %v1465_v3 = vld [vmem:[#allocation7 + $0x98] sm:$0xff] }
 0x227   : > { %v6428_v14 = vcombine.low %v1465_v3, %v1469_v4 }
 0x229   : > { %3260 = vmatpush1.bf16.msra.mxu1 %v6600_v7  ;;  %v6429_v7 = vcombine.high %v1465_v3, %v1469_v4  ;;  %v1505_v3 = vld [vmem:[#allocation7 + $0x1d8] sm:$0xff] }
 0x22a   : > { %3261 = vmatprep.subr.bf16.mxu1 %v6609_v12  ;;  %v1473_v12 = vld [vmem:[#allocation7 + $0xd8] sm:$0xff] }
 0x22b   : > { %v1509_v4 = vld [vmem:[#allocation7 + $0x1f8] sm:$0xff] }
 0x22d   : > { %3262 = vmatpush1.bf16.msra.mxu1 %v6608_v17  ;;  %v6437_v17 = vcombine.high %v1473_v12, %v1477_v13 }
 0x22e   : > { %3263 = vmatprep.subr.bf16.mxu1 %v6617_v19  ;;  %v6436_v19 = vcombine.low %v1473_v12, %v1477_v13  ;;  %v6469_v13 = vcombine.high %v1505_v3, %v1509_v4 }
 0x231   : > { %3264 = vmatpush1.bf16.msra.mxu1 %v6616_v24  ;;  %v1481_v24 = vld [vmem:[#allocation7 + $0x118] sm:$0xff] }
 0x232   : > { %3265 = vmatprep.subr.bf16.mxu1 %v6625_v25  ;;  %v1485_v25 = vld [vmem:[#allocation7 + $0x138] sm:$0xff] }
 0x235   : > { %3266 = vmatpush1.bf16.msra.mxu1 %v6624_v28  ;;  %v6444_v28 = vcombine.low %v1481_v24, %v1485_v25 }
 0x236   : > { %3267 = vmatprep.subr.bf16.mxu1 %v6633_v29  ;;  %v6445_v29 = vcombine.high %v1481_v24, %v1485_v25 }
 0x239   : > { %3268 = vmatpush1.bf16.msra.mxu1 %v6632_v10 }
 0x23a   : > { %3269 = vmatprep.subr.bf16.mxu1 %v6641_v34 }
 0x23d   : > { %3270 = vmatpush1.bf16.msra.mxu1 %v6640_v43 }
 0x23e   : > { %3271 = vmatprep.subr.bf16.mxu1 %v6649_v44 }
 0x241   : > { %3272 = vmatpush1.bf16.msra.mxu1 %v6648_v46 }
 0x242   : > { %3273 = vmatprep.subr.bf16.mxu1 %v6657_v47  ;;  %v1497_v47 = vld [vmem:[#allocation7 + $0x198] sm:$0xff] }
 0x243   : > { %v6461_v59 = vcombine.high %v1497_v47, %v1501_v48 }
 0x245   : > { %3274 = vmatpush1.bf16.msra.mxu1 %v6656_v52 }
 0x246   : > { %3462 = vmatprep.subr.bf16.mxu1 %v6413_v56  ;;  %v6460_v56 = vcombine.low %v1497_v47, %v1501_v48 }
 0x248   : > { %3276 = vmatmul.mubr.bf16.vlgmr.msra.gmra.mrb[16].mxu1 %v8617_v37 }
 0x249   : > { %3463 = vmatpush1.bf16.msra.mxu1 %v6412_v0  ;;  %3285 = vmatprep.mubr.bf16.mxu1 %v8619_v39 }
 0x24a   : > { %3464 = vmatprep.subr.bf16.mxu1 %v6421_v1 }
 0x24d   : > { %3465 = vmatpush1.bf16.msra.mxu1 %v6420_v5 }
 0x24e   : > { %3466 = vmatprep.subr.bf16.mxu1 %v6429_v7 }
 0x250   : > { %3286 = vmatmul.mubr.bf16.gmra.mrb[20].mxu1 %v8627_v55 }
 0x251   : > { %3467 = vmatpush1.bf16.msra.mxu1 %v6428_v14  ;;  %3295 = vmatprep.mubr.bf16.mxu1 %v8629_v57 }
 0x252   : > { %3468 = vmatprep.subr.bf16.mxu1 %v6437_v17 }
 0x255   : > { %3469 = vmatpush1.bf16.msra.mxu1 %v6436_v19  ;;  %v6468_v19 = vcombine.low %v1505_v3, %v1509_v4  ;;  %v1529_v4 = vld [vmem:[#allocation7 + $0x298] sm:$0xff] }
 0x256   : > { %3470 = vmatprep.subr.bf16.mxu1 %v6445_v29 }
 0x258   : > { %3296 = vmatmul.mubr.bf16.gmra.mrb[24].mxu1 %v8637_v8 }
 0x259   : > { %3471 = vmatpush1.bf16.msra.mxu1 %v6444_v28  ;;  %3305 = vmatprep.mubr.bf16.mxu1 %v8639_v11 }
 0x25a   : > { %3472 = vmatprep.subr.bf16.mxu1 %v6453_v32  ;;  %v1517_v32 = vld [vmem:[#allocation7 + $0x238] sm:$0xff] }
 0x25d   : > { %v3131_v10 = vpop.f32.mrb[16].mxu0  ;;  %3473 = vmatpush1.bf16.msra.mxu1 %v6452_v35  ;;  %v6476_v35 = vcombine.low %v1513_v31, %v1517_v32 }
 0x25e   : > { %v7152_v61 = vadd.f32 %v3131_v10, %v8954_v23  ;;  %v3133_v34 = vpop.f32.mrb[17].mxu0  ;;  %3474 = vmatprep.subr.bf16.mxu1 %v6461_v59  ;;  %v1521_v10 = vld [vmem:[#allocation7 + $0x258] sm:$0xff] }
 0x25f   : > { %v7153_v38 = vadd.f32 %v3133_v34, %v8959_v27  ;;  %v3135_v43 = vpop.f32.mrb[18].mxu0 }
 0x260   : > { %v7154_v2 = vadd.f32 %v3135_v43, %v8954_v23  ;;  %v3137_v44 = vpop.f32.mrb[19].mxu0  ;;  %v3624_v45 = vmul.f32 0.125, %v7152_v61  ;;  %3306 = vmatmul.mubr.bf16.gmra.mrb[28].mxu1 %v8645_v22  ;;  %v1525_v43 = vld [vmem:[#allocation7 + $0x278] sm:$0xff] }
 0x261   : > { %v7155_v16 = vadd.f32 %v3137_v44, %v8959_v27  ;;  %v3625_v51 = vmul.f32 0.125, %v7153_v38  ;;  %3475 = vmatpush1.bf16.msra.mxu1 %v6460_v56  ;;  %3494 = vmatprep.mubr.bf16.mxu1 %v8416_v15  ;;  %v6477_v38 = vcombine.high %v1513_v31, %v1517_v32  ;;  %v6485_v44 = vcombine.high %v1521_v10, %v1525_v43 }
 0x262   : > { %v3628_v46 = vmul.f32 0.125, %v7154_v2  ;;  %3476 = vmatprep.subr.bf16.mxu1 %v6469_v13 }
 0x263   : > { %v3629_v52 = vmul.f32 0.125, %v7155_v16 }
 0x264   : > { %v3656_v62 = vpack.c.bf16 %v3628_v46, %v3624_v45 }
 0x265   : > { %v8967_v0 = vpack.c.bf16 %v3629_v52, %v3625_v51  ;;  %v3141_v1 = vpop.f32.mrb[20].mxu0  ;;  %3477 = vmatpush1.bf16.msra.mxu1 %v6468_v19  ;;  %v6484_v52 = vcombine.low %v1521_v10, %v1525_v43  ;;  %v1537_v19 = vld [vmem:[#allocation7 + $0x2d8] sm:$0xff] }
 0x266   : > { %v7156_v5 = vadd.f32 %v3141_v1, %v8954_v23  ;;  %v3143_v7 = vpop.f32.mrb[21].mxu0  ;;  %3971 = vrot.lane.b32.xlu0 %v3656_v62, %s8124_s13  ;;  %7312 = vmatprep.subr.msk.bf16.mxu0 %vm3696_vm0, %v3656_v62  ;;  %v3710_v12 = vsel %vm3696_vm0, %v3656_v62, 0 }
 0x267   : > { %v7157_v14 = vadd.f32 %v3143_v7, %v8959_v27  ;;  %v3145_v17 = vpop.f32.mrb[22].mxu0  ;;  %6865 = vmatpush3.bf16.xpose.msra.mxu0 %v3710_v12  ;;  %3478 = vmatprep.subr.bf16.mxu1 %v6477_v38 }
 0x268   : > { %v7158_v24 = vadd.f32 %v3145_v17, %v8954_v23  ;;  %v3147_v25 = vpop.f32.mrb[23].mxu0  ;;  %v3632_v28 = vmul.f32 0.125, %v7156_v5  ;;  %v1533_v5 = vld [vmem:[#allocation7 + $0x2b8] sm:$0xff] }
 0x269   : > { %v7159_v26 = vadd.f32 %v3147_v25, %v8959_v27  ;;  %v3633_v61 = vmul.f32 0.125, %v7157_v14  ;;  %3479 = vmatpush1.bf16.msra.mxu1 %v6476_v35  ;;  %v6493_v13 = vcombine.high %v1529_v4, %v1533_v5  ;;  %v6492_v17 = vcombine.low %v1529_v4, %v1533_v5  ;;  %v1569_v5 = vld [vmem:[#allocation7 + $0x3d8] sm:$0xff] }
 0x26a   : > { %v3636_v29 = vmul.f32 0.125, %v7158_v24  ;;  %3480 = vmatprep.subr.bf16.mxu1 %v6485_v44  ;;  %v1541_v24 = vld [vmem:[#allocation7 + $0x2f8] sm:$0xff] }
 0x26b   : > { %v3637_v34 = vmul.f32 0.125, %v7159_v26  ;;  %v6500_v35 = vcombine.low %v1537_v19, %v1541_v24  ;;  %v1545_v44 = vld [vmem:[#allocation7 + $0x318] sm:$0xff] }
 0x26c   : > { %v3660_v2 = vpack.c.bf16 %v3636_v29, %v3632_v28  ;;  %v6501_v28 = vcombine.high %v1537_v19, %v1541_v24 }
 0x26d   : > { %v8978_v16 = vpack.c.bf16 %v3637_v34, %v3633_v61  ;;  %v3151_v45 = vpop.f32.mrb[24].mxu0  ;;  %3481 = vmatpush1.bf16.msra.mxu1 %v6484_v52 }
 0x26e   : > { %v7160_v15 = vadd.f32 %v3151_v45, %v8954_v23  ;;  %v3153_v46 = vpop.f32.mrb[25].mxu0  ;;  %3973 = vrot.lane.b32.xlu0 %v3660_v2, %s8124_s13  ;;  %7313 = vmatprep.subr.msk.bf16.mxu0 %vm3696_vm0, %v3660_v2  ;;  %v3713_v47 = vsel %vm3696_vm0, %v3660_v2, 0  ;;  %v1549_v45 = vld [vmem:[#allocation7 + $0x338] sm:$0xff] }
 0x26f   : > { %v7161_v48 = vadd.f32 %v3153_v46, %v8959_v27  ;;  %v3155_v51 = vpop.f32.mrb[26].mxu0  ;;  %6867 = vmatpush3.bf16.xpose.msra.mxu0 %v3713_v47  ;;  %3482 = vmatprep.subr.bf16.mxu1 %v6493_v13 }
 0x270   : > { %v7162_v56 = vadd.f32 %v3155_v51, %v8954_v23  ;;  %v3157_v59 = vpop.f32.mrb[27].mxu0  ;;  %v3640_v1 = vmul.f32 0.125, %v7160_v15  ;;  %v1553_v15 = vld [vmem:[#allocation7 + $0x358] sm:$0xff] }
 0x271   : > { %v7163_v62 = vadd.f32 %v3157_v59, %v8959_v27  ;;  %v3641_v7 = vmul.f32 0.125, %v7161_v48  ;;  %3483 = vmatpush1.bf16.msra.mxu1 %v6492_v17  ;;  %v6509_v48 = vcombine.high %v1545_v44, %v1549_v45  ;;  %v1557_v51 = vld [vmem:[#allocation7 + $0x378] sm:$0xff] }
 0x272   : > { %v3644_v3 = vmul.f32 0.125, %v7162_v56  ;;  %3959 = vrot.lane.b32.xlu0 %v8893_v36, %s8124_s13  ;;  %3484 = vmatprep.subr.bf16.mxu1 %v6501_v28  ;;  %v6508_v56 = vcombine.low %v1545_v44, %v1549_v45  ;;  %v1581_v17 = vld [vmem:[#allocation7 + $0x438] sm:$0xff] }
 0x273   : > { %v3645_v12 = vmul.f32 0.125, %v7163_v62  ;;  %v6516_v62 = vcombine.low %v1553_v15, %v1557_v51  ;;  %v1589_v28 = vld [vmem:[#allocation7 + $0x478] sm:$0xff] }
 0x274   : > { %v3664_v14 = vpack.c.bf16 %v3644_v3, %v3640_v1  ;;  %v1561_v1 = vld [vmem:[#allocation7 + $0x398] sm:$0xff] }
 0x275   : > { %v8989_v25 = vpack.c.bf16 %v3645_v12, %v3641_v7  ;;  %v3161_v26 = vpop.f32.mrb[28].mxu0  ;;  %3485 = vmatpush1.bf16.msra.mxu1 %v6500_v35  ;;  %v1565_v3 = vld [vmem:[#allocation7 + $0x3b8] sm:$0xff] }
 0x276   : > { %v7164_v29 = vadd.f32 %v3161_v26, %v8954_v23  ;;  %v3163_v31 = vpop.f32.mrb[29].mxu0  ;;  %3975 = vrot.lane.b32.xlu1 %v3664_v14, %s8124_s13  ;;  %7314 = vmatprep.subr.msk.bf16.mxu0 %vm3696_vm0, %v3664_v14  ;;  %v3716_v36 = vsel %vm3696_vm0, %v3664_v14, 0  ;;  %v6525_v4 = vcombine.high %v1561_v1, %v1565_v3  ;;  %v1573_v7 = vld [vmem:[#allocation7 + $0x3f8] sm:$0xff]  ;;  %v6524_v12 = vcombine.low %v1561_v1, %v1565_v3 }
 0x277   : > { %v7165_v32 = vadd.f32 %v3163_v31, %v8959_v27  ;;  %3963 = vrot.lane.b32.xlu0 %v8913_v54, %s8124_s13  ;;  %v3165_v10 = vpop.f32.mrb[30].mxu0  ;;  %6869 = vmatpush3.bf16.xpose.msra.mxu0 %v3716_v36  ;;  %v6533_v13 = vcombine.high %v1569_v5, %v1573_v7  ;;  %v1577_v14 = vld [vmem:[#allocation7 + $0x418] sm:$0xff]  ;;  %v6532_v19 = vcombine.low %v1569_v5, %v1573_v7 }
 0x278   : > { %v7166_v61 = vadd.f32 %v3165_v10, %v8954_v23  ;;  %v3167_v34 = vpop.f32.mrb[31].mxu0  ;;  %v3648_v43 = vmul.f32 0.125, %v7164_v29  ;;  %3486 = vmatprep.subr.bf16.mxu1 %v6509_v48  ;;  %v6517_v23 = vcombine.high %v1553_v15, %v1557_v51  ;;  %v6541_v24 = vcombine.high %v1577_v14, %v1581_v17  ;;  %v1585_v26 = vld [vmem:[#allocation7 + $0x458] sm:$0xff] }
 0x279   : > { %v7167_v38 = vadd.f32 %v3167_v34, %v8959_v27  ;;  %v3649_v46 = vmul.f32 0.125, %v7165_v32  ;;  %3487 = vmatpush1.bf16.msra.mxu1 %v6508_v56  ;;  %v6540_v29 = vcombine.low %v1577_v14, %v1581_v17  ;;  %v6549_v31 = vcombine.high %v1585_v26, %v1589_v28  ;;  %v1593_v36 = vld [vmem:[#allocation7 + $0x498] sm:$0xff] }
 0x27a   : > { %v3652_v2 = vmul.f32 0.125, %v7166_v61  ;;  %3488 = vmatprep.subr.bf16.mxu1 %v6517_v23  ;;  %v6548_v32 = vcombine.low %v1585_v26, %v1589_v28  ;;  %v1601_v10 = vld [vmem:[#allocation7 + $0x4d8] sm:$0xff] }
 0x27b   : > { %v3653_v47 = vmul.f32 0.125, %v7167_v38  ;;  %v1605_v61 = vld [vmem:[#allocation7 + $0x4f8] sm:$0xff] }
 0x27c   : > { %v3668_v52 = vpack.c.bf16 %v3652_v2, %v3648_v43  ;;  %v6565_v35 = vcombine.high %v1601_v10, %v1605_v61  ;;  %v1609_v38 = vld [vmem:[#allocation7 + $0x518] sm:$0xff] }
 0x27d   : > { %v9000_v59 = vpack.c.bf16 %v3653_v47, %v3649_v46  ;;  %3489 = vmatpush1.bf16.msra.mxu1 %v6516_v62  ;;  %v1613_v43 = vld [vmem:[#allocation7 + $0x538] sm:$0xff] }
 0x27e   : > { %3977 = vrot.lane.b32.xlu1 %v3668_v52, %s8124_s13  ;;  %7315 = vmatprep.subr.msk.bf16.mxu0 %vm3696_vm0, %v3668_v52  ;;  %v3719_v27 = vsel %vm3696_vm0, %v3668_v52, 0  ;;  %v1617_v2 = vld [vmem:[#allocation7 + $0x558] sm:$0xff]  ;;  %v6572_v44 = vcombine.low %v1609_v38, %v1613_v43 }
 0x27f   : > { %6871 = vmatpush3.bf16.xpose.msra.mxu0 %v3719_v27  ;;  %3490 = vmatprep.subr.bf16.mxu1 %v6525_v4  ;;  %v1625_v15 = vld [vmem:[#allocation7 + $0x598] sm:$0xff] }
 0x280   : > { %v1629_v46 = vld [vmem:[#allocation7 + $0x5b8] sm:$0xff] }
 0x281   : > { %3491 = vmatpush1.bf16.msra.mxu1 %v6524_v12  ;;  %v1633_v48 = vld [vmem:[#allocation7 + $0x5d8] sm:$0xff]  ;;  %v6588_v51 = vcombine.low %v1625_v15, %v1629_v46 }
 0x282   : > { %3961 = vrot.lane.b32.xlu1 %v8905_v18, %s8124_s13  ;;  %3492 = vmatprep.subr.bf16.mxu1 %v6533_v13  ;;  %v1641_v56 = vld [vmem:[#allocation7 + $0x618] sm:$0xff] }
 0x283   : > { %v1645_v23 = vld [vmem:[#allocation7 + $0x638] sm:$0xff] }
 0x284   : > { %v1649_v62 = vld [vmem:[#allocation7 + $0x658] sm:$0xff]  ;;  %v6604_v1 = vcombine.low %v1641_v56, %v1645_v23 }
 0x285   : > { %3493 = vmatpush1.bf16.msra.mxu1 %v6532_v19  ;;  %v1657_v4 = vld [vmem:[#allocation7 + $0x698] sm:$0xff] }
 0x286   : > { %3965 = vrot.lane.b32.xlu1 %v8921_v30, %s8124_s13  ;;  %6873 = vmatmul.mubr.msk.bf16.vlgmr.msra.gmra.mrb[48].mxu0 %vm3696_vm0, %v8905_v18  ;;  %v1597_v18 = vld [vmem:[#allocation7 + $0x4b8] sm:$0xff] }
 0x287   : > { %6876 = vmatprep.mubr.msk.bf16.mxu0 %vm3696_vm0, %v8913_v54  ;;  %3535 = vmatprep.subr.bf16.mxu1 %v6541_v24  ;;  %v6557_v54 = vcombine.high %v1593_v36, %v1597_v18  ;;  %v6556_v34 = vcombine.low %v1593_v36, %v1597_v18  ;;  %v1661_v5 = vld [vmem:[#allocation7 + $0x6b8] sm:$0xff] }
 0x288   : > { %3495 = vmatmul.mubr.bf16.vlgmr.msra.gmra.mrb[32].mxu1 %v8484_v40  ;;  %v6573_v40 = vcombine.high %v1609_v38, %v1613_v43  ;;  %v6621_v12 = vcombine.high %v1657_v4, %v1661_v5  ;;  %v1665_v13 = vld [vmem:[#allocation7 + $0x6d8] sm:$0xff]  ;;  %v6620_v14 = vcombine.low %v1657_v4, %v1661_v5 }
 0x289   : > { %3536 = vmatpush1.bf16.msra.mxu1 %v6540_v29  ;;  %3504 = vmatprep.mubr.bf16.mxu1 %v8489_v42  ;;  %v1621_v42 = vld [vmem:[#allocation7 + $0x578] sm:$0xff] }
 0x28a   : > { %3537 = vmatprep.subr.bf16.mxu1 %v6549_v31  ;;  %v6581_v45 = vcombine.high %v1617_v2, %v1621_v42  ;;  %v6580_v47 = vcombine.low %v1617_v2, %v1621_v42  ;;  %v1673_v17 = vld [vmem:[#allocation7 + $0x718] sm:$0xff] }
 0x28b   : > { %v1677_v19 = vld [vmem:[#allocation7 + $0x738] sm:$0xff] }
 0x28c   : > { %v6637_v26 = vcombine.high %v1673_v17, %v1677_v19  ;;  %v1681_v28 = vld [vmem:[#allocation7 + $0x758] sm:$0xff]  ;;  %v6636_v31 = vcombine.low %v1673_v17, %v1677_v19 }
 0x28d   : > { %3538 = vmatpush1.bf16.msra.mxu1 %v6548_v32  ;;  %v1685_v29 = vld [vmem:[#allocation7 + $0x778] sm:$0xff] }
 0x28e   : > { %6877 = vmatmul.mubr.msk.bf16.gmra.mrb[52].mxu0 %vm3696_vm0, %v8921_v30  ;;  %3539 = vmatprep.subr.bf16.mxu1 %v6557_v54  ;;  %v6564_v30 = vcombine.low %v1601_v10, %v1605_v61  ;;  %v6645_v36 = vcombine.high %v1681_v28, %v1685_v29  ;;  %v1689_v18 = vld [vmem:[#allocation7 + $0x798] sm:$0xff]  ;;  %v6644_v54 = vcombine.low %v1681_v28, %v1685_v29 }
 0x28f   : > { %v1693_v32 = vld [vmem:[#allocation7 + $0x7b8] sm:$0xff] }
 0x290   : > { %3505 = vmatmul.mubr.bf16.gmra.mrb[36].mxu1 %v8506_v50  ;;  %v6589_v50 = vcombine.high %v1625_v15, %v1629_v46  ;;  %v6653_v10 = vcombine.high %v1689_v18, %v1693_v32  ;;  %v1697_v61 = vld [vmem:[#allocation7 + $0x7d8] sm:$0xff] }
 0x291   : > { %3540 = vmatpush1.bf16.msra.mxu1 %v6556_v34  ;;  %3514 = vmatprep.mubr.bf16.mxu1 %v8514_v53  ;;  %v1637_v53 = vld [vmem:[#allocation7 + $0x5f8] sm:$0xff] }
 0x292   : > { %3541 = vmatprep.subr.bf16.mxu1 %v6565_v35  ;;  %v6597_v52 = vcombine.high %v1633_v48, %v1637_v53  ;;  %v6596_v27 = vcombine.low %v1633_v48, %v1637_v53  ;;  %v1701_v34 = vld [vmem:[#allocation7 + $0x7f8] sm:$0xff]  ;;  %v6652_v35 = vcombine.low %v1689_v18, %v1693_v32 }
 0x293   : > { %v6661_v38 = vcombine.high %v1697_v61, %v1701_v34  ;;  %v6660_v43 = vcombine.low %v1697_v61, %v1701_v34 }
 0x295   : > { %3542 = vmatpush1.bf16.msra.mxu1 %v6564_v30  ;;  %v1722_v30 = vsub.s32 4, %v8871_v49 }
 0x296   : > { %3543 = vmatprep.subr.bf16.mxu1 %v6573_v40  ;;  %v1726_v40 = vsub.s32 5, %v8871_v49 }
 0x298   : > { %3515 = vmatmul.mubr.bf16.gmra.mrb[40].mxu1 %v8528_v60  ;;  %v6605_v60 = vcombine.high %v1641_v56, %v1645_v23 }
 0x299   : > { %3544 = vmatpush1.bf16.msra.mxu1 %v6572_v44  ;;  %3524 = vmatprep.mubr.bf16.mxu1 %v8536_v63  ;;  %v1653_v63 = vld [vmem:[#allocation7 + $0x678] sm:$0xff]  ;;  %v1723_v44 = vrot.slane %v8949_v21, %v1722_v30 }
 0x29a   : > { %3545 = vmatprep.subr.bf16.mxu1 %v6581_v45  ;;  %v6613_v3 = vcombine.high %v1649_v62, %v1653_v63  ;;  %v6612_v7 = vcombine.low %v1649_v62, %v1653_v63 }
 0x29d   : > { %3546 = vmatpush1.bf16.msra.mxu1 %v6580_v47 }
 0x29e   : > { %3547 = vmatprep.subr.bf16.mxu1 %v6589_v50 }
 0x2a0   : > { %3525 = vmatmul.mubr.bf16.gmra.mrb[44].mxu1 %v8550_v6  ;;  %v1669_v6 = vld [vmem:[#allocation7 + $0x6f8] sm:$0xff] }
 0x2a1   : > { %3548 = vmatpush1.bf16.msra.mxu1 %v6588_v51  ;;  %3567 = vmatprep.mubr.bf16.mxu1 %v8558_v9  ;;  %v6629_v9 = vcombine.high %v1665_v13, %v1669_v6  ;;  %v6628_v24 = vcombine.low %v1665_v13, %v1669_v6 }
 0x2a2   : > { %3549 = vmatprep.subr.bf16.mxu1 %v6597_v52 }
 0x2a5   : > { %3550 = vmatpush1.bf16.msra.mxu1 %v6596_v27 }
 0x2a6   : > { %3551 = vmatprep.subr.bf16.mxu1 %v6605_v60 }
 0x2a9   : > { %3552 = vmatpush1.bf16.msra.mxu1 %v6604_v1 }
 0x2aa   : > { %3553 = vmatprep.subr.bf16.mxu1 %v6613_v3 }
 0x2ad   : > { %3554 = vmatpush1.bf16.msra.mxu1 %v6612_v7 }
 0x2ae   : > { %3555 = vmatprep.subr.bf16.mxu1 %v6621_v12 }
 0x2b1   : > { %3556 = vmatpush1.bf16.msra.mxu1 %v6620_v14 }
 0x2b2   : > { %3557 = vmatprep.subr.bf16.mxu1 %v6629_v9 }
 0x2b5   : > { %3558 = vmatpush1.bf16.msra.mxu1 %v6628_v24 }
 0x2b6   : > { %3559 = vmatprep.subr.bf16.mxu1 %v6637_v26 }
 0x2b9   : > { %3560 = vmatpush1.bf16.msra.mxu1 %v6636_v31 }
 0x2ba   : > { %3561 = vmatprep.subr.bf16.mxu1 %v6645_v36 }
 0x2bd   : > { %3562 = vmatpush1.bf16.msra.mxu1 %v6644_v54 }
 0x2be   : > { %3563 = vmatprep.subr.bf16.mxu1 %v6653_v10 }
 0x2c1   : > { %3564 = vmatpush1.bf16.msra.mxu1 %v6652_v35 }
 0x2c2   : > { %3565 = vmatprep.subr.bf16.mxu1 %v6661_v38 }
 0x2c5   : > { %3566 = vmatpush1.bf16.msra.mxu1 %v6660_v43 }
 0x2c8   : > { %3568 = vmatmul.mubr.bf16.vlgmr.msra.gmra.mrb[32].mxu1 %v8617_v37  ;;  %v9033_v37 = vrot.slane %v8949_v21, %v1726_v40  ;;  %v9088_v40 = vld [vmem:[#allocation8 + $0x10] sm:$0xff] }
 0x2c9   : > { %3577 = vmatprep.mubr.bf16.mxu1 %v8619_v39 }
 0x2d0   : > { %3578 = vmatmul.mubr.bf16.gmra.mrb[36].mxu1 %v8627_v55 }
 0x2d1   : > { %3587 = vmatprep.mubr.bf16.mxu1 %v8629_v57 }
 0x2d8   : > { %v3972_v2 = vpop.permute.xlu0 %3971  ;;  %3588 = vmatmul.mubr.bf16.gmra.mrb[40].mxu1 %v8637_v8 }
 0x2d9   : > { %7316 = vmatprep.subr.msk.bf16.mxu0 %vm3696_vm0, %v3972_v2  ;;  %v3992_v42 = vsel %vm3696_vm0, %v3972_v2, 0  ;;  %3597 = vmatprep.mubr.bf16.mxu1 %v8639_v11 }
 0x2da   : > { %6897 = vmatpush3.bf16.xpose.msra.mxu0 %v3992_v42  ;;  %v9090_v42 = vld [vmem:[#allocation8] sm:$0xff] }
 0x2dd   : > { %v3423_v39 = vpop.f32.mrb[32].mxu0 }
 0x2de   : > { %v7184_v45 = vadd.f32 %v3423_v39, %v1723_v44  ;;  %v3425_v15 = vpop.f32.mrb[33].mxu0  ;;  %v9095_v39 = vld [vmem:[#allocation8 + $0x8] sm:$0xff] }
 0x2df   : > { %v7185_v46 = vadd.f32 %v3425_v15, %v9033_v37  ;;  %v3427_v47 = vpop.f32.mrb[34].mxu0 }
 0x2e0   : > { %v3974_v55 = vpop.permute.xlu0 %3973  ;;  %v7186_v57 = vadd.f32 %v3427_v47, %v1723_v44  ;;  %v3429_v50 = vpop.f32.mrb[35].mxu0  ;;  %3598 = vmatmul.mubr.bf16.gmra.mrb[44].mxu1 %v8645_v22 }
 0x2e1   : > { %7317 = vmatprep.subr.msk.bf16.mxu0 %vm3696_vm0, %v3974_v55  ;;  %v3995_v48 = vsel %vm3696_vm0, %v3974_v55, 0  ;;  %v7187_v21 = vadd.f32 %v3429_v50, %v9033_v37  ;;  %v9102_v55 = vld [vmem:[#allocation8 + $0x18] sm:$0xff] }
 0x2e2   : > { %6899 = vmatpush3.bf16.xpose.msra.mxu0 %v3995_v48  ;;  %v9041_v53 = vpack.c.bf16 %v7186_v57, %v7184_v45  ;;  %v9109_v48 = vld [vmem:[#allocation8 + $0x30] sm:$0xff] }
 0x2e3   : > { %v9043_v51 = vpack.c.bf16 %v7187_v21, %v7185_v46 }
 0x2e4   : > { %v3960_v52 = vpop.permute.xlu0 %3959  ;;  %6880 = vmatprep.subr.bf16.mxu1 %v9041_v53 }
 0x2e5   : > { %6904 = vmatprep.mubr.msk.bf16.mxu0 %vm3696_vm0, %v3960_v52  ;;  %v3433_v8 = vpop.f32.mrb[36].mxu0  ;;  %6881 = vmatpush3.bf16.msra.mxu1 %v9041_v53 }
 0x2e6   : > { %v7188_v11 = vadd.f32 %v3433_v8, %v1723_v44  ;;  %v3435_v56 = vpop.f32.mrb[37].mxu0 }
 0x2e7   : > { %v7189_v23 = vadd.f32 %v3435_v56, %v9033_v37  ;;  %v3437_v27 = vpop.f32.mrb[38].mxu0 }
 0x2e8   : > { %v3976_v60 = vpop.permute.xlu1 %3975  ;;  %v7190_v62 = vadd.f32 %v3437_v27, %v1723_v44  ;;  %v3439_v63 = vpop.f32.mrb[39].mxu0  ;;  %v9121_v27 = vld [vmem:[#allocation8 + $0x28] sm:$0xff] }
 0x2e9   : > { %7318 = vmatprep.subr.msk.bf16.mxu0 %vm3696_vm0, %v3976_v60  ;;  %v3998_v1 = vsel %vm3696_vm0, %v3976_v60, 0  ;;  %v7191_v3 = vadd.f32 %v3439_v63, %v9033_v37  ;;  %v3964_v34 = vpop.permute.xlu0 %3963 }
 0x2ea   : > { %6901 = vmatpush3.bf16.xpose.msra.mxu0 %v3998_v1  ;;  %v9053_v4 = vpack.c.bf16 %v7190_v62, %v7188_v11  ;;  %v9116_v11 = vld [vmem:[#allocation8 + $0x20] sm:$0xff] }
 0x2eb   : > { %v9055_v5 = vpack.c.bf16 %v7191_v3, %v7189_v23 }
 0x2ec   : > { %6882 = vmatprep.subr.bf16.mxu1 %v9053_v4 }
 0x2ed   : > { %v3443_v7 = vpop.f32.mrb[40].mxu0  ;;  %6883 = vmatpush3.bf16.msra.mxu1 %v9053_v4 }
 0x2ee   : > { %v7192_v22 = vadd.f32 %v3443_v7, %v1723_v44  ;;  %v3445_v12 = vpop.f32.mrb[41].mxu0  ;;  %v9130_v7 = vld [vmem:[#allocation8 + $0x38] sm:$0xff] }
 0x2ef   : > { %v7193_v13 = vadd.f32 %v3445_v12, %v9033_v37  ;;  %v3447_v6 = vpop.f32.mrb[42].mxu0 }
 0x2f0   : > { %v3978_v14 = vpop.permute.xlu1 %3977  ;;  %v7194_v9 = vadd.f32 %v3447_v6, %v1723_v44  ;;  %v3449_v17 = vpop.f32.mrb[43].mxu0 }
 0x2f1   : > { %7319 = vmatprep.subr.msk.bf16.mxu0 %vm3696_vm0, %v3978_v14  ;;  %v4001_v19 = vsel %vm3696_vm0, %v3978_v14, 0  ;;  %v7195_v24 = vadd.f32 %v3449_v17, %v9033_v37 }
 0x2f2   : > { %6903 = vmatpush3.bf16.xpose.msra.mxu0 %v4001_v19  ;;  %v9063_v26 = vpack.c.bf16 %v7194_v9, %v7192_v22 }
 0x2f3   : > { %6944 = vmatprep.subr.bf16.mxu0 %v9043_v51  ;;  %v9066_v28 = vpack.c.bf16 %v7195_v24, %v7193_v13 }
 0x2f4   : > { %6884 = vmatprep.subr.bf16.mxu1 %v9063_v26  ;;  %v3962_v54 = vpop.permute.xlu1 %3961 }
 0x2f5   : > { %v3453_v29 = vpop.f32.mrb[44].mxu0  ;;  %6885 = vmatpush3.bf16.msra.mxu1 %v9063_v26 }
 0x2f6   : > { %v7196_v31 = vadd.f32 %v3453_v29, %v1723_v44  ;;  %v3455_v36 = vpop.f32.mrb[45].mxu0 }
 0x2f7   : > { %v7197_v18 = vadd.f32 %v3455_v36, %v9033_v37  ;;  %v3457_v32 = vpop.f32.mrb[46].mxu0 }
 0x2f8   : > { %v7198_v10 = vadd.f32 %v3457_v32, %v1723_v44  ;;  %v3459_v61 = vpop.f32.mrb[47].mxu0  ;;  %v3966_v30 = vpop.permute.xlu1 %3965 }
 0x2f9   : > { %6905 = vmatmul.mubr.msk.bf16.vlgmr.msra.gmra.mrb[56].mxu0 %vm3696_vm0, %v3962_v54  ;;  %v7199_v35 = vadd.f32 %v3459_v61, %v9033_v37 }
 0x2fa   : > { %6908 = vmatprep.mubr.msk.bf16.mxu0 %vm3696_vm0, %v3964_v34  ;;  %6945 = vmatpush3.bf16.msra.mxu0 %v9043_v51  ;;  %v9075_v38 = vpack.c.bf16 %v7198_v10, %v7196_v31 }
 0x2fb   : > { %v9077_v43 = vpack.c.bf16 %v7199_v35, %v7197_v18  ;;  %6946 = vmatprep.subr.bf16.mxu0 %v9055_v5 }
 0x2fc   : > { %6886 = vmatprep.subr.bf16.mxu1 %v9075_v38 }
 0x2fd   : > { %6887 = vmatpush3.bf16.msra.mxu1 %v9075_v38 }
 0x2fe   : > { %6947 = vmatpush3.bf16.msra.mxu0 %v9055_v5 }
 0x2ff   : > { %6948 = vmatprep.subr.bf16.mxu0 %v9066_v28 }
 0x301   : > { %6909 = vmatmul.mubr.msk.bf16.gmra.mrb[60].mxu0 %vm3696_vm0, %v3966_v30 }
 0x302   : > { %6949 = vmatpush3.bf16.msra.mxu0 %v9066_v28 }
 0x303   : > { %6950 = vmatprep.subr.bf16.mxu0 %v9077_v43 }
 0x306   : > { %6951 = vmatpush3.bf16.msra.mxu0 %v9077_v43 }
 0x359   : > { %v6874_v2 = vpop.f32.mrb[48].mxu0 }
 0x35a   : > { %v9093_v44 = vadd.f32 %v6874_v2, %v9088_v40  ;;  %v3755_v37 = vpop.f32.mrb[49].mxu0 }
 0x35b   : > { %v6875_v45 = vpop.f32.mrb[50].mxu0  ;;  %v9098_v15 = vadd.f32 %v3755_v37, %v9090_v42 }
 0x35c   : > { %v3758_v46 = vpop.f32.mrb[51].mxu0  ;;  %v3792_v47 = vsel %vm3696_vm0, %v9093_v44, -inf  ;;  %v9112_v21 = vadd.f32 %v6875_v45, %v9102_v55 }
 0x35d   : > { %v9105_v57 = vadd.f32 %v3758_v46, %v9095_v39  ;;  %3793 = vmax.xlane.f32.xlu0 %v3792_v47  ;;  %v3786_v52 = vsel %vm3696_vm0, %v9098_v15, -inf }
 0x35e   : > { %v3795_v3 = vsel %vm3696_vm0, %v9112_v21, -inf }
 0x35f   : > { %v3789_v50 = vsel %vm3696_vm0, %v9105_v57, -inf }
 0x360   : > { %3790 = vmax.xlane.f32.xlu1 %v3789_v50 }
 0x361   : > { %v6878_v8 = vpop.f32.mrb[52].mxu0  ;;  %3787 = vmax.xlane.f32.xlu0 %v3786_v52 }
 0x362   : > { %v9119_v56 = vadd.f32 %v6878_v8, %v9109_v48  ;;  %v3771_v23 = vpop.f32.mrb[53].mxu0 }
 0x363   : > { %v6879_v60 = vpop.f32.mrb[54].mxu0  ;;  %v9124_v62 = vadd.f32 %v3771_v23, %v9116_v11 }
 0x364   : > { %v3774_v63 = vpop.f32.mrb[55].mxu0  ;;  %v3804_v1 = vsel %vm3696_vm0, %v9119_v56, -inf  ;;  %v3783_v13 = vadd.f32 %v6879_v60, %v9130_v7 }
 0x365   : > { %v3775_v22 = vadd.f32 %v3774_v63, %v9121_v27  ;;  %3805 = vmax.xlane.f32.xlu1 %v3804_v1  ;;  %3796 = vmax.xlane.f32.xlu0 %v3795_v3  ;;  %v3798_v6 = vsel %vm3696_vm0, %v9124_v62, -inf }
 0x366   : > { %v3807_v14 = vsel %vm3696_vm0, %v3783_v13, -inf }
 0x367   : > { %v3801_v12 = vsel %vm3696_vm0, %v3775_v22, -inf }
 0x369   : > { %3799 = vmax.xlane.f32.xlu1 %v3798_v6  ;;  %3802 = vmax.xlane.f32.xlu0 %v3801_v12 }
 0x36d   : > { %3808 = vmax.xlane.f32.xlu0 %v3807_v14 }
 0x3cc   : > { %v6906_v9 = vpop.f32.mrb[56].mxu0 }
 0x3cd   : > { %v9139_v17 = vadd.f32 %v6906_v9, %v9088_v40  ;;  %v4037_v19 = vpop.f32.mrb[57].mxu0 }
 0x3ce   : > { %v6907_v24 = vpop.f32.mrb[58].mxu0  ;;  %v9142_v29 = vadd.f32 %v4037_v19, %v9090_v42 }
 0x3cf   : > { %v4040_v31 = vpop.f32.mrb[59].mxu0  ;;  %v4074_v36 = vsel %vm3696_vm0, %v9139_v17, -inf  ;;  %v9150_v32 = vadd.f32 %v6907_v24, %v9102_v55 }
 0x3d0   : > { %v9147_v18 = vadd.f32 %v4040_v31, %v9095_v39  ;;  %4075 = vmax.xlane.f32.xlu1 %v4074_v36  ;;  %v4068_v10 = vsel %vm3696_vm0, %v9142_v29, -inf }
 0x3d1   : > { %v4077_v2 = vsel %vm3696_vm0, %v9150_v32, -inf }
 0x3d2   : > { %v4071_v54 = vsel %vm3696_vm0, %v9147_v18, -inf }
 0x3d3   : > { %4072 = vmax.xlane.f32.xlu0 %v4071_v54 }
 0x3d4   : > { %v6910_v61 = vpop.f32.mrb[60].mxu0  ;;  %4069 = vmax.xlane.f32.xlu1 %v4068_v10 }
 0x3d5   : > { %v9157_v34 = vadd.f32 %v6910_v61, %v9109_v48  ;;  %v4053_v35 = vpop.f32.mrb[61].mxu0 }
 0x3d6   : > { %v6911_v30 = vpop.f32.mrb[62].mxu0  ;;  %v9162_v37 = vadd.f32 %v4053_v35, %v9116_v11 }
 0x3d7   : > { %v4056_v45 = vpop.f32.mrb[63].mxu0  ;;  %4078 = vmax.xlane.f32.xlu0 %v4077_v2  ;;  %v4086_v46 = vsel %vm3696_vm0, %v9157_v34, -inf  ;;  %v9170_v50 = vadd.f32 %v6911_v30, %v9130_v7 }
 0x3d8   : > { %v9167_v47 = vadd.f32 %v4056_v45, %v9121_v27  ;;  %4087 = vmax.xlane.f32.xlu1 %v4086_v46  ;;  %v4080_v8 = vsel %vm3696_vm0, %v9162_v37, -inf }
 0x3d9   : > { %v4089_v23 = vsel %vm3696_vm0, %v9170_v50, -inf }
 0x3da   : > { %v4083_v52 = vsel %vm3696_vm0, %v9167_v47, -inf }
 0x3db   : > { %4084 = vmax.xlane.f32.xlu0 %v4083_v52 }
 0x3dc   : > { %4081 = vmax.xlane.f32.xlu1 %v4080_v8 }
 0x3df   : > { %4090 = vmax.xlane.f32.xlu0 %v4089_v23 }
 0x3ea   : > { %v3794_v60 = vpop.xlane.xlu0 %3793 }
 0x3eb   : > { %v3812_v36 = vsub.f32 %v9093_v44, %v3794_v60 }
 0x3ed   : > { %4164 = vrot.lane.b32.xlu1 %v9041_v53, %s8124_s13  ;;  %v3791_v1 = vpop.xlane.xlu1 %3790  ;;  %v3822_v35 = vmul.f32 1.442695, %v3812_v36  ;;  %v7876_v36 = vld [vmem:[#allocation5] sm:$0xf] }
 0x3ee   : > { %v3788_v63 = vpop.xlane.xlu0 %3787  ;;  %v3811_v3 = vsub.f32 %v9105_v57, %v3791_v1 }
 0x3ef   : > { %v3810_v30 = vsub.f32 %v9098_v15, %v3788_v63 }
 0x3f0   : > { %v3820_v9 = vmul.f32 1.442695, %v3811_v3 }
 0x3f2   : > { %v3797_v12 = vpop.xlane.xlu0 %3796  ;;  %v3806_v61 = vpop.xlane.xlu1 %3805 }
 0x3f3   : > { %v3813_v6 = vsub.f32 %v9112_v21, %v3797_v12  ;;  %v3818_v21 = vmul.f32 1.442695, %v3810_v30  ;;  %v3816_v2 = vsub.f32 %v9119_v56, %v3806_v61 }
 0x3f5   : > { %v3824_v14 = vmul.f32 1.442695, %v3813_v6 }
 0x3f6   : > { %v3803_v19 = vpop.xlane.xlu0 %3802  ;;  %v3800_v44 = vpop.xlane.xlu1 %3799 }
 0x3f7   : > { %7620 = vpow2.f32 %v3824_v14  ;;  %v3815_v24 = vsub.f32 %v3775_v22, %v3803_v19  ;;  %v3814_v46 = vsub.f32 %v9124_v62, %v3800_v44  ;;  %v1407_v19 = vpop.f32.mrb[0].mxu1 }
 0x3f8   : > { %7622 = vpow2.f32 %v3820_v9  ;;  %v10220_v9 = vsub.s32 2, %v8871_v49 }
 0x3f9   : > { %v3828_v53 = vmul.f32 1.442695, %v3815_v24  ;;  %v3826_v8 = vmul.f32 1.442695, %v3814_v46  ;;  %v10219_v24 = vsub.s32 3, %v8871_v49 }
 0x3fa   : > { %v3809_v31 = vpop.xlane.xlu0 %3808 }
 0x3fb   : > { %v3817_v54 = vsub.f32 %v3783_v13, %v3809_v31  ;;  %v3830_v13 = vmul.f32 1.442695, %v3816_v2  ;;  %v1409_v31 = vpop.f32.mrb[1].mxu1 }
 0x3fc   : > { %v1411_v61 = vpop.f32.mrb[2].mxu1 }
 0x3fd   : > { %v3832_v10 = vmul.f32 1.442695, %v3817_v54  ;;  %v505_v54 = vrot.slane %v7876_v36, %v10220_v9 }
 0x3ff   : > { %7624 = vpow2.f32 %v3832_v10  ;;  %v509_v10 = vrot.slane %v7876_v36, %v10219_v24  ;;  %v7136_v30 = vadd.f32 %v1407_v19, %v505_v54  ;;  %v7138_v2 = vadd.f32 %v1411_v61, %v505_v54 }
 0x400   : > { %7626 = vpow2.f32 %v3828_v53 }
 0x401   : > { %v9184_v57 = vpop.eup %7620  ;;  %7628 = vpow2.f32 %v3822_v35  ;;  %v1413_v35 = vpop.f32.mrb[3].mxu1  ;;  %v9224_v44 = vpack.c.bf16 %v7138_v2, %v7136_v30 }
 0x402   : > { %v3843_v22 = vsel %vm3696_vm0, %v9184_v57, 0.0  ;;  %v9189_v45 = vpop.eup %7622  ;;  %7630 = vpow2.f32 %v3818_v21  ;;  %v7137_v21 = vadd.f32 %v1409_v31, %v509_v10  ;;  %v1417_v46 = vpop.f32.mrb[4].mxu1 }
 0x403   : > { %3844 = vadd.xlane.f32.xlu0 %v3843_v22  ;;  %v3837_v15 = vsel %vm3696_vm0, %v9189_v45, 0.0  ;;  %7632 = vpow2.f32 %v3830_v13  ;;  %v7139_v22 = vadd.f32 %v1413_v35, %v509_v10 }
 0x404   : > { %7634 = vpow2.f32 %v3826_v8 }
 0x405   : > { %v9226_v13 = vpack.c.bf16 %v7139_v22, %v7137_v21 }
 0x407   : > { %3838 = vadd.xlane.f32.xlu0 %v3837_v15  ;;  %10241 = vst [vmem:[#allocation15_spill] sm:$0xff] %v9226_v13  ;;  %v7140_v15 = vadd.f32 %v1417_v46, %v505_v54 }
 0x409   : > { %v9194_v52 = vpop.eup %7624 }
 0x40a   : > { %v3855_v56 = vsel %vm3696_vm0, %v9194_v52, 0.0  ;;  %v9198_v23 = vpop.eup %7626 }
 0x40b   : > { %3856 = vadd.xlane.f32.xlu0 %v3855_v56  ;;  %v9200_v60 = vpop.eup %7628  ;;  %v3849_v62 = vsel %vm3696_vm0, %v9198_v23, 0.0  ;;  %v1419_v56 = vpop.f32.mrb[5].mxu1 }
 0x40c   : > { %v3840_v63 = vsel %vm3696_vm0, %v9200_v60, 0.0  ;;  %v9206_v1 = vpop.eup %7630  ;;  %v7141_v8 = vadd.f32 %v1419_v56, %v509_v10 }
 0x40d   : > { %v3834_v3 = vsel %vm3696_vm0, %v9206_v1, 0.0  ;;  %v9210_v12 = vpop.eup %7632 }
 0x40e   : > { %v3852_v6 = vsel %vm3696_vm0, %v9210_v12, 0.0  ;;  %v9214_v14 = vpop.eup %7634 }
 0x40f   : > { %3850 = vadd.xlane.f32.xlu0 %v3849_v62  ;;  %v3846_v53 = vsel %vm3696_vm0, %v9214_v14, 0.0  ;;  %v1421_v62 = vpop.f32.mrb[6].mxu1 }
 0x411   : > { %3841 = vadd.xlane.f32.xlu1 %v3840_v63  ;;  %v7142_v63 = vadd.f32 %v1421_v62, %v505_v54 }
 0x413   : > { %v9228_v24 = vpack.c.bf16 %v7142_v63, %v7140_v15 }
 0x415   : > { %3835 = vadd.xlane.f32.xlu1 %v3834_v3  ;;  %v1423_v3 = vpop.f32.mrb[7].mxu1  ;;  %10242 = vst [vmem:[#allocation16_spill] sm:$0xff] %v9228_v24 }
 0x416   : > { %v1427_v36 = vpop.f32.mrb[8].mxu1 }
 0x417   : > { %v1429_v19 = vpop.f32.mrb[9].mxu1 }
 0x418   : > { %v7145_v61 = vadd.f32 %v1429_v19, %v509_v10  ;;  %v1431_v35 = vpop.f32.mrb[10].mxu1 }
 0x419   : > { %3853 = vadd.xlane.f32.xlu1 %v3852_v6  ;;  %v7143_v6 = vadd.f32 %v1423_v3, %v509_v10  ;;  %v7146_v30 = vadd.f32 %v1431_v35, %v505_v54  ;;  %v1433_v21 = vpop.f32.mrb[11].mxu1 }
 0x41a   : > { %v7147_v2 = vadd.f32 %v1433_v21, %v509_v10  ;;  %v1437_v22 = vpop.f32.mrb[12].mxu1 }
 0x41b   : > { %v9230_v31 = vpack.c.bf16 %v7143_v6, %v7141_v8  ;;  %v7148_v56 = vadd.f32 %v1437_v22, %v505_v54  ;;  %v1439_v9 = vpop.f32.mrb[13].mxu1 }
 0x41c   : > { %v9234_v62 = vpack.c.bf16 %v7147_v2, %v7145_v61  ;;  %v7149_v3 = vadd.f32 %v1439_v9, %v509_v10  ;;  %v1441_v13 = vpop.f32.mrb[14].mxu1 }
 0x41d   : > { %3847 = vadd.xlane.f32.xlu1 %v3846_v53  ;;  %v7144_v53 = vadd.f32 %v1427_v36, %v505_v54  ;;  %10243 = vst [vmem:[#allocation17_spill] sm:$0xff] %v9230_v31  ;;  %v7150_v15 = vadd.f32 %v1441_v13, %v505_v54  ;;  %v1443_v63 = vpop.f32.mrb[15].mxu1 }
 0x41e   : > { %10244 = vst [vmem:[#allocation18_spill] sm:$0xff] %v9234_v62  ;;  %v7151_v36 = vadd.f32 %v1443_v63, %v509_v10 }
 0x41f   : > { %v9232_v46 = vpack.c.bf16 %v7146_v30, %v7144_v53  ;;  %v9236_v24 = vpack.c.bf16 %v7150_v15, %v7148_v56 }
 0x420   : > { %v9238_v8 = vpack.c.bf16 %v7151_v36, %v7149_v3 }
 0x421   : > { %10245 = vst [vmem:[#allocation19_spill] sm:$0xff] %v9236_v24 }
 0x422   : > { %10246 = vst [vmem:[#allocation20_spill] sm:$0xff] %v9238_v8 }
 0x45d   : > { %v4076_v6 = vpop.xlane.xlu1 %4075 }
 0x45e   : > { %v4094_v19 = vsub.f32 %v9139_v17, %v4076_v6 }
 0x460   : > { %v4104_v35 = vmul.f32 1.442695, %v4094_v19  ;;  %v4073_v21 = vpop.xlane.xlu0 %4072 }
 0x461   : > { %v4070_v53 = vpop.xlane.xlu1 %4069  ;;  %v4093_v61 = vsub.f32 %v9147_v18, %v4073_v21 }
 0x462   : > { %7636 = vpow2.f32 %v4104_v35  ;;  %v4092_v30 = vsub.f32 %v9142_v29, %v4070_v53 }
 0x463   : > { %v4102_v13 = vmul.f32 1.442695, %v4093_v61  ;;  %v9274_v61 = vld [vmem:[%s10213_s4] sm:$0xff] }
 0x464   : > { %v4100_v9 = vmul.f32 1.442695, %v4092_v30  ;;  %v4079_v2 = vpop.xlane.xlu0 %4078 }
 0x465   : > { %v4095_v54 = vsub.f32 %v9150_v32, %v4079_v2  ;;  %v4088_v10 = vpop.xlane.xlu1 %4087  ;;  %v10248_v2 = vsub.s32 3, %v8871_v49 }
 0x466   : > { %7638 = vpow2.f32 %v4100_v9  ;;  %v4098_v8 = vsub.f32 %v9157_v34, %v4088_v10 }
 0x467   : > { %v4106_v22 = vmul.f32 1.442695, %v4095_v54 }
 0x468   : > { %v4085_v19 = vpop.xlane.xlu0 %4084 }
 0x469   : > { %7640 = vpow2.f32 %v4106_v22  ;;  %v4082_v56 = vpop.xlane.xlu1 %4081  ;;  %v4097_v53 = vsub.f32 %v9167_v47, %v4085_v19 }
 0x46a   : > { %7642 = vpow2.f32 %v4102_v13  ;;  %v4096_v30 = vsub.f32 %v9162_v37, %v4082_v56 }
 0x46b   : > { %v4110_v47 = vmul.f32 1.442695, %v4097_v53 }
 0x46c   : > { %v9244_v17 = vpop.eup %7636  ;;  %v4091_v35 = vpop.xlane.xlu0 %4090 }
 0x46d   : > { %v9246_v3 = vpop.permute.xlu1 %4164  ;;  %v4122_v29 = vsel %vm3696_vm0, %v9244_v17, 0.0  ;;  %7644 = vpow2.f32 %v4110_v47 }
 0x46e   : > { %6912 = vmatprep.subr.bf16.mxu1 %v9246_v3  ;;  %4123 = vadd.xlane.f32.xlu1 %v4122_v29 }
 0x470   : > { %v9251_v18 = vpop.eup %7638 }
 0x471   : > { %v4116_v32 = vsel %vm3696_vm0, %v9251_v18, 0.0 }
 0x472   : > { %4117 = vadd.xlane.f32.xlu1 %v4116_v32 }
 0x473   : > { %v9255_v15 = vpop.eup %7640 }
 0x474   : > { %v4125_v63 = vsel %vm3696_vm0, %v9255_v15, 0.0  ;;  %v9259_v36 = vpop.eup %7642 }
 0x475   : > { %4126 = vadd.xlane.f32.xlu0 %v4125_v63  ;;  %v4119_v6 = vsel %vm3696_vm0, %v9259_v36, 0.0  ;;  %v4108_v63 = vmul.f32 1.442695, %v4096_v30 }
 0x477   : > { %7646 = vpow2.f32 %v4108_v63  ;;  %v9296_v47 = vpop.eup %7644 }
 0x479   : > { %4120 = vadd.xlane.f32.xlu0 %v4119_v6 }
 0x483   : > { %4168 = vrot.lane.b32.xlu1 %v9063_v26, %s8124_s13  ;;  %v10247_v26 = vsub.s32 2, %v8871_v49 }
 0x485   : > { %v9279_v9 = vrot.slane %v9274_v61, %v10247_v26 }
 0x487   : > { %4170 = vrot.lane.b32.xlu1 %v9075_v38, %s8124_s13  ;;  %v3277_v38 = vpop.f32.mrb[16].mxu1 }
 0x488   : > { %v3279_v54 = vpop.f32.mrb[17].mxu1  ;;  %v7168_v37 = vadd.f32 %v3277_v38, %v9279_v9  ;;  %v4099_v38 = vsub.f32 %v9170_v50, %v4091_v35 }
 0x489   : > { %v3281_v22 = vpop.f32.mrb[18].mxu1 }
 0x48a   : > { %v7170_v29 = vadd.f32 %v3281_v22, %v9279_v9  ;;  %v3283_v32 = vpop.f32.mrb[19].mxu1  ;;  %v3626_v6 = vmul.f32 0.125, %v7168_v37  ;;  %v4112_v22 = vmul.f32 1.442695, %v4098_v8  ;;  %v4114_v37 = vmul.f32 1.442695, %v4099_v38 }
 0x48b   : > { %v4131_v8 = vsel %vm3696_vm0, %v9296_v47, 0.0 }
 0x48f   : > { %4166 = vrot.lane.b32.xlu0 %v9053_v4, %s8124_s13  ;;  %v9284_v4 = vrot.slane %v9274_v61, %v10248_v2  ;;  %v3630_v2 = vmul.f32 0.125, %v7170_v29 }
 0x490   : > { %v3845_v21 = vpop.xlane.xlu0 %3844 }
 0x491   : > { %v7169_v13 = vadd.f32 %v3279_v54, %v9284_v4  ;;  %v7171_v26 = vadd.f32 %v3283_v32, %v9284_v4  ;;  %v9291_v31 = vpack.c.bf16 %v3630_v2, %v3626_v6 }
 0x493   : > { %v3627_v19 = vmul.f32 0.125, %v7169_v13  ;;  %v3631_v62 = vmul.f32 0.125, %v7171_v26  ;;  %v9298_v13 = vpop.eup %7646 }
 0x494   : > { %v3839_v56 = vpop.xlane.xlu0 %3838  ;;  %v4128_v32 = vsel %vm3696_vm0, %v9298_v13, 0.0 }
 0x495   : > { %v9294_v54 = vpack.c.bf16 %v3631_v62, %v3627_v19 }
 0x498   : > { %v3857_v24 = vpop.xlane.xlu0 %3856 }
 0x49c   : > { %v3851_v34 = vpop.xlane.xlu0 %3850 }
 0x49e   : > { %v3842_v53 = vpop.xlane.xlu1 %3841 }
 0x49f   : > { %7648 = vrcp.f32 %v3842_v53 }
 0x4a0   : > { %7650 = vrcp.f32 %v3839_v56 }
 0x4a1   : > { %7652 = vrcp.f32 %v3845_v21 }
 0x4a2   : > { %v3836_v30 = vpop.xlane.xlu1 %3835 }
 0x4a3   : > { %7654 = vrcp.f32 %v3836_v30 }
 0x4a4   : > { %7656 = vpow2.f32 %v4112_v22 }
 0x4a5   : > { %7658 = vpow2.f32 %v4114_v37 }
 0x4a6   : > { %v3854_v10 = vpop.xlane.xlu1 %3853 }
 0x4a7   : > { %7660 = vrcp.f32 %v3854_v10 }
 0x4a8   : > { %7662 = vrcp.f32 %v3851_v34 }
 0x4a9   : > { %v7649_v50 = vpop.eup %7648  ;;  %7664 = vrcp.f32 %v3857_v24 }
 0x4aa   : > { %v3848_v62 = vpop.xlane.xlu1 %3847  ;;  %v7651_v35 = vpop.eup %7650  ;;  %v3868_v29 = vmul.f32 %v7649_v50, %v9200_v60 }
 0x4ab   : > { %7666 = vrcp.f32 %v3848_v62  ;;  %4132 = vadd.xlane.f32.xlu1 %v4131_v8  ;;  %v7653_v21 = vpop.eup %7652  ;;  %v3867_v24 = vmul.f32 %v7651_v35, %v9189_v45 }
 0x4ac   : > { %v3869_v19 = vmul.f32 %v7653_v21, %v9184_v57 }
 0x4ad   : > { %v7655_v56 = vpop.eup %7654 }
 0x4ae   : > { %v9305_v63 = vpop.eup %7656  ;;  %4129 = vadd.xlane.f32.xlu0 %v4128_v32  ;;  %v3866_v6 = vmul.f32 %v7655_v56, %v9206_v1  ;;  %v3875_v53 = vpack.c.bf16 %v3869_v19, %v3868_v29 }
 0x4af   : > { %v9310_v2 = vpop.eup %7658  ;;  %v4134_v38 = vsel %vm3696_vm0, %v9305_v63, 0.0 }
 0x4b0   : > { %v3874_v26 = vpack.c.bf16 %v3867_v24, %v3866_v6  ;;  %v4137_v57 = vsel %vm3696_vm0, %v9310_v2, 0.0 }
 0x4b1   : > { %v7661_v60 = vpop.eup %7660 }
 0x4b2   : > { %4135 = vadd.xlane.f32.xlu0 %v4134_v38  ;;  %6888 = vmatprep.mubr.msk.bf16.mxu1 %vm3696_vm0, %v3874_v26  ;;  %v7663_v22 = vpop.eup %7662  ;;  %v3872_v1 = vmul.f32 %v7661_v60, %v9210_v12 }
 0x4b3   : > { %6889 = vmatmul.mubr.msk.bf16.vlgmr.msra.gmra.mrb[48].mxu1 %vm3696_vm0, %v3875_v53  ;;  %v7665_v30 = vpop.eup %7664  ;;  %v3871_v34 = vmul.f32 %v7663_v22, %v9198_v23 }
 0x4b4   : > { %6913 = vmatpush3.bf16.msra.mxu1 %v9246_v3  ;;  %v3873_v10 = vmul.f32 %v7665_v30, %v9194_v52  ;;  %v3287_v3 = vpop.f32.mrb[20].mxu1 }
 0x4b5   : > { %v7667_v45 = vpop.eup %7666  ;;  %v7172_v8 = vadd.f32 %v3287_v3, %v9279_v9  ;;  %v3289_v35 = vpop.f32.mrb[21].mxu1 }
 0x4b6   : > { %4138 = vadd.xlane.f32.xlu0 %v4137_v57  ;;  %v3870_v37 = vmul.f32 %v7667_v45, %v9214_v14  ;;  %v3877_v62 = vpack.c.bf16 %v3873_v10, %v3872_v1  ;;  %v7173_v21 = vadd.f32 %v3289_v35, %v9284_v4  ;;  %v3291_v12 = vpop.f32.mrb[22].mxu1 }
 0x4b7   : > { %v3634_v56 = vmul.f32 0.125, %v7172_v8  ;;  %v7174_v14 = vadd.f32 %v3291_v12, %v9279_v9  ;;  %v3293_v29 = vpop.f32.mrb[23].mxu1 }
 0x4b8   : > { %v3876_v50 = vpack.c.bf16 %v3871_v34, %v3870_v37  ;;  %v3635_v23 = vmul.f32 0.125, %v7173_v21  ;;  %v7175_v52 = vadd.f32 %v3293_v29, %v9284_v4  ;;  %v3297_v32 = vpop.f32.mrb[24].mxu1 }
 0x4b9   : > { %v3638_v6 = vmul.f32 0.125, %v7174_v14  ;;  %v7176_v24 = vadd.f32 %v3297_v32, %v9279_v9  ;;  %v3299_v19 = vpop.f32.mrb[25].mxu1 }
 0x4ba   : > { %6892 = vmatprep.mubr.msk.bf16.mxu1 %vm3696_vm0, %v3876_v50  ;;  %v3639_v26 = vmul.f32 0.125, %v7175_v52  ;;  %v7177_v53 = vadd.f32 %v3299_v19, %v9284_v4  ;;  %v3301_v38 = vpop.f32.mrb[26].mxu1 }
 0x4bb   : > { %6893 = vmatmul.mubr.msk.bf16.gmra.mrb[52].mxu1 %vm3696_vm0, %v3877_v62  ;;  %v9331_v60 = vpack.c.bf16 %v3638_v6, %v3634_v56  ;;  %v3642_v22 = vmul.f32 0.125, %v7176_v24  ;;  %v7178_v30 = vadd.f32 %v3301_v38, %v9279_v9  ;;  %v3303_v45 = vpop.f32.mrb[27].mxu1  ;;  %v1734_v38 = vsub.s32 7, %v8871_v49 }
 0x4bc   : > { %v9334_v57 = vpack.c.bf16 %v3639_v26, %v3635_v23  ;;  %v3643_v1 = vmul.f32 0.125, %v7177_v53  ;;  %v7179_v37 = vadd.f32 %v3303_v45, %v9284_v4  ;;  %v3307_v62 = vpop.f32.mrb[28].mxu1  ;;  %v1730_v26 = vsub.s32 6, %v8871_v49 }
 0x4bd   : > { %v3646_v34 = vmul.f32 0.125, %v7178_v30  ;;  %v7180_v8 = vadd.f32 %v3307_v62, %v9279_v9  ;;  %v3309_v35 = vpop.f32.mrb[29].mxu1 }
 0x4be   : > { %v3647_v10 = vmul.f32 0.125, %v7179_v37  ;;  %v7181_v21 = vadd.f32 %v3309_v35, %v9284_v4  ;;  %v3311_v12 = vpop.f32.mrb[30].mxu1  ;;  %v1731_v30 = vrot.slane %v9274_v61, %v1730_v26 }
 0x4bf   : > { %v9337_v50 = vpack.c.bf16 %v3646_v34, %v3642_v22  ;;  %v3650_v56 = vmul.f32 0.125, %v7180_v8  ;;  %v7182_v14 = vadd.f32 %v3311_v12, %v9279_v9  ;;  %v3313_v29 = vpop.f32.mrb[31].mxu1  ;;  %v1735_v9 = vrot.slane %v9274_v61, %v1734_v38 }
 0x4c0   : > { %v9339_v3 = vpack.c.bf16 %v3647_v10, %v3643_v1  ;;  %v3651_v23 = vmul.f32 0.125, %v7181_v21  ;;  %v7183_v52 = vadd.f32 %v3313_v29, %v9284_v4  ;;  %v3569_v53 = vpop.f32.mrb[32].mxu1 }
 0x4c1   : > { %v3654_v32 = vmul.f32 0.125, %v7182_v14  ;;  %v3571_v22 = vpop.f32.mrb[33].mxu1  ;;  %v7200_v37 = vadd.f32 %v3569_v53, %v1731_v30 }
 0x4c2   : > { %v3655_v6 = vmul.f32 0.125, %v7183_v52  ;;  %v3573_v45 = vpop.f32.mrb[34].mxu1  ;;  %v7201_v4 = vadd.f32 %v3571_v22, %v1735_v9 }
 0x4c3   : > { %v9345_v24 = vpack.c.bf16 %v3654_v32, %v3650_v56  ;;  %v3575_v1 = vpop.f32.mrb[35].mxu1  ;;  %v7202_v34 = vadd.f32 %v3573_v45, %v1731_v30 }
 0x4c4   : > { %v9347_v19 = vpack.c.bf16 %v3655_v6, %v3651_v23  ;;  %v7203_v10 = vadd.f32 %v3575_v1, %v1735_v9  ;;  %v3579_v62 = vpop.f32.mrb[36].mxu1 }
 0x4c5   : > { %v7204_v8 = vadd.f32 %v3579_v62, %v1731_v30  ;;  %v3581_v35 = vpop.f32.mrb[37].mxu1  ;;  %v9353_v21 = vpack.c.bf16 %v7202_v34, %v7200_v37 }
 0x4c6   : > { %v9355_v12 = vpack.c.bf16 %v7203_v10, %v7201_v4  ;;  %v7205_v56 = vadd.f32 %v3581_v35, %v1735_v9  ;;  %v3583_v49 = vpop.f32.mrb[38].mxu1 }
 0x4c7   : > { %v7206_v14 = vadd.f32 %v3583_v49, %v1731_v30  ;;  %v3585_v29 = vpop.f32.mrb[39].mxu1 }
 0x4c8   : > { %v7207_v23 = vadd.f32 %v3585_v29, %v1735_v9  ;;  %v3589_v52 = vpop.f32.mrb[40].mxu1 }
 0x4c9   : > { %v9357_v61 = vpack.c.bf16 %v7206_v14, %v7204_v8  ;;  %v7208_v32 = vadd.f32 %v3589_v52, %v1731_v30  ;;  %v3591_v6 = vpop.f32.mrb[41].mxu1 }
 0x4ca   : > { %v9359_v26 = vpack.c.bf16 %v7207_v23, %v7205_v56  ;;  %v7209_v53 = vadd.f32 %v3591_v6, %v1735_v9  ;;  %v3593_v38 = vpop.f32.mrb[42].mxu1 }
 0x4cb   : > { %v7210_v22 = vadd.f32 %v3593_v38, %v1731_v30  ;;  %v3595_v45 = vpop.f32.mrb[43].mxu1 }
 0x4cc   : > { %v7211_v1 = vadd.f32 %v3595_v45, %v1735_v9  ;;  %v3599_v37 = vpop.f32.mrb[44].mxu1 }
 0x4cd   : > { %v9361_v4 = vpack.c.bf16 %v7210_v22, %v7208_v32  ;;  %v7212_v34 = vadd.f32 %v3599_v37, %v1731_v30  ;;  %v3601_v10 = vpop.f32.mrb[45].mxu1 }
 0x4ce   : > { %v9363_v62 = vpack.c.bf16 %v7211_v1, %v7209_v53  ;;  %v7213_v35 = vadd.f32 %v3601_v10, %v1735_v9  ;;  %v3603_v49 = vpop.f32.mrb[46].mxu1 }
 0x4cf   : > { %v7214_v8 = vadd.f32 %v3603_v49, %v1731_v30  ;;  %v3605_v14 = vpop.f32.mrb[47].mxu1 }
 0x4d0   : > { %v7215_v29 = vadd.f32 %v3605_v14, %v1735_v9 }
 0x4d1   : > { %v9365_v52 = vpack.c.bf16 %v7214_v8, %v7212_v34 }
 0x4d2   : > { %v9367_v56 = vpack.c.bf16 %v7215_v29, %v7213_v35 }
 0x4fb   : > { %v4124_v23 = vpop.xlane.xlu1 %4123 }
 0x4ff   : > { %v4118_v6 = vpop.xlane.xlu1 %4117 }
 0x502   : > { %v4127_v38 = vpop.xlane.xlu0 %4126 }
 0x503   : > { %7668 = vrcp.f32 %v4127_v38  ;;  %v4169_v22 = vpop.permute.xlu1 %4168 }
 0x504   : > { %7670 = vrcp.f32 %v4118_v6 }
 0x505   : > { %7672 = vrcp.f32 %v4124_v23 }
 0x506   : > { %v4121_v32 = vpop.xlane.xlu0 %4120 }
 0x507   : > { %7674 = vrcp.f32 %v4121_v32  ;;  %v4171_v1 = vpop.permute.xlu1 %4170 }
 0x50a   : > { %v4167_v53 = vpop.permute.xlu0 %4166 }
 0x50b   : > { %6914 = vmatprep.subr.bf16.mxu1 %v4167_v53 }
 0x50c   : > { %6915 = vmatpush3.bf16.msra.mxu1 %v4167_v53 }
 0x50d   : > { %6916 = vmatprep.subr.bf16.mxu1 %v4169_v22  ;;  %v7669_v30 = vpop.eup %7668 }
 0x50e   : > { %v7671_v45 = vpop.eup %7670  ;;  %v4151_v34 = vmul.f32 %v7669_v30, %v9255_v15  ;;  %v4266_v15 = vsel %vm3696_vm0, %v8967_v0, 0 }
 0x50f   : > { %v7673_v9 = vpop.eup %7672  ;;  %v4148_v10 = vmul.f32 %v7671_v45, %v9251_v18  ;;  %v4272_v18 = vsel %vm3696_vm0, %v8989_v25, 0 }
 0x510   : > { %6917 = vmatpush3.bf16.msra.mxu1 %v4169_v22  ;;  %v4150_v49 = vmul.f32 %v7673_v9, %v9244_v17  ;;  %v4269_v17 = vsel %vm3696_vm0, %v8978_v16, 0 }
 0x511   : > { %v7675_v37 = vpop.eup %7674  ;;  %6918 = vmatprep.subr.bf16.mxu1 %v4171_v1 }
 0x512   : > { %v4149_v35 = vmul.f32 %v7675_v37, %v9259_v36  ;;  %v4157_v14 = vpack.c.bf16 %v4151_v34, %v4150_v49  ;;  %v4275_v36 = vsel %vm3696_vm0, %v9000_v59, 0 }
 0x514   : > { %6919 = vmatpush3.bf16.msra.mxu1 %v4171_v1  ;;  %v4156_v8 = vpack.c.bf16 %v4149_v35, %v4148_v10 }
 0x515   : > { %7320 = vmatprep.subr.msk.bf16.mxu1 %vm3696_vm0, %v8967_v0 }
 0x516   : > { %6920 = vmatprep.mubr.msk.bf16.mxu1 %vm3696_vm0, %v4156_v8 }
 0x517   : > { %6921 = vmatmul.mubr.msk.bf16.vlgmr.msra.gmra.mrb[56].mxu1 %vm3696_vm0, %v4157_v14 }
 0x51d   : > { %6929 = vmatpush3.bf16.xpose.msra.mxu1 %v4266_v15 }
 0x51e   : > { %7321 = vmatprep.subr.msk.bf16.mxu1 %vm3696_vm0, %v8978_v16 }
 0x525   : > { %6931 = vmatpush3.bf16.xpose.msra.mxu1 %v4269_v17 }
 0x526   : > { %7322 = vmatprep.subr.msk.bf16.mxu1 %vm3696_vm0, %v8989_v25 }
 0x52d   : > { %6933 = vmatpush3.bf16.xpose.msra.mxu1 %v4272_v18 }
 0x52e   : > { %7323 = vmatprep.subr.msk.bf16.mxu1 %vm3696_vm0, %v9000_v59 }
 0x535   : > { %6935 = vmatpush3.bf16.xpose.msra.mxu1 %v4275_v36 }
 0x538   : > { %v4133_v29 = vpop.xlane.xlu1 %4132 }
 0x539   : > { %7676 = vrcp.f32 %v4133_v29 }
 0x53b   : > { %v4130_v23 = vpop.xlane.xlu0 %4129 }
 0x53c   : > { %7678 = vrcp.f32 %v4130_v23 }
 0x53f   : > { %v4136_v6 = vpop.xlane.xlu0 %4135 }
 0x540   : > { %7680 = vrcp.f32 %v4136_v6 }
 0x543   : > { %v4139_v38 = vpop.xlane.xlu0 %4138  ;;  %v7677_v32 = vpop.eup %7676 }
 0x544   : > { %7682 = vrcp.f32 %v4139_v38  ;;  %v4153_v30 = vmul.f32 %v7677_v32, %v9296_v47 }
 0x546   : > { %v7679_v22 = vpop.eup %7678 }
 0x547   : > { %v4152_v53 = vmul.f32 %v7679_v22, %v9298_v13 }
 0x549   : > { %v4158_v45 = vpack.c.bf16 %v4153_v30, %v4152_v53 }
 0x54a   : > { %v7681_v9 = vpop.eup %7680 }
 0x54b   : > { %6924 = vmatprep.mubr.msk.bf16.mxu1 %vm3696_vm0, %v4158_v45  ;;  %v4154_v37 = vmul.f32 %v7681_v9, %v9305_v63 }
 0x54e   : > { %v7683_v1 = vpop.eup %7682 }
 0x54f   : > { %v4155_v34 = vmul.f32 %v7683_v1, %v9310_v2 }
 0x551   : > { %v4159_v10 = vpack.c.bf16 %v4155_v34, %v4154_v37 }
 0x553   : > { %6925 = vmatmul.mubr.msk.bf16.gmra.mrb[60].mxu1 %vm3696_vm0, %v4159_v10 }
 0x554   : > { %6936 = vmatprep.mubr.msk.bf16.mxu1 %vm3696_vm0, %v8896_v41 }
 0x55b   : > { %6937 = vmatmul.mubr.msk.bf16.vlgmr.msra.gmra.mrb[64].mxu1 %vm3696_vm0, %v8907_v20 }
 0x55c   : > { %6940 = vmatprep.mubr.msk.bf16.mxu1 %vm3696_vm0, %v8915_v58 }
 0x563   : > { %6941 = vmatmul.mubr.msk.bf16.gmra.mrb[68].mxu1 %vm3696_vm0, %v8923_v33 }
 0x586   : > { %v9405_v47 = vpop.f32.mrb[48].mxu1 }
 0x587   : > { %10249 = vst [vmem:[#allocation21_spill] sm:$0xff] %v9405_v47  ;;  %v9407_v13 = vpop.f32.mrb[49].mxu1 }
 0x588   : > { %10250 = vst [vmem:[#allocation22_spill] sm:$0xff] %v9407_v13  ;;  %v9409_v63 = vpop.f32.mrb[50].mxu1 }
 0x589   : > { %10251 = vst [vmem:[#allocation23_spill] sm:$0xff] %v9409_v63  ;;  %v9411_v2 = vpop.f32.mrb[51].mxu1 }
 0x58a   : > { %10252 = vst [vmem:[#allocation24_spill] sm:$0xff] %v9411_v2 }
 0x58e   : > { %v9413_v35 = vpop.f32.mrb[52].mxu1 }
 0x58f   : > { %10253 = vst [vmem:[#allocation25_spill] sm:$0xff] %v9413_v35  ;;  %v9415_v49 = vpop.f32.mrb[53].mxu1 }
 0x590   : > { %10254 = vst [vmem:[#allocation26_spill] sm:$0xff] %v9415_v49  ;;  %v9417_v8 = vpop.f32.mrb[54].mxu1 }
 0x591   : > { %10255 = vst [vmem:[#allocation27_spill] sm:$0xff] %v9417_v8  ;;  %v9419_v14 = vpop.f32.mrb[55].mxu1 }
 0x592   : > { %10256 = vst [vmem:[#allocation28_spill] sm:$0xff] %v9419_v14 }
 0x5ea   : > { %v9421_v15 = vpop.f32.mrb[56].mxu1 }
 0x5eb   : > { %v9423_v17 = vpop.f32.mrb[57].mxu1 }
 0x5ec   : > { %v9425_v18 = vpop.f32.mrb[58].mxu1 }
 0x5ed   : > { %v9427_v36 = vpop.f32.mrb[59].mxu1 }
 0x626   : > { %v9429_v29 = vpop.f32.mrb[60].mxu1 }
 0x627   : > { %v9431_v23 = vpop.f32.mrb[61].mxu1 }
 0x628   : > { %v9433_v6 = vpop.f32.mrb[62].mxu1 }
 0x629   : > { %v9435_v38 = vpop.f32.mrb[63].mxu1 }
 0x62e   : > { %v6938_v32 = vpop.f32.mrb[64].mxu1 }
 0x62f   : > { %v4311_v22 = vpop.f32.mrb[65].mxu1  ;;  %v4320_v9 = vadd.f32 %v6938_v32, %v9088_v40 }
 0x630   : > { %v4312_v53 = vadd.f32 %v4311_v22, %v9090_v42  ;;  %v6939_v30 = vpop.f32.mrb[66].mxu1 }
 0x631   : > { %v4314_v45 = vpop.f32.mrb[67].mxu1  ;;  %v4323_v34 = vadd.f32 %v6939_v30, %v9102_v55  ;;  %v4348_v35 = vsel %vm3696_vm0, %v4320_v9, -inf }
 0x632   : > { %v4315_v1 = vadd.f32 %v4314_v45, %v9095_v39  ;;  %v4342_v37 = vsel %vm3696_vm0, %v4312_v53, -inf }
 0x633   : > { %4343 = vmax.xlane.f32.xlu1 %v4342_v37  ;;  %v4351_v40 = vsel %vm3696_vm0, %v4323_v34, -inf }
 0x634   : > { %v4345_v10 = vsel %vm3696_vm0, %v4315_v1, -inf }
 0x635   : > { %4346 = vmax.xlane.f32.xlu0 %v4345_v10 }
 0x636   : > { %v6942_v8 = vpop.f32.mrb[68].mxu1 }
 0x637   : > { %v4327_v14 = vpop.f32.mrb[69].mxu1  ;;  %4349 = vmax.xlane.f32.xlu1 %v4348_v35  ;;  %v4336_v32 = vadd.f32 %v6942_v8, %v9109_v48 }
 0x638   : > { %v9445_v42 = vadd.f32 %v4327_v14, %v9116_v11  ;;  %v6943_v22 = vpop.f32.mrb[70].mxu1 }
 0x639   : > { %v4330_v39 = vpop.f32.mrb[71].mxu1  ;;  %4352 = vmax.xlane.f32.xlu0 %v4351_v40  ;;  %v4339_v45 = vadd.f32 %v6943_v22, %v9130_v7  ;;  %v4360_v11 = vsel %vm3696_vm0, %v4336_v32, -inf }
 0x63a   : > { %v4331_v55 = vadd.f32 %v4330_v39, %v9121_v27  ;;  %v4354_v30 = vsel %vm3696_vm0, %v9445_v42, -inf }
 0x63b   : > { %4355 = vmax.xlane.f32.xlu1 %v4354_v30  ;;  %v4363_v14 = vsel %vm3696_vm0, %v4339_v45, -inf }
 0x63c   : > { %v4357_v35 = vsel %vm3696_vm0, %v4331_v55, -inf }
 0x63d   : > { %4358 = vmax.xlane.f32.xlu0 %v4357_v35 }
 0x63f   : > { %4361 = vmax.xlane.f32.xlu1 %v4360_v11 }
 0x641   : > { %4364 = vmax.xlane.f32.xlu0 %v4363_v14 }
 0x6c0   : > { %v4344_v37 = vpop.xlane.xlu1 %4343 }
 0x6c1   : > { %v4366_v10 = vsub.f32 %v4312_v53, %v4344_v37 }
 0x6c2   : > { %v4347_v48 = vpop.xlane.xlu0 %4346 }
 0x6c3   : > { %v4367_v27 = vsub.f32 %v4315_v1, %v4347_v48  ;;  %v4374_v39 = vmul.f32 1.442695, %v4366_v10 }
 0x6c4   : > { %v4350_v8 = vpop.xlane.xlu1 %4349 }
 0x6c5   : > { %v4368_v40 = vsub.f32 %v4320_v9, %v4350_v8  ;;  %v4376_v7 = vmul.f32 1.442695, %v4367_v27 }
 0x6c6   : > { %v4353_v49 = vpop.xlane.xlu0 %4352 }
 0x6c7   : > { %v4378_v30 = vmul.f32 1.442695, %v4368_v40  ;;  %v4369_v63 = vsub.f32 %v4323_v34, %v4353_v49 }
 0x6c8   : > { %v4356_v8 = vpop.xlane.xlu1 %4355 }
 0x6c9   : > { %7684 = vpow2.f32 %v4378_v30  ;;  %v4380_v22 = vmul.f32 1.442695, %v4369_v63 }
 0x6ca   : > { %7686 = vpow2.f32 %v4374_v39  ;;  %v4359_v35 = vpop.xlane.xlu0 %4358  ;;  %v4370_v39 = vsub.f32 %v9445_v42, %v4356_v8 }
 0x6cb   : > { %7688 = vpow2.f32 %v4380_v22  ;;  %v4371_v11 = vsub.f32 %v4331_v55, %v4359_v35 }
 0x6cc   : > { %7690 = vpow2.f32 %v4376_v7  ;;  %v4362_v27 = vpop.xlane.xlu1 %4361  ;;  %v4382_v7 = vmul.f32 1.442695, %v4370_v39 }
 0x6cd   : > { %v4384_v2 = vmul.f32 1.442695, %v4371_v11  ;;  %v4372_v40 = vsub.f32 %v4336_v32, %v4362_v27 }
 0x6ce   : > { %v4365_v47 = vpop.xlane.xlu0 %4364 }
 0x6cf   : > { %v4373_v14 = vsub.f32 %v4339_v45, %v4365_v47  ;;  %v4386_v30 = vmul.f32 1.442695, %v4372_v40 }
 0x6d1   : > { %v4388_v53 = vmul.f32 1.442695, %v4373_v14 }
 0x6d3   : > { %v7685_v37 = vpop.eup %7684  ;;  %7692 = vpow2.f32 %v4388_v53 }
 0x6d4   : > { %v7687_v1 = vpop.eup %7686  ;;  %v4396_v9 = vsel %vm3696_vm0, %v7685_v37, 0.0  ;;  %7694 = vpow2.f32 %v4384_v2 }
 0x6d5   : > { %v7689_v10 = vpop.eup %7688  ;;  %4397 = vadd.xlane.f32.xlu1 %v4396_v9  ;;  %v4390_v34 = vsel %vm3696_vm0, %v7687_v1, 0.0  ;;  %7696 = vpow2.f32 %v4386_v30 }
 0x6d6   : > { %v4399_v49 = vsel %vm3696_vm0, %v7689_v10, 0.0  ;;  %v7691_v63 = vpop.eup %7690  ;;  %7698 = vpow2.f32 %v4382_v7 }
 0x6d7   : > { %4400 = vadd.xlane.f32.xlu0 %v4399_v49  ;;  %v4393_v55 = vsel %vm3696_vm0, %v7691_v63, 0.0 }
 0x6d9   : > { %4391 = vadd.xlane.f32.xlu1 %v4390_v34 }
 0x6db   : > { %4394 = vadd.xlane.f32.xlu0 %v4393_v55 }
 0x6dd   : > { %v9460_v47 = vpop.eup %7692 }
 0x6de   : > { %v4411_v45 = vsel %vm3696_vm0, %v9460_v47, 0.0  ;;  %v9464_v48 = vpop.eup %7694 }
 0x6df   : > { %4412 = vadd.xlane.f32.xlu0 %v4411_v45  ;;  %v4405_v2 = vsel %vm3696_vm0, %v9464_v48, 0.0  ;;  %v7697_v22 = vpop.eup %7696 }
 0x6e0   : > { %v7699_v35 = vpop.eup %7698 }
 0x6e1   : > { %v4402_v32 = vsel %vm3696_vm0, %v7699_v35, 0.0 }
 0x6e3   : > { %4406 = vadd.xlane.f32.xlu0 %v4405_v2 }
 0x6ea   : > { %4527 = vrot.lane.b32.xlu1 %v8967_v0, %s8124_s13  ;;  %v4408_v0 = vsel %vm3696_vm0, %v7697_v22, 0.0 }
 0x6f9   : > { %4529 = vrot.lane.b32.xlu0 %v8978_v16, %s8124_s13 }
 0x6fd   : > { %4515 = vrot.lane.b32.xlu0 %v8896_v41, %s8124_s13 }
 0x701   : > { %4519 = vrot.lane.b32.xlu0 %v8915_v58, %s8124_s13 }
 0x70e   : > { %4409 = vadd.xlane.f32.xlu1 %v4408_v0 }
 0x712   : > { %4403 = vadd.xlane.f32.xlu1 %v4402_v32 }
 0x723   : > { %4531 = vrot.lane.b32.xlu1 %v8989_v25, %s8124_s13 }
 0x727   : > { %4533 = vrot.lane.b32.xlu1 %v9000_v59, %s8124_s13 }
 0x72b   : > { %4517 = vrot.lane.b32.xlu1 %v8907_v20, %s8124_s13 }
 0x72f   : > { %4521 = vrot.lane.b32.xlu1 %v8923_v33, %s8124_s13 }
 0x762   : > { %v4398_v41 = vpop.xlane.xlu1 %4397 }
 0x764   : > { %v4401_v58 = vpop.xlane.xlu0 %4400 }
 0x765   : > { %7700 = vrcp.f32 %v4401_v58 }
 0x766   : > { %v4392_v16 = vpop.xlane.xlu1 %4391 }
 0x767   : > { %7702 = vrcp.f32 %v4392_v16 }
 0x768   : > { %7704 = vrcp.f32 %v4398_v41  ;;  %v4395_v42 = vpop.xlane.xlu0 %4394 }
 0x769   : > { %7706 = vrcp.f32 %v4395_v42 }
 0x76a   : > { %v4528_v11 = vpop.permute.xlu1 %4527 }
 0x76b   : > { %7324 = vmatprep.subr.msk.bf16.mxu0 %vm3696_vm0, %v4528_v11  ;;  %v4548_v8 = vsel %vm3696_vm0, %v4528_v11, 0 }
 0x76c   : > { %v4413_v25 = vpop.xlane.xlu0 %4412 }
 0x76f   : > { %v7701_v14 = vpop.eup %7700 }
 0x770   : > { %v4425_v20 = vmul.f32 %v7701_v14, %v7689_v10  ;;  %v4407_v49 = vpop.xlane.xlu0 %4406 }
 0x771   : > { %v7703_v59 = vpop.eup %7702 }
 0x772   : > { %v7705_v53 = vpop.eup %7704  ;;  %v4422_v34 = vmul.f32 %v7703_v59, %v7687_v1 }
 0x773   : > { %v7707_v9 = vpop.eup %7706  ;;  %v4424_v55 = vmul.f32 %v7705_v53, %v7685_v37 }
 0x774   : > { %v4423_v33 = vmul.f32 %v7707_v9, %v7691_v63  ;;  %v4530_v27 = vpop.permute.xlu0 %4529 }
 0x775   : > { %v4431_v2 = vpack.c.bf16 %v4425_v20, %v4424_v55  ;;  %v4551_v40 = vsel %vm3696_vm0, %v4530_v27, 0 }
 0x776   : > { %v4430_v45 = vpack.c.bf16 %v4423_v33, %v4422_v34 }
 0x778   : > { %6952 = vmatprep.mubr.msk.bf16.mxu0 %vm3696_vm0, %v4430_v45  ;;  %v4516_v59 = vpop.permute.xlu0 %4515 }
 0x779   : > { %6953 = vmatmul.mubr.msk.bf16.vlgmr.msra.gmra.mrb[64].mxu0 %vm3696_vm0, %v4431_v2  ;;  %v9529_v2 = vld [vmem:[#allocation8 + $0x10] sm:$0xff] }
 0x77a   : > { %6961 = vmatpush3.bf16.xpose.msra.mxu0 %v4548_v8 }
 0x77b   : > { %7325 = vmatprep.subr.msk.bf16.mxu0 %vm3696_vm0, %v4530_v27 }
 0x782   : > { %6963 = vmatpush3.bf16.xpose.msra.mxu0 %v4551_v40 }
 0x79b   : > { %v4410_v10 = vpop.xlane.xlu1 %4409 }
 0x79c   : > { %7708 = vrcp.f32 %v4410_v10  ;;  %v9532_v10 = vld [vmem:[#allocation8] sm:$0xff] }
 0x79d   : > { %7710 = vrcp.f32 %v4407_v49 }
 0x79e   : > { %7712 = vrcp.f32 %v4413_v25 }
 0x79f   : > { %v4404_v37 = vpop.xlane.xlu1 %4403 }
 0x7a0   : > { %7714 = vrcp.f32 %v4404_v37 }
 0x7a3   : > { %v4532_v1 = vpop.permute.xlu1 %4531 }
 0x7a4   : > { %7326 = vmatprep.subr.msk.bf16.mxu0 %vm3696_vm0, %v4532_v1  ;;  %v4554_v63 = vsel %vm3696_vm0, %v4532_v1, 0 }
 0x7a5   : > { %6965 = vmatpush3.bf16.xpose.msra.mxu0 %v4554_v63 }
 0x7a6   : > { %v7709_v39 = vpop.eup %7708 }
 0x7a7   : > { %v4534_v30 = vpop.permute.xlu1 %4533  ;;  %v7711_v7 = vpop.eup %7710  ;;  %v4428_v41 = vmul.f32 %v7709_v39, %v7697_v22  ;;  %v9536_v39 = vld [vmem:[#allocation8 + $0x8] sm:$0xff] }
 0x7a8   : > { %7327 = vmatprep.subr.msk.bf16.mxu0 %vm3696_vm0, %v4534_v30  ;;  %v7713_v0 = vpop.eup %7712  ;;  %v4427_v16 = vmul.f32 %v7711_v7, %v9464_v48  ;;  %v4557_v42 = vsel %vm3696_vm0, %v4534_v30, 0 }
 0x7a9   : > { %v4429_v11 = vmul.f32 %v7713_v0, %v9460_v47  ;;  %v9540_v0 = vld [vmem:[#allocation8 + $0x18] sm:$0xff] }
 0x7aa   : > { %v7715_v32 = vpop.eup %7714 }
 0x7ab   : > { %v4426_v58 = vmul.f32 %v7715_v32, %v7699_v35  ;;  %v4433_v14 = vpack.c.bf16 %v4429_v11, %v4428_v41  ;;  %v4518_v22 = vpop.permute.xlu1 %4517  ;;  %v4520_v35 = vpop.permute.xlu0 %4519 }
 0x7ad   : > { %6967 = vmatpush3.bf16.xpose.msra.mxu0 %v4557_v42  ;;  %v4432_v25 = vpack.c.bf16 %v4427_v16, %v4426_v58  ;;  %v9544_v16 = vld [vmem:[#allocation8 + $0x30] sm:$0xff] }
 0x7ae   : > { %7008 = vmatprep.subr.bf16.mxu0 %v9353_v21 }
 0x7af   : > { %6956 = vmatprep.mubr.msk.bf16.mxu0 %vm3696_vm0, %v4432_v25  ;;  %v4522_v47 = vpop.permute.xlu1 %4521 }
 0x7b0   : > { %6957 = vmatmul.mubr.msk.bf16.gmra.mrb[68].mxu0 %vm3696_vm0, %v4433_v14  ;;  %v9549_v14 = vld [vmem:[#allocation8 + $0x20] sm:$0xff] }
 0x7b1   : > { %6968 = vmatprep.mubr.msk.bf16.mxu0 %vm3696_vm0, %v4516_v59 }
 0x7b8   : > { %6969 = vmatmul.mubr.msk.bf16.vlgmr.msra.gmra.mrb[72].mxu0 %vm3696_vm0, %v4518_v22 }
 0x7b9   : > { %7009 = vmatpush3.bf16.msra.mxu0 %v9353_v21  ;;  %6972 = vmatprep.mubr.msk.bf16.mxu0 %vm3696_vm0, %v4520_v35 }
 0x7ba   : > { %7010 = vmatprep.subr.bf16.mxu0 %v9357_v61 }
 0x7bd   : > { %7011 = vmatpush3.bf16.msra.mxu0 %v9357_v61 }
 0x7be   : > { %7012 = vmatprep.subr.bf16.mxu0 %v9361_v4 }
 0x7c0   : > { %6973 = vmatmul.mubr.msk.bf16.gmra.mrb[76].mxu0 %vm3696_vm0, %v4522_v47 }
 0x7c1   : > { %7013 = vmatpush3.bf16.msra.mxu0 %v9361_v4 }
 0x7c2   : > { %7014 = vmatprep.subr.bf16.mxu0 %v9365_v52 }
 0x7c5   : > { %7015 = vmatpush3.bf16.msra.mxu0 %v9365_v52 }
 0x84c   : > { %v9513_v48 = vpop.f32.mrb[64].mxu0 }
 0x84d   : > { %10257 = vst [vmem:[#allocation29_spill] sm:$0xff] %v9513_v48  ;;  %v9515_v53 = vpop.f32.mrb[65].mxu0 }
 0x84e   : > { %10258 = vst [vmem:[#allocation30_spill] sm:$0xff] %v9515_v53  ;;  %v9517_v9 = vpop.f32.mrb[66].mxu0 }
 0x84f   : > { %10259 = vst [vmem:[#allocation31_spill] sm:$0xff] %v9517_v9  ;;  %v9519_v20 = vpop.f32.mrb[67].mxu0 }
 0x850   : > { %10260 = vst [vmem:[#allocation32_spill] sm:$0xff] %v9519_v20 }
 0x883   : > { %v9521_v49 = vpop.f32.mrb[68].mxu0 }
 0x884   : > { %10261 = vst [vmem:[#allocation33_spill] sm:$0xff] %v9521_v49  ;;  %v9523_v34 = vpop.f32.mrb[69].mxu0 }
 0x885   : > { %10262 = vst [vmem:[#allocation34_spill] sm:$0xff] %v9523_v34  ;;  %v9525_v33 = vpop.f32.mrb[70].mxu0 }
 0x886   : > { %10263 = vst [vmem:[#allocation35_spill] sm:$0xff] %v9525_v33  ;;  %v9527_v55 = vpop.f32.mrb[71].mxu0 }
 0x887   : > { %10264 = vst [vmem:[#allocation36_spill] sm:$0xff] %v9527_v55 }
 0x88b   : > { %v6970_v45 = vpop.f32.mrb[72].mxu0 }
 0x88c   : > { %v4602_v8 = vadd.f32 %v9529_v2, %v6970_v45  ;;  %v4593_v27 = vpop.f32.mrb[73].mxu0  ;;  %v9555_v45 = vld [vmem:[#allocation8 + $0x28] sm:$0xff] }
 0x88d   : > { %v6971_v40 = vpop.f32.mrb[74].mxu0  ;;  %v4594_v37 = vadd.f32 %v9532_v10, %v4593_v27 }
 0x88e   : > { %v4596_v1 = vpop.f32.mrb[75].mxu0  ;;  %v4630_v63 = vsel %vm3696_vm0, %v4602_v8, -inf  ;;  %v4605_v32 = vadd.f32 %v9540_v0, %v6971_v40 }
 0x88f   : > { %v4597_v30 = vadd.f32 %v9536_v39, %v4596_v1  ;;  %4631 = vmax.xlane.f32.xlu0 %v4630_v63  ;;  %v4624_v41 = vsel %vm3696_vm0, %v4594_v37, -inf  ;;  %v9559_v1 = vld [vmem:[#allocation8 + $0x38] sm:$0xff] }
 0x890   : > { %v4633_v35 = vsel %vm3696_vm0, %v4605_v32, -inf }
 0x891   : > { %v4627_v7 = vsel %vm3696_vm0, %v4597_v30, -inf }
 0x892   : > { %4628 = vmax.xlane.f32.xlu1 %v4627_v7 }
 0x893   : > { %4625 = vmax.xlane.f32.xlu0 %v4624_v41  ;;  %v6974_v58 = vpop.f32.mrb[76].mxu0 }
 0x894   : > { %v9547_v42 = vadd.f32 %v9544_v16, %v6974_v58  ;;  %v4609_v11 = vpop.f32.mrb[77].mxu0 }
 0x895   : > { %v6975_v25 = vpop.f32.mrb[78].mxu0  ;;  %v4610_v59 = vadd.f32 %v9549_v14, %v4609_v11 }
 0x896   : > { %v4612_v22 = vpop.f32.mrb[79].mxu0  ;;  %v4642_v47 = vsel %vm3696_vm0, %v9547_v42, -inf  ;;  %v4621_v63 = vadd.f32 %v9559_v1, %v6975_v25 }
 0x897   : > { %v4613_v27 = vadd.f32 %v9555_v45, %v4612_v22  ;;  %4634 = vmax.xlane.f32.xlu0 %v4633_v35  ;;  %4643 = vmax.xlane.f32.xlu1 %v4642_v47  ;;  %v4636_v7 = vsel %vm3696_vm0, %v4610_v59, -inf }
 0x898   : > { %v4645_v41 = vsel %vm3696_vm0, %v4621_v63, -inf }
 0x899   : > { %v4639_v40 = vsel %vm3696_vm0, %v4613_v27, -inf }
 0x89b   : > { %4640 = vmax.xlane.f32.xlu0 %v4639_v40  ;;  %4637 = vmax.xlane.f32.xlu1 %v4636_v7 }
 0x89f   : > { %4646 = vmax.xlane.f32.xlu0 %v4645_v41 }
 0x8ac   : > { %4720 = vrot.lane.b32.xlu1 %v9043_v51, %s8124_s13 }
 0x91c   : > { %v4632_v58 = vpop.xlane.xlu0 %4631 }
 0x91d   : > { %v4650_v11 = vsub.f32 %v4602_v8, %v4632_v58 }
 0x91f   : > { %v4660_v22 = vmul.f32 1.442695, %v4650_v11  ;;  %v4629_v35 = vpop.xlane.xlu1 %4628 }
 0x920   : > { %v4626_v47 = vpop.xlane.xlu0 %4625  ;;  %v4649_v49 = vsub.f32 %v4597_v30, %v4629_v35 }
 0x921   : > { %7716 = vpow2.f32 %v4660_v22  ;;  %v4648_v33 = vsub.f32 %v4594_v37, %v4626_v47 }
 0x922   : > { %v4658_v7 = vmul.f32 1.442695, %v4649_v49 }
 0x923   : > { %v4656_v55 = vmul.f32 1.442695, %v4648_v33 }
 0x924   : > { %v4635_v25 = vpop.xlane.xlu0 %4634  ;;  %v4644_v34 = vpop.xlane.xlu1 %4643 }
 0x925   : > { %7718 = vpow2.f32 %v4656_v55  ;;  %v4651_v40 = vsub.f32 %v4605_v32, %v4635_v25  ;;  %v4654_v35 = vsub.f32 %v9547_v42, %v4644_v34 }
 0x927   : > { %v4662_v9 = vmul.f32 1.442695, %v4651_v40  ;;  %v4668_v40 = vmul.f32 1.442695, %v4654_v35 }
 0x928   : > { %v4638_v48 = vpop.xlane.xlu1 %4637  ;;  %v4641_v32 = vpop.xlane.xlu0 %4640 }
 0x929   : > { %7720 = vpow2.f32 %v4662_v9  ;;  %v4653_v58 = vsub.f32 %v4613_v27, %v4641_v32  ;;  %v4652_v22 = vsub.f32 %v4610_v59, %v4638_v48 }
 0x92a   : > { %7722 = vpow2.f32 %v4658_v7 }
 0x92b   : > { %v9566_v41 = vpop.eup %7716  ;;  %v4666_v11 = vmul.f32 1.442695, %v4653_v58  ;;  %v4664_v47 = vmul.f32 1.442695, %v4652_v22 }
 0x92c   : > { %v4721_v51 = vpop.permute.xlu1 %4720  ;;  %v4678_v8 = vsel %vm3696_vm0, %v9566_v41, 0.0  ;;  %v4647_v25 = vpop.xlane.xlu0 %4646 }
 0x92d   : > { %4679 = vadd.xlane.f32.xlu1 %v4678_v8  ;;  %6976 = vmatprep.subr.bf16.mxu1 %v4721_v51  ;;  %7724 = vpow2.f32 %v4666_v11  ;;  %v4655_v7 = vsub.f32 %v4621_v63, %v4647_v25 }
 0x92e   : > { %6977 = vmatpush3.bf16.msra.mxu1 %v4721_v51  ;;  %7726 = vpow2.f32 %v4664_v47 }
 0x92f   : > { %v7719_v37 = vpop.eup %7718  ;;  %7728 = vpow2.f32 %v4668_v40 }
 0x930   : > { %v4672_v33 = vsel %vm3696_vm0, %v7719_v37, 0.0 }
 0x931   : > { %4673 = vadd.xlane.f32.xlu1 %v4672_v33 }
 0x933   : > { %v7721_v55 = vpop.eup %7720 }
 0x934   : > { %v4681_v49 = vsel %vm3696_vm0, %v7721_v55, 0.0  ;;  %v7723_v30 = vpop.eup %7722 }
 0x935   : > { %4682 = vadd.xlane.f32.xlu0 %v4681_v49  ;;  %v4675_v9 = vsel %vm3696_vm0, %v7723_v30, 0.0 }
 0x937   : > { %v9580_v51 = vpop.eup %7724 }
 0x939   : > { %4676 = vadd.xlane.f32.xlu0 %v4675_v9 }
 0x942   : > { %4724 = vrot.lane.b32.xlu1 %v9066_v28, %s8124_s13  ;;  %v4670_v28 = vmul.f32 1.442695, %v4655_v7 }
 0x944   : > { %7730 = vpow2.f32 %v4670_v28 }
 0x946   : > { %4726 = vrot.lane.b32.xlu1 %v9077_v43, %s8124_s13  ;;  %v7727_v43 = vpop.eup %7726 }
 0x947   : > { %v4684_v48 = vsel %vm3696_vm0, %v7727_v43, 0.0  ;;  %v9585_v59 = vpop.eup %7728 }
 0x948   : > { %v4690_v34 = vsel %vm3696_vm0, %v9585_v59, 0.0 }
 0x94e   : > { %v7731_v42 = vpop.eup %7730 }
 0x94f   : > { %4722 = vrot.lane.b32.xlu0 %v9055_v5, %s8124_s13  ;;  %v4687_v5 = vsel %vm3696_vm0, %v9580_v51, 0.0  ;;  %v4693_v27 = vsel %vm3696_vm0, %v7731_v42, 0.0 }
 0x96a   : > { %4688 = vadd.xlane.f32.xlu1 %v4687_v5 }
 0x96e   : > { %4685 = vadd.xlane.f32.xlu0 %v4684_v48 }
 0x972   : > { %4691 = vadd.xlane.f32.xlu0 %v4690_v34  ;;  %v4822_v34 = vsel %vm3696_vm0, %v9291_v31, 0 }
 0x976   : > { %4694 = vadd.xlane.f32.xlu0 %v4693_v27 }
 0x9ba   : > { %v4680_v63 = vpop.xlane.xlu1 %4679 }
 0x9be   : > { %v4674_v8 = vpop.xlane.xlu1 %4673 }
 0x9c2   : > { %v4683_v33 = vpop.xlane.xlu0 %4682  ;;  %v4725_v9 = vpop.permute.xlu1 %4724 }
 0x9c3   : > { %7732 = vrcp.f32 %v4683_v33 }
 0x9c4   : > { %7734 = vrcp.f32 %v4674_v8 }
 0x9c5   : > { %7736 = vrcp.f32 %v4680_v63 }
 0x9c6   : > { %v4677_v49 = vpop.xlane.xlu0 %4676  ;;  %v4727_v35 = vpop.permute.xlu1 %4726 }
 0x9c7   : > { %7738 = vrcp.f32 %v4677_v49 }
 0x9ca   : > { %v4723_v32 = vpop.permute.xlu0 %4722 }
 0x9cb   : > { %6978 = vmatprep.subr.bf16.mxu1 %v4723_v32 }
 0x9cc   : > { %6979 = vmatpush3.bf16.msra.mxu1 %v4723_v32 }
 0x9cd   : > { %6980 = vmatprep.subr.bf16.mxu1 %v4725_v9  ;;  %v7733_v58 = vpop.eup %7732 }
 0x9ce   : > { %v7735_v11 = vpop.eup %7734  ;;  %v4707_v25 = vmul.f32 %v7733_v58, %v7721_v55  ;;  %v4831_v55 = vsel %vm3696_vm0, %v9345_v24, 0 }
 0x9cf   : > { %v7737_v22 = vpop.eup %7736  ;;  %v4704_v40 = vmul.f32 %v7735_v11, %v7719_v37  ;;  %v4828_v37 = vsel %vm3696_vm0, %v9337_v50, 0 }
 0x9d0   : > { %6981 = vmatpush3.bf16.msra.mxu1 %v4725_v9  ;;  %v4706_v28 = vmul.f32 %v7737_v22, %v9566_v41  ;;  %v4825_v41 = vsel %vm3696_vm0, %v9331_v60, 0 }
 0x9d1   : > { %v7739_v47 = vpop.eup %7738  ;;  %6982 = vmatprep.subr.bf16.mxu1 %v4727_v35 }
 0x9d2   : > { %v4705_v7 = vmul.f32 %v7739_v47, %v7723_v30  ;;  %v4713_v48 = vpack.c.bf16 %v4707_v25, %v4706_v28 }
 0x9d4   : > { %6983 = vmatpush3.bf16.msra.mxu1 %v4727_v35  ;;  %v4712_v5 = vpack.c.bf16 %v4705_v7, %v4704_v40  ;;  %v10265_v40 = vld [vmem:[#allocation16_spill] sm:$0xff] }
 0x9d5   : > { %7328 = vmatprep.subr.msk.bf16.mxu1 %vm3696_vm0, %v9291_v31 }
 0x9d6   : > { %6984 = vmatprep.mubr.msk.bf16.mxu1 %vm3696_vm0, %v4712_v5 }
 0x9d7   : > { %6985 = vmatmul.mubr.msk.bf16.vlgmr.msra.gmra.mrb[72].mxu1 %vm3696_vm0, %v4713_v48 }
 0x9dd   : > { %6993 = vmatpush3.bf16.xpose.msra.mxu1 %v4822_v34 }
 0x9de   : > { %7329 = vmatprep.subr.msk.bf16.mxu1 %vm3696_vm0, %v9331_v60 }
 0x9e5   : > { %6995 = vmatpush3.bf16.xpose.msra.mxu1 %v4825_v41 }
 0x9e6   : > { %7330 = vmatprep.subr.msk.bf16.mxu1 %vm3696_vm0, %v9337_v50 }
 0x9ed   : > { %6997 = vmatpush3.bf16.xpose.msra.mxu1 %v4828_v37 }
 0x9ee   : > { %7331 = vmatprep.subr.msk.bf16.mxu1 %vm3696_vm0, %v9345_v24 }
 0x9f5   : > { %6999 = vmatpush3.bf16.xpose.msra.mxu1 %v4831_v55 }
 0x9f7   : > { %v4689_v30 = vpop.xlane.xlu1 %4688 }
 0x9f8   : > { %7740 = vrcp.f32 %v4689_v30 }
 0x9fb   : > { %v4686_v27 = vpop.xlane.xlu0 %4685 }
 0x9fc   : > { %7742 = vrcp.f32 %v4686_v27 }
 0x9ff   : > { %v4692_v63 = vpop.xlane.xlu0 %4691 }
 0xa00   : > { %7744 = vrcp.f32 %v4692_v63 }
 0xa02   : > { %v7741_v33 = vpop.eup %7740 }
 0xa03   : > { %v4695_v8 = vpop.xlane.xlu0 %4694  ;;  %v4709_v32 = vmul.f32 %v7741_v33, %v9580_v51  ;;  %v10266_v51 = vld [vmem:[#allocation19_spill] sm:$0xff] }
 0xa04   : > { %7746 = vrcp.f32 %v4695_v8 }
 0xa06   : > { %v7743_v49 = vpop.eup %7742 }
 0xa07   : > { %v4708_v9 = vmul.f32 %v7743_v49, %v7727_v43 }
 0xa09   : > { %v4714_v58 = vpack.c.bf16 %v4709_v32, %v4708_v9 }
 0xa0a   : > { %v7745_v11 = vpop.eup %7744 }
 0xa0b   : > { %6988 = vmatprep.mubr.msk.bf16.mxu1 %vm3696_vm0, %v4714_v58  ;;  %v4710_v35 = vmul.f32 %v7745_v11, %v9585_v59 }
 0xa0e   : > { %v7747_v22 = vpop.eup %7746 }
 0xa0f   : > { %v4711_v47 = vmul.f32 %v7747_v22, %v7731_v42 }
 0xa11   : > { %v4715_v25 = vpack.c.bf16 %v4711_v47, %v4710_v35 }
 0xa13   : > { %6989 = vmatmul.mubr.msk.bf16.gmra.mrb[76].mxu1 %vm3696_vm0, %v4715_v25 }
 0xa14   : > { %7000 = vmatprep.mubr.msk.bf16.mxu1 %vm3696_vm0, %v9224_v44 }
 0xa1b   : > { %7001 = vmatmul.mubr.msk.bf16.vlgmr.msra.gmra.mrb[80].mxu1 %vm3696_vm0, %v10265_v40 }
 0xa1c   : > { %7004 = vmatprep.mubr.msk.bf16.mxu1 %vm3696_vm0, %v9232_v46 }
 0xa23   : > { %7005 = vmatmul.mubr.msk.bf16.gmra.mrb[84].mxu1 %vm3696_vm0, %v10266_v51 }
 0xaaa   : > { %v9621_v43 = vpop.f32.mrb[72].mxu1 }
 0xaab   : > { %10267 = vst [vmem:[#allocation16_spill] sm:$0xff] %v9621_v43  ;;  %v9623_v7 = vpop.f32.mrb[73].mxu1 }
 0xaac   : > { %v9625_v59 = vpop.f32.mrb[74].mxu1 }
 0xaad   : > { %v9627_v42 = vpop.f32.mrb[75].mxu1 }
 0xae6   : > { %v9629_v28 = vpop.f32.mrb[76].mxu1 }
 0xae7   : > { %10268 = vst [vmem:[#allocation19_spill] sm:$0xff] %v9629_v28  ;;  %v9631_v5 = vpop.f32.mrb[77].mxu1 }
 0xae8   : > { %10269 = vst [vmem:[#allocation37_spill] sm:$0xff] %v9631_v5  ;;  %v9633_v48 = vpop.f32.mrb[78].mxu1 }
 0xae9   : > { %10270 = vst [vmem:[#allocation38_spill] sm:$0xff] %v9633_v48  ;;  %v9635_v34 = vpop.f32.mrb[79].mxu1 }
 0xaea   : > { %10271 = vst [vmem:[#allocation39_spill] sm:$0xff] %v9635_v34 }
 0xaee   : > { %v7002_v41 = vpop.f32.mrb[80].mxu1 }
 0xaef   : > { %v4867_v37 = vpop.f32.mrb[81].mxu1  ;;  %v4876_v63 = vadd.f32 %v9529_v2, %v7002_v41 }
 0xaf0   : > { %v4868_v55 = vadd.f32 %v9532_v10, %v4867_v37  ;;  %v7003_v30 = vpop.f32.mrb[82].mxu1 }
 0xaf1   : > { %v4870_v27 = vpop.f32.mrb[83].mxu1  ;;  %v4879_v49 = vadd.f32 %v9540_v0, %v7003_v30  ;;  %v4904_v58 = vsel %vm3696_vm0, %v4876_v63, -inf }
 0xaf2   : > { %v4871_v8 = vadd.f32 %v9536_v39, %v4870_v27  ;;  %v4898_v33 = vsel %vm3696_vm0, %v4868_v55, -inf }
 0xaf3   : > { %4899 = vmax.xlane.f32.xlu1 %v4898_v33  ;;  %v4907_v47 = vsel %vm3696_vm0, %v4879_v49, -inf }
 0xaf4   : > { %v4901_v9 = vsel %vm3696_vm0, %v4871_v8, -inf }
 0xaf5   : > { %4902 = vmax.xlane.f32.xlu0 %v4901_v9 }
 0xaf6   : > { %v7006_v32 = vpop.f32.mrb[84].mxu1 }
 0xaf7   : > { %v4883_v11 = vpop.f32.mrb[85].mxu1  ;;  %4905 = vmax.xlane.f32.xlu1 %v4904_v58  ;;  %v4892_v41 = vadd.f32 %v9544_v16, %v7006_v32 }
 0xaf8   : > { %v9645_v22 = vadd.f32 %v9549_v14, %v4883_v11  ;;  %v7007_v35 = vpop.f32.mrb[86].mxu1 }
 0xaf9   : > { %v4886_v25 = vpop.f32.mrb[87].mxu1  ;;  %4908 = vmax.xlane.f32.xlu0 %v4907_v47  ;;  %v4895_v27 = vadd.f32 %v9559_v1, %v7007_v35  ;;  %v4916_v9 = vsel %vm3696_vm0, %v4892_v41, -inf }
 0xafa   : > { %v4887_v37 = vadd.f32 %v9555_v45, %v4886_v25  ;;  %v4910_v30 = vsel %vm3696_vm0, %v9645_v22, -inf }
 0xafb   : > { %4911 = vmax.xlane.f32.xlu1 %v4910_v30  ;;  %v4919_v58 = vsel %vm3696_vm0, %v4895_v27, -inf }
 0xafc   : > { %v4913_v33 = vsel %vm3696_vm0, %v4887_v37, -inf }
 0xafd   : > { %4914 = vmax.xlane.f32.xlu0 %v4913_v33 }
 0xaff   : > { %4917 = vmax.xlane.f32.xlu1 %v4916_v9 }
 0xb01   : > { %4920 = vmax.xlane.f32.xlu0 %v4919_v58 }
 0xb80   : > { %v4900_v11 = vpop.xlane.xlu1 %4899 }
 0xb81   : > { %v4922_v47 = vsub.f32 %v4868_v55, %v4900_v11 }
 0xb82   : > { %v4903_v32 = vpop.xlane.xlu0 %4902 }
 0xb83   : > { %v4923_v25 = vsub.f32 %v4871_v8, %v4903_v32  ;;  %v4930_v13 = vmul.f32 1.442695, %v4922_v47 }
 0xb84   : > { %v4906_v20 = vpop.xlane.xlu1 %4905 }
 0xb85   : > { %v4924_v53 = vsub.f32 %v4876_v63, %v4906_v20  ;;  %v4932_v35 = vmul.f32 1.442695, %v4923_v25 }
 0xb86   : > { %v4909_v28 = vpop.xlane.xlu0 %4908 }
 0xb87   : > { %v4934_v30 = vmul.f32 1.442695, %v4924_v53  ;;  %v4925_v5 = vsub.f32 %v4879_v49, %v4909_v28 }
 0xb89   : > { %7748 = vpow2.f32 %v4934_v30  ;;  %v4936_v48 = vmul.f32 1.442695, %v4925_v5 }
 0xb8a   : > { %7750 = vpow2.f32 %v4930_v13  ;;  %v4915_v33 = vpop.xlane.xlu0 %4914 }
 0xb8b   : > { %7752 = vpow2.f32 %v4936_v48  ;;  %v4927_v9 = vsub.f32 %v4887_v37, %v4915_v33  ;;  %v4912_v37 = vpop.xlane.xlu1 %4911 }
 0xb8c   : > { %7754 = vpow2.f32 %v4932_v35  ;;  %v4926_v32 = vsub.f32 %v9645_v22, %v4912_v37 }
 0xb8d   : > { %v4940_v34 = vmul.f32 1.442695, %v4927_v9 }
 0xb8e   : > { %v4921_v43 = vpop.xlane.xlu0 %4920  ;;  %v4938_v30 = vmul.f32 1.442695, %v4926_v32 }
 0xb8f   : > { %v4929_v58 = vsub.f32 %v4895_v27, %v4921_v43  ;;  %v4918_v27 = vpop.xlane.xlu1 %4917 }
 0xb90   : > { %v4928_v47 = vsub.f32 %v4892_v41, %v4918_v27 }
 0xb91   : > { %v4944_v55 = vmul.f32 1.442695, %v4929_v58 }
 0xb92   : > { %v4942_v25 = vmul.f32 1.442695, %v4928_v47 }
 0xb93   : > { %v7749_v11 = vpop.eup %7748  ;;  %7756 = vpow2.f32 %v4944_v55 }
 0xb94   : > { %v7751_v8 = vpop.eup %7750  ;;  %v4952_v20 = vsel %vm3696_vm0, %v7749_v11, 0.0  ;;  %7758 = vpow2.f32 %v4940_v34 }
 0xb95   : > { %v7753_v63 = vpop.eup %7752  ;;  %4953 = vadd.xlane.f32.xlu1 %v4952_v20  ;;  %v4946_v13 = vsel %vm3696_vm0, %v7751_v8, 0.0  ;;  %7760 = vpow2.f32 %v4942_v25 }
 0xb96   : > { %v4955_v53 = vsel %vm3696_vm0, %v7753_v63, 0.0  ;;  %v7755_v28 = vpop.eup %7754  ;;  %7762 = vpow2.f32 %v4938_v30 }
 0xb97   : > { %4956 = vadd.xlane.f32.xlu0 %v4955_v53  ;;  %v4949_v5 = vsel %vm3696_vm0, %v7755_v28, 0.0 }
 0xb99   : > { %4947 = vadd.xlane.f32.xlu1 %v4946_v13 }
 0xb9b   : > { %4950 = vadd.xlane.f32.xlu0 %v4949_v5 }
 0xb9d   : > { %v9660_v43 = vpop.eup %7756 }
 0xb9e   : > { %v4967_v48 = vsel %vm3696_vm0, %v9660_v43, 0.0  ;;  %v9664_v49 = vpop.eup %7758 }
 0xb9f   : > { %4968 = vadd.xlane.f32.xlu0 %v4967_v48  ;;  %v4961_v34 = vsel %vm3696_vm0, %v9664_v49, 0.0  ;;  %v7761_v35 = vpop.eup %7760 }
 0xba0   : > { %v7763_v33 = vpop.eup %7762 }
 0xba1   : > { %v4958_v41 = vsel %vm3696_vm0, %v7763_v33, 0.0 }
 0xba3   : > { %4962 = vadd.xlane.f32.xlu0 %v4961_v34 }
 0xbaa   : > { %5083 = vrot.lane.b32.xlu1 %v9291_v31, %s8124_s13  ;;  %v4964_v31 = vsel %vm3696_vm0, %v7761_v35, 0.0 }
 0xbb9   : > { %5085 = vrot.lane.b32.xlu0 %v9331_v60, %s8124_s13 }
 0xbbd   : > { %5071 = vrot.lane.b32.xlu0 %v9224_v44, %s8124_s13 }
 0xbc1   : > { %5075 = vrot.lane.b32.xlu0 %v9232_v46, %s8124_s13 }
 0xbce   : > { %4965 = vadd.xlane.f32.xlu1 %v4964_v31 }
 0xbd2   : > { %4959 = vadd.xlane.f32.xlu1 %v4958_v41 }
 0xbe3   : > { %5087 = vrot.lane.b32.xlu1 %v9337_v50, %s8124_s13 }
 0xbe7   : > { %5089 = vrot.lane.b32.xlu1 %v9345_v24, %s8124_s13 }
 0xbeb   : > { %5073 = vrot.lane.b32.xlu1 %v10265_v40, %s8124_s13 }
 0xbef   : > { %5077 = vrot.lane.b32.xlu1 %v10266_v51, %s8124_s13 }
 0xc22   : > { %v4954_v44 = vpop.xlane.xlu1 %4953 }
 0xc24   : > { %v4957_v46 = vpop.xlane.xlu0 %4956 }
 0xc25   : > { %7764 = vrcp.f32 %v4957_v46 }
 0xc26   : > { %v4948_v60 = vpop.xlane.xlu1 %4947 }
 0xc27   : > { %7766 = vrcp.f32 %v4948_v60 }
 0xc28   : > { %7768 = vrcp.f32 %v4954_v44  ;;  %v4951_v22 = vpop.xlane.xlu0 %4950 }
 0xc29   : > { %7770 = vrcp.f32 %v4951_v22 }
 0xc2a   : > { %v5084_v9 = vpop.permute.xlu1 %5083 }
 0xc2b   : > { %7332 = vmatprep.subr.msk.bf16.mxu0 %vm3696_vm0, %v5084_v9  ;;  %v5104_v37 = vsel %vm3696_vm0, %v5084_v9, 0 }
 0xc2c   : > { %v4969_v50 = vpop.xlane.xlu0 %4968 }
 0xc2f   : > { %v7765_v58 = vpop.eup %7764 }
 0xc30   : > { %v4981_v40 = vmul.f32 %v7765_v58, %v7753_v63  ;;  %v4963_v53 = vpop.xlane.xlu0 %4962 }
 0xc31   : > { %v7767_v24 = vpop.eup %7766 }
 0xc32   : > { %v7769_v55 = vpop.eup %7768  ;;  %v4978_v13 = vmul.f32 %v7767_v24, %v7751_v8 }
 0xc33   : > { %v7771_v20 = vpop.eup %7770  ;;  %v4980_v5 = vmul.f32 %v7769_v55, %v7749_v11 }
 0xc34   : > { %v4979_v51 = vmul.f32 %v7771_v20, %v7755_v28  ;;  %v5086_v27 = vpop.permute.xlu0 %5085 }
 0xc35   : > { %v4987_v34 = vpack.c.bf16 %v4981_v40, %v4980_v5  ;;  %v5107_v47 = vsel %vm3696_vm0, %v5086_v27, 0 }
 0xc36   : > { %v4986_v48 = vpack.c.bf16 %v4979_v51, %v4978_v13 }
 0xc38   : > { %7016 = vmatprep.mubr.msk.bf16.mxu0 %vm3696_vm0, %v4986_v48  ;;  %v5072_v24 = vpop.permute.xlu0 %5071 }
 0xc39   : > { %7017 = vmatmul.mubr.msk.bf16.vlgmr.msra.gmra.mrb[80].mxu0 %vm3696_vm0, %v4987_v34 }
 0xc3a   : > { %7025 = vmatpush3.bf16.xpose.msra.mxu0 %v5104_v37 }
 0xc3b   : > { %7333 = vmatprep.subr.msk.bf16.mxu0 %vm3696_vm0, %v5086_v27 }
 0xc42   : > { %7027 = vmatpush3.bf16.xpose.msra.mxu0 %v5107_v47 }
 0xc5b   : > { %v4966_v63 = vpop.xlane.xlu1 %4965 }
 0xc5c   : > { %7772 = vrcp.f32 %v4966_v63 }
 0xc5d   : > { %7774 = vrcp.f32 %v4963_v53 }
 0xc5e   : > { %7776 = vrcp.f32 %v4969_v50 }
 0xc5f   : > { %v4960_v11 = vpop.xlane.xlu1 %4959 }
 0xc60   : > { %7778 = vrcp.f32 %v4960_v11 }
 0xc63   : > { %v5088_v8 = vpop.permute.xlu1 %5087 }
 0xc64   : > { %7334 = vmatprep.subr.msk.bf16.mxu0 %vm3696_vm0, %v5088_v8  ;;  %v5110_v28 = vsel %vm3696_vm0, %v5088_v8, 0 }
 0xc65   : > { %7029 = vmatpush3.bf16.xpose.msra.mxu0 %v5110_v28 }
 0xc66   : > { %v7773_v32 = vpop.eup %7772 }
 0xc67   : > { %v5090_v25 = vpop.permute.xlu1 %5089  ;;  %v7775_v30 = vpop.eup %7774  ;;  %v4984_v44 = vmul.f32 %v7773_v32, %v7761_v35 }
 0xc68   : > { %7335 = vmatprep.subr.msk.bf16.mxu0 %vm3696_vm0, %v5090_v25  ;;  %v7777_v31 = vpop.eup %7776  ;;  %v4983_v60 = vmul.f32 %v7775_v30, %v9664_v49  ;;  %v5113_v22 = vsel %vm3696_vm0, %v5090_v25, 0 }
 0xc69   : > { %v4985_v9 = vmul.f32 %v7777_v31, %v9660_v43 }
 0xc6a   : > { %v7779_v41 = vpop.eup %7778 }
 0xc6b   : > { %v4982_v46 = vmul.f32 %v7779_v41, %v7763_v33  ;;  %v4989_v58 = vpack.c.bf16 %v4985_v9, %v4984_v44  ;;  %v5074_v35 = vpop.permute.xlu1 %5073  ;;  %v5076_v33 = vpop.permute.xlu0 %5075 }
 0xc6d   : > { %7031 = vmatpush3.bf16.xpose.msra.mxu0 %v5113_v22  ;;  %v4988_v50 = vpack.c.bf16 %v4983_v60, %v4982_v46 }
 0xc6e   : > { %7072 = vmatprep.subr.bf16.mxu0 %v9355_v12 }
 0xc6f   : > { %7020 = vmatprep.mubr.msk.bf16.mxu0 %vm3696_vm0, %v4988_v50  ;;  %v5078_v43 = vpop.permute.xlu1 %5077 }
 0xc70   : > { %7021 = vmatmul.mubr.msk.bf16.gmra.mrb[84].mxu0 %vm3696_vm0, %v4989_v58 }
 0xc71   : > { %7032 = vmatprep.mubr.msk.bf16.mxu0 %vm3696_vm0, %v5072_v24 }
 0xc78   : > { %7033 = vmatmul.mubr.msk.bf16.vlgmr.msra.gmra.mrb[88].mxu0 %vm3696_vm0, %v5074_v35 }
 0xc79   : > { %7073 = vmatpush3.bf16.msra.mxu0 %v9355_v12  ;;  %7036 = vmatprep.mubr.msk.bf16.mxu0 %vm3696_vm0, %v5076_v33 }
 0xc7a   : > { %7074 = vmatprep.subr.bf16.mxu0 %v9359_v26 }
 0xc7d   : > { %7075 = vmatpush3.bf16.msra.mxu0 %v9359_v26 }
 0xc7e   : > { %7076 = vmatprep.subr.bf16.mxu0 %v9363_v62 }
 0xc80   : > { %7037 = vmatmul.mubr.msk.bf16.gmra.mrb[92].mxu0 %vm3696_vm0, %v5078_v43 }
 0xc81   : > { %7077 = vmatpush3.bf16.msra.mxu0 %v9363_v62 }
 0xc82   : > { %7078 = vmatprep.subr.bf16.mxu0 %v9367_v56 }
 0xc85   : > { %7079 = vmatpush3.bf16.msra.mxu0 %v9367_v56 }
 0xd0c   : > { %v9713_v49 = vpop.f32.mrb[80].mxu0 }
 0xd0d   : > { %v9715_v55 = vpop.f32.mrb[81].mxu0 }
 0xd0e   : > { %v9717_v20 = vpop.f32.mrb[82].mxu0 }
 0xd0f   : > { %v9719_v40 = vpop.f32.mrb[83].mxu0 }
 0xd43   : > { %v9721_v53 = vpop.f32.mrb[84].mxu0 }
 0xd44   : > { %10272 = vst [vmem:[#allocation40_spill] sm:$0xff] %v9721_v53  ;;  %v9723_v13 = vpop.f32.mrb[85].mxu0 }
 0xd45   : > { %v9725_v51 = vpop.f32.mrb[86].mxu0 }
 0xd46   : > { %10273 = vst [vmem:[#allocation41_spill] sm:$0xff] %v9725_v51  ;;  %v9727_v5 = vpop.f32.mrb[87].mxu0 }
 0xd47   : > { %10274 = vst [vmem:[#allocation42_spill] sm:$0xff] %v9727_v5 }
 0xd4b   : > { %v7034_v48 = vpop.f32.mrb[88].mxu0 }
 0xd4c   : > { %v5158_v34 = vadd.f32 %v9529_v2, %v7034_v48  ;;  %v5149_v37 = vpop.f32.mrb[89].mxu0 }
 0xd4d   : > { %v7035_v27 = vpop.f32.mrb[90].mxu0  ;;  %v5150_v47 = vadd.f32 %v9532_v10, %v5149_v37 }
 0xd4e   : > { %v5152_v63 = vpop.f32.mrb[91].mxu0  ;;  %v5186_v11 = vsel %vm3696_vm0, %v5158_v34, -inf  ;;  %v5161_v32 = vadd.f32 %v9540_v0, %v7035_v27 }
 0xd4f   : > { %v5153_v8 = vadd.f32 %v9536_v39, %v5152_v63  ;;  %5187 = vmax.xlane.f32.xlu0 %v5186_v11  ;;  %v5180_v25 = vsel %vm3696_vm0, %v5150_v47, -inf }
 0xd50   : > { %v5189_v60 = vsel %vm3696_vm0, %v5161_v32, -inf }
 0xd51   : > { %v5183_v28 = vsel %vm3696_vm0, %v5153_v8, -inf }
 0xd52   : > { %5184 = vmax.xlane.f32.xlu1 %v5183_v28 }
 0xd53   : > { %5181 = vmax.xlane.f32.xlu0 %v5180_v25  ;;  %v7038_v30 = vpop.f32.mrb[92].mxu0 }
 0xd54   : > { %v5174_v2 = vadd.f32 %v9544_v16, %v7038_v30  ;;  %v5165_v31 = vpop.f32.mrb[93].mxu0 }
 0xd55   : > { %v7039_v41 = vpop.f32.mrb[94].mxu0  ;;  %v5166_v44 = vadd.f32 %v9549_v14, %v5165_v31 }
 0xd56   : > { %v5168_v46 = vpop.f32.mrb[95].mxu0  ;;  %v5198_v22 = vsel %vm3696_vm0, %v5174_v2, -inf  ;;  %v5177_v58 = vadd.f32 %v9559_v1, %v7039_v41 }
 0xd57   : > { %v5169_v9 = vadd.f32 %v9555_v45, %v5168_v46  ;;  %5190 = vmax.xlane.f32.xlu0 %v5189_v60  ;;  %5199 = vmax.xlane.f32.xlu1 %v5198_v22  ;;  %v5192_v24 = vsel %vm3696_vm0, %v5166_v44, -inf }
 0xd58   : > { %v5201_v16 = vsel %vm3696_vm0, %v5177_v58, -inf }
 0xd59   : > { %v5195_v50 = vsel %vm3696_vm0, %v5169_v9, -inf }
 0xd5b   : > { %5196 = vmax.xlane.f32.xlu0 %v5195_v50  ;;  %5193 = vmax.xlane.f32.xlu1 %v5192_v24 }
 0xd5f   : > { %5202 = vmax.xlane.f32.xlu0 %v5201_v16 }
 0xd6c   : > { %5276 = vrot.lane.b32.xlu1 %v9353_v21, %s8124_s13 }
 0xddc   : > { %v5188_v35 = vpop.xlane.xlu0 %5187 }
 0xddd   : > { %v5206_v33 = vsub.f32 %v5158_v34, %v5188_v35 }
 0xddf   : > { %v5216_v43 = vmul.f32 1.442695, %v5206_v33  ;;  %v5185_v45 = vpop.xlane.xlu1 %5184 }
 0xde0   : > { %v5182_v48 = vpop.xlane.xlu0 %5181  ;;  %v5205_v27 = vsub.f32 %v5153_v8, %v5185_v45 }
 0xde1   : > { %7780 = vpow2.f32 %v5216_v43  ;;  %v5204_v37 = vsub.f32 %v5150_v47, %v5182_v48 }
 0xde2   : > { %v5214_v30 = vmul.f32 1.442695, %v5205_v27 }
 0xde3   : > { %v5212_v63 = vmul.f32 1.442695, %v5204_v37 }
 0xde4   : > { %v5191_v11 = vpop.xlane.xlu0 %5190  ;;  %v5200_v28 = vpop.xlane.xlu1 %5199 }
 0xde5   : > { %7782 = vpow2.f32 %v5212_v63  ;;  %v5207_v25 = vsub.f32 %v5161_v32, %v5191_v11  ;;  %v5210_v43 = vsub.f32 %v5174_v2, %v5200_v28 }
 0xde7   : > { %v5218_v31 = vmul.f32 1.442695, %v5207_v25  ;;  %v5224_v37 = vmul.f32 1.442695, %v5210_v43 }
 0xde8   : > { %v5194_v41 = vpop.xlane.xlu1 %5193  ;;  %v5197_v24 = vpop.xlane.xlu0 %5196 }
 0xde9   : > { %7784 = vpow2.f32 %v5218_v31  ;;  %v5209_v16 = vsub.f32 %v5169_v9, %v5197_v24  ;;  %v5208_v33 = vsub.f32 %v5166_v44, %v5194_v41 }
 0xdea   : > { %7786 = vpow2.f32 %v5214_v30 }
 0xdeb   : > { %v9747_v46 = vpop.eup %7780  ;;  %v5222_v35 = vmul.f32 1.442695, %v5209_v16  ;;  %v5220_v45 = vmul.f32 1.442695, %v5208_v33 }
 0xdec   : > { %v5277_v21 = vpop.permute.xlu1 %5276  ;;  %v5234_v34 = vsel %vm3696_vm0, %v9747_v46, 0.0  ;;  %v5203_v48 = vpop.xlane.xlu0 %5202 }
 0xded   : > { %5235 = vadd.xlane.f32.xlu1 %v5234_v34  ;;  %7040 = vmatprep.subr.bf16.mxu1 %v5277_v21  ;;  %7788 = vpow2.f32 %v5222_v35  ;;  %v5211_v27 = vsub.f32 %v5177_v58, %v5203_v48 }
 0xdee   : > { %7041 = vmatpush3.bf16.msra.mxu1 %v5277_v21  ;;  %7790 = vpow2.f32 %v5220_v45 }
 0xdef   : > { %v7783_v47 = vpop.eup %7782  ;;  %7792 = vpow2.f32 %v5224_v37  ;;  %v5226_v63 = vmul.f32 1.442695, %v5211_v27  ;;  %v5378_v37 = vsel %vm3696_vm0, %v9294_v54, 0 }
 0xdf0   : > { %v5228_v8 = vsel %vm3696_vm0, %v7783_v47, 0.0 }
 0xdf1   : > { %5229 = vadd.xlane.f32.xlu1 %v5228_v8  ;;  %7794 = vpow2.f32 %v5226_v63 }
 0xdf3   : > { %v7785_v60 = vpop.eup %7784 }
 0xdf4   : > { %v5237_v32 = vsel %vm3696_vm0, %v7785_v60, 0.0  ;;  %v7787_v22 = vpop.eup %7786 }
 0xdf5   : > { %5238 = vadd.xlane.f32.xlu0 %v5237_v32  ;;  %v5231_v50 = vsel %vm3696_vm0, %v7787_v22, 0.0 }
 0xdf9   : > { %5232 = vadd.xlane.f32.xlu0 %v5231_v50 }
 0xe02   : > { %5280 = vrot.lane.b32.xlu1 %v9361_v4, %s8124_s13  ;;  %v9760_v4 = vpop.eup %7788 }
 0xe06   : > { %5282 = vrot.lane.b32.xlu1 %v9365_v52, %s8124_s13  ;;  %v5243_v52 = vsel %vm3696_vm0, %v9760_v4, 0.0 }
 0xe0f   : > { %5278 = vrot.lane.b32.xlu0 %v9357_v61, %s8124_s13  ;;  %v7791_v61 = vpop.eup %7790 }
 0xe10   : > { %v5240_v9 = vsel %vm3696_vm0, %v7791_v61, 0.0  ;;  %v9765_v44 = vpop.eup %7792 }
 0xe11   : > { %v5246_v2 = vsel %vm3696_vm0, %v9765_v44, 0.0  ;;  %v7795_v11 = vpop.eup %7794 }
 0xe12   : > { %v5249_v58 = vsel %vm3696_vm0, %v7795_v11, 0.0 }
 0xe2a   : > { %5244 = vadd.xlane.f32.xlu1 %v5243_v52 }
 0xe2e   : > { %5241 = vadd.xlane.f32.xlu0 %v5240_v9 }
 0xe32   : > { %5247 = vadd.xlane.f32.xlu0 %v5246_v2 }
 0xe36   : > { %5250 = vadd.xlane.f32.xlu0 %v5249_v58 }
 0xe7a   : > { %v5236_v28 = vpop.xlane.xlu1 %5235 }
 0xe7e   : > { %v5230_v25 = vpop.xlane.xlu1 %5229 }
 0xe82   : > { %v5239_v30 = vpop.xlane.xlu0 %5238  ;;  %v5281_v41 = vpop.permute.xlu1 %5280 }
 0xe83   : > { %7796 = vrcp.f32 %v5239_v30 }
 0xe84   : > { %7798 = vrcp.f32 %v5230_v25 }
 0xe85   : > { %7800 = vrcp.f32 %v5236_v28 }
 0xe86   : > { %v5233_v31 = vpop.xlane.xlu0 %5232  ;;  %v5283_v50 = vpop.permute.xlu1 %5282 }
 0xe87   : > { %7802 = vrcp.f32 %v5233_v31 }
 0xe8a   : > { %v5279_v21 = vpop.permute.xlu0 %5278 }
 0xe8b   : > { %7042 = vmatprep.subr.bf16.mxu1 %v5279_v21 }
 0xe8c   : > { %7043 = vmatpush3.bf16.msra.mxu1 %v5279_v21 }
 0xe8d   : > { %7044 = vmatprep.subr.bf16.mxu1 %v5281_v41  ;;  %v7797_v34 = vpop.eup %7796 }
 0xe8e   : > { %v7799_v8 = vpop.eup %7798  ;;  %v5263_v16 = vmul.f32 %v7797_v34, %v7785_v60  ;;  %v5387_v60 = vsel %vm3696_vm0, %v9347_v19, 0 }
 0xe8f   : > { %v7801_v32 = vpop.eup %7800  ;;  %v5260_v35 = vmul.f32 %v7799_v8, %v7783_v47  ;;  %v5384_v47 = vsel %vm3696_vm0, %v9339_v3, 0  ;;  %v10275_v8 = vld [vmem:[#allocation15_spill] sm:$0xff] }
 0xe90   : > { %7045 = vmatpush3.bf16.msra.mxu1 %v5281_v41  ;;  %v5262_v43 = vmul.f32 %v7801_v32, %v9747_v46  ;;  %v5381_v46 = vsel %vm3696_vm0, %v9334_v57, 0  ;;  %v10276_v32 = vld [vmem:[#allocation17_spill] sm:$0xff] }
 0xe91   : > { %v7803_v24 = vpop.eup %7802  ;;  %7046 = vmatprep.subr.bf16.mxu1 %v5283_v50 }
 0xe92   : > { %v5261_v33 = vmul.f32 %v7803_v24, %v7787_v22  ;;  %v5269_v48 = vpack.c.bf16 %v5263_v16, %v5262_v43 }
 0xe94   : > { %7047 = vmatpush3.bf16.msra.mxu1 %v5283_v50  ;;  %v5268_v45 = vpack.c.bf16 %v5261_v33, %v5260_v35 }
 0xe95   : > { %7336 = vmatprep.subr.msk.bf16.mxu1 %vm3696_vm0, %v9294_v54 }
 0xe96   : > { %7048 = vmatprep.mubr.msk.bf16.mxu1 %vm3696_vm0, %v5268_v45 }
 0xe97   : > { %7049 = vmatmul.mubr.msk.bf16.vlgmr.msra.gmra.mrb[88].mxu1 %vm3696_vm0, %v5269_v48 }
 0xe9d   : > { %7057 = vmatpush3.bf16.xpose.msra.mxu1 %v5378_v37 }
 0xe9e   : > { %7337 = vmatprep.subr.msk.bf16.mxu1 %vm3696_vm0, %v9334_v57 }
 0xea5   : > { %7059 = vmatpush3.bf16.xpose.msra.mxu1 %v5381_v46 }
 0xea6   : > { %7338 = vmatprep.subr.msk.bf16.mxu1 %vm3696_vm0, %v9339_v3 }
 0xead   : > { %7061 = vmatpush3.bf16.xpose.msra.mxu1 %v5384_v47 }
 0xeae   : > { %7339 = vmatprep.subr.msk.bf16.mxu1 %vm3696_vm0, %v9347_v19 }
 0xeb5   : > { %7063 = vmatpush3.bf16.xpose.msra.mxu1 %v5387_v60  ;;  %v9818_v60 = vld [vmem:[#allocation8 + $0x10] sm:$0xff] }
 0xeb7   : > { %v5245_v22 = vpop.xlane.xlu1 %5244 }
 0xeb8   : > { %7804 = vrcp.f32 %v5245_v22 }
 0xebb   : > { %v5242_v27 = vpop.xlane.xlu0 %5241 }
 0xebc   : > { %7806 = vrcp.f32 %v5242_v27 }
 0xebf   : > { %v5248_v63 = vpop.xlane.xlu0 %5247 }
 0xec0   : > { %7808 = vrcp.f32 %v5248_v63 }
 0xec2   : > { %v7805_v9 = vpop.eup %7804 }
 0xec3   : > { %v5251_v52 = vpop.xlane.xlu0 %5250  ;;  %v5265_v28 = vmul.f32 %v7805_v9, %v9760_v4  ;;  %v10278_v4 = vld [vmem:[#allocation20_spill] sm:$0xff] }
 0xec4   : > { %7810 = vrcp.f32 %v5251_v52 }
 0xec6   : > { %v7807_v2 = vpop.eup %7806 }
 0xec7   : > { %v5264_v58 = vmul.f32 %v7807_v2, %v7791_v61  ;;  %v10277_v61 = vld [vmem:[#allocation18_spill] sm:$0xff] }
 0xec9   : > { %v5270_v25 = vpack.c.bf16 %v5265_v28, %v5264_v58 }
 0xeca   : > { %v7809_v30 = vpop.eup %7808 }
 0xecb   : > { %7052 = vmatprep.mubr.msk.bf16.mxu1 %vm3696_vm0, %v5270_v25  ;;  %v5266_v41 = vmul.f32 %v7809_v30, %v9765_v44 }
 0xece   : > { %v7811_v31 = vpop.eup %7810 }
 0xecf   : > { %v5267_v21 = vmul.f32 %v7811_v31, %v7795_v11  ;;  %v9830_v31 = vld [vmem:[#allocation8 + $0x30] sm:$0xff] }
 0xed1   : > { %v5271_v34 = vpack.c.bf16 %v5267_v21, %v5266_v41  ;;  %v9833_v41 = vld [vmem:[#allocation8 + $0x28] sm:$0xff] }
 0xed3   : > { %7053 = vmatmul.mubr.msk.bf16.gmra.mrb[92].mxu1 %vm3696_vm0, %v5271_v34 }
 0xed4   : > { %7064 = vmatprep.mubr.msk.bf16.mxu1 %vm3696_vm0, %v10275_v8 }
 0xedb   : > { %7065 = vmatmul.mubr.msk.bf16.vlgmr.msra.gmra.mrb[96].mxu1 %vm3696_vm0, %v10276_v32 }
 0xedc   : > { %7068 = vmatprep.mubr.msk.bf16.mxu1 %vm3696_vm0, %v10277_v61 }
 0xee3   : > { %7069 = vmatmul.mubr.msk.bf16.gmra.mrb[100].mxu1 %vm3696_vm0, %v10278_v4 }
 0xf6a   : > { %v9801_v50 = vpop.f32.mrb[88].mxu1 }
 0xf6b   : > { %v9803_v24 = vpop.f32.mrb[89].mxu1 }
 0xf6c   : > { %v9805_v44 = vpop.f32.mrb[90].mxu1 }
 0xf6d   : > { %v9807_v11 = vpop.f32.mrb[91].mxu1 }
 0xfa6   : > { %v9809_v16 = vpop.f32.mrb[92].mxu1 }
 0xfa7   : > { %v9811_v35 = vpop.f32.mrb[93].mxu1 }
 0xfa8   : > { %v9813_v33 = vpop.f32.mrb[94].mxu1 }
 0xfa9   : > { %v9815_v43 = vpop.f32.mrb[95].mxu1 }
 0xfae   : > { %v7066_v45 = vpop.f32.mrb[96].mxu1 }
 0xfaf   : > { %v5423_v48 = vpop.f32.mrb[97].mxu1  ;;  %v5432_v22 = vadd.f32 %v9818_v60, %v7066_v45 }
 0xfb0   : > { %v5424_v37 = vadd.f32 %v9532_v10, %v5423_v48  ;;  %v7067_v46 = vpop.f32.mrb[98].mxu1 }
 0xfb1   : > { %v5426_v47 = vpop.f32.mrb[99].mxu1  ;;  %v5435_v52 = vadd.f32 %v9540_v0, %v7067_v46  ;;  %v5460_v58 = vsel %vm3696_vm0, %v5432_v22, -inf }
 0xfb2   : > { %v5427_v27 = vadd.f32 %v9536_v39, %v5426_v47  ;;  %v5454_v63 = vsel %vm3696_vm0, %v5424_v37, -inf }
 0xfb3   : > { %5455 = vmax.xlane.f32.xlu1 %v5454_v63  ;;  %v5463_v30 = vsel %vm3696_vm0, %v5435_v52, -inf }
 0xfb4   : > { %v5457_v9 = vsel %vm3696_vm0, %v5427_v27, -inf }
 0xfb5   : > { %5458 = vmax.xlane.f32.xlu0 %v5457_v9 }
 0xfb6   : > { %v7070_v2 = vpop.f32.mrb[100].mxu1 }
 0xfb7   : > { %v5439_v10 = vpop.f32.mrb[101].mxu1  ;;  %5461 = vmax.xlane.f32.xlu1 %v5460_v58  ;;  %v5448_v0 = vadd.f32 %v9830_v31, %v7070_v2 }
 0xfb8   : > { %v9827_v28 = vadd.f32 %v9549_v14, %v5439_v10  ;;  %v7071_v25 = vpop.f32.mrb[102].mxu1 }
 0xfb9   : > { %v5442_v39 = vpop.f32.mrb[103].mxu1  ;;  %5464 = vmax.xlane.f32.xlu0 %v5463_v30  ;;  %v5451_v14 = vadd.f32 %v9559_v1, %v7071_v25  ;;  %v5472_v48 = vsel %vm3696_vm0, %v5448_v0, -inf }
 0xfba   : > { %v5443_v21 = vadd.f32 %v9833_v41, %v5442_v39  ;;  %v5466_v34 = vsel %vm3696_vm0, %v9827_v28, -inf }
 0xfbb   : > { %5467 = vmax.xlane.f32.xlu1 %v5466_v34  ;;  %v5475_v46 = vsel %vm3696_vm0, %v5451_v14, -inf }
 0xfbc   : > { %v5469_v45 = vsel %vm3696_vm0, %v5443_v21, -inf }
 0xfbd   : > { %5470 = vmax.xlane.f32.xlu0 %v5469_v45 }
 0xfbf   : > { %5473 = vmax.xlane.f32.xlu1 %v5472_v48 }
 0xfc1   : > { %5476 = vmax.xlane.f32.xlu0 %v5475_v46 }
0x1040   : > { %v5456_v47 = vpop.xlane.xlu1 %5455 }
0x1041   : > { %v5478_v63 = vsub.f32 %v5424_v37, %v5456_v47 }
0x1042   : > { %v5459_v9 = vpop.xlane.xlu0 %5458 }
0x1043   : > { %v5479_v58 = vsub.f32 %v5427_v27, %v5459_v9  ;;  %v5486_v30 = vmul.f32 1.442695, %v5478_v63 }
0x1044   : > { %v5462_v2 = vpop.xlane.xlu1 %5461 }
0x1045   : > { %v5480_v10 = vsub.f32 %v5432_v22, %v5462_v2  ;;  %v5488_v1 = vmul.f32 1.442695, %v5479_v58 }
0x1046   : > { %v5465_v39 = vpop.xlane.xlu0 %5464 }
0x1047   : > { %v5490_v34 = vmul.f32 1.442695, %v5480_v10  ;;  %v5481_v51 = vsub.f32 %v5435_v52, %v5465_v39 }
0x1048   : > { %v5468_v58 = vpop.xlane.xlu1 %5467 }
0x1049   : > { %7812 = vpow2.f32 %v5490_v34  ;;  %v5492_v25 = vmul.f32 1.442695, %v5481_v51  ;;  %v5482_v39 = vsub.f32 %v9827_v28, %v5468_v58 }
0x104a   : > { %7814 = vpow2.f32 %v5486_v30  ;;  %v5471_v45 = vpop.xlane.xlu0 %5470 }
0x104b   : > { %7816 = vpow2.f32 %v5492_v25  ;;  %v5483_v48 = vsub.f32 %v5443_v21, %v5471_v45 }
0x104c   : > { %7818 = vpow2.f32 %v5488_v1  ;;  %v5474_v10 = vpop.xlane.xlu1 %5473  ;;  %v5494_v1 = vmul.f32 1.442695, %v5482_v39 }
0x104d   : > { %v5496_v5 = vmul.f32 1.442695, %v5483_v48  ;;  %v5484_v30 = vsub.f32 %v5448_v0, %v5474_v10 }
0x104e   : > { %v5477_v53 = vpop.xlane.xlu0 %5476 }
0x104f   : > { %v5485_v46 = vsub.f32 %v5451_v14, %v5477_v53  ;;  %v5498_v34 = vmul.f32 1.442695, %v5484_v30 }
0x1051   : > { %v5500_v37 = vmul.f32 1.442695, %v5485_v46 }
0x1053   : > { %v7813_v47 = vpop.eup %7812  ;;  %7820 = vpow2.f32 %v5500_v37 }
0x1054   : > { %v7815_v27 = vpop.eup %7814  ;;  %v5508_v22 = vsel %vm3696_vm0, %v7813_v47, 0.0  ;;  %7822 = vpow2.f32 %v5496_v5 }
0x1055   : > { %v7817_v63 = vpop.eup %7816  ;;  %5509 = vadd.xlane.f32.xlu1 %v5508_v22  ;;  %v5502_v9 = vsel %vm3696_vm0, %v7815_v27, 0.0  ;;  %7824 = vpow2.f32 %v5498_v34 }
0x1056   : > { %v5511_v52 = vsel %vm3696_vm0, %v7817_v63, 0.0  ;;  %v7819_v51 = vpop.eup %7818  ;;  %7826 = vpow2.f32 %v5494_v1 }
0x1057   : > { %5512 = vadd.xlane.f32.xlu0 %v5511_v52  ;;  %v5505_v21 = vsel %vm3696_vm0, %v7819_v51, 0.0 }
0x1059   : > { %5503 = vadd.xlane.f32.xlu1 %v5502_v9 }
0x105b   : > { %5506 = vadd.xlane.f32.xlu0 %v5505_v21 }
0x105d   : > { %v9846_v53 = vpop.eup %7820 }
0x105e   : > { %v5523_v14 = vsel %vm3696_vm0, %v9846_v53, 0.0  ;;  %v9850_v2 = vpop.eup %7822 }
0x105f   : > { %5524 = vadd.xlane.f32.xlu0 %v5523_v14  ;;  %v5517_v5 = vsel %vm3696_vm0, %v9850_v2, 0.0  ;;  %v7825_v25 = vpop.eup %7824 }
0x1060   : > { %v7827_v45 = vpop.eup %7826 }
0x1061   : > { %v5514_v0 = vsel %vm3696_vm0, %v7827_v45, 0.0 }
0x1063   : > { %5518 = vadd.xlane.f32.xlu0 %v5517_v5 }
0x106a   : > { %5639 = vrot.lane.b32.xlu1 %v9294_v54, %s8124_s13  ;;  %v5520_v54 = vsel %vm3696_vm0, %v7825_v25, 0.0 }
0x1079   : > { %5641 = vrot.lane.b32.xlu0 %v9334_v57, %s8124_s13 }
0x107d   : > { %5627 = vrot.lane.b32.xlu0 %v10275_v8, %s8124_s13 }
0x1081   : > { %5631 = vrot.lane.b32.xlu0 %v10277_v61, %s8124_s13 }
0x108e   : > { %5521 = vadd.xlane.f32.xlu1 %v5520_v54 }
0x1092   : > { %5515 = vadd.xlane.f32.xlu1 %v5514_v0 }
0x10a3   : > { %5643 = vrot.lane.b32.xlu1 %v9339_v3, %s8124_s13 }
0x10a7   : > { %5645 = vrot.lane.b32.xlu1 %v9347_v19, %s8124_s13 }
0x10ab   : > { %5629 = vrot.lane.b32.xlu1 %v10276_v32, %s8124_s13 }
0x10af   : > { %5633 = vrot.lane.b32.xlu1 %v10278_v4, %s8124_s13 }
0x10e2   : > { %v5510_v57 = vpop.xlane.xlu1 %5509 }
0x10e4   : > { %v5513_v8 = vpop.xlane.xlu0 %5512 }
0x10e5   : > { %7828 = vrcp.f32 %v5513_v8 }
0x10e6   : > { %v5504_v61 = vpop.xlane.xlu1 %5503 }
0x10e7   : > { %7830 = vrcp.f32 %v5504_v61 }
0x10e8   : > { %7832 = vrcp.f32 %v5510_v57  ;;  %v5507_v28 = vpop.xlane.xlu0 %5506 }
0x10e9   : > { %7834 = vrcp.f32 %v5507_v28 }
0x10ea   : > { %v5640_v48 = vpop.permute.xlu1 %5639 }
0x10eb   : > { %7340 = vmatprep.subr.msk.bf16.mxu0 %vm3696_vm0, %v5640_v48  ;;  %v5660_v58 = vsel %vm3696_vm0, %v5640_v48, 0 }
0x10ec   : > { %v5525_v3 = vpop.xlane.xlu0 %5524 }
0x10ef   : > { %v7829_v46 = vpop.eup %7828 }
0x10f0   : > { %v5537_v32 = vmul.f32 %v7829_v46, %v7817_v63  ;;  %v5519_v52 = vpop.xlane.xlu0 %5518 }
0x10f1   : > { %v7831_v19 = vpop.eup %7830 }
0x10f2   : > { %v7833_v37 = vpop.eup %7832  ;;  %v5534_v9 = vmul.f32 %v7831_v19, %v7815_v27 }
0x10f3   : > { %v7835_v22 = vpop.eup %7834  ;;  %v5536_v21 = vmul.f32 %v7833_v37, %v7813_v47 }
0x10f4   : > { %v5535_v4 = vmul.f32 %v7835_v22, %v7819_v51  ;;  %v5642_v10 = vpop.permute.xlu0 %5641 }
0x10f5   : > { %v5543_v5 = vpack.c.bf16 %v5537_v32, %v5536_v21  ;;  %v5663_v30 = vsel %vm3696_vm0, %v5642_v10, 0 }
0x10f6   : > { %v5542_v14 = vpack.c.bf16 %v5535_v4, %v5534_v9 }
0x10f8   : > { %7080 = vmatprep.mubr.msk.bf16.mxu0 %vm3696_vm0, %v5542_v14  ;;  %v5628_v19 = vpop.permute.xlu0 %5627 }
0x10f9   : > { %7081 = vmatmul.mubr.msk.bf16.vlgmr.msra.gmra.mrb[96].mxu0 %vm3696_vm0, %v5543_v5 }
0x10fa   : > { %7089 = vmatpush3.bf16.xpose.msra.mxu0 %v5660_v58  ;;  %v7889_v58 = vld [vmem:[#allocation8] sm:$0xff] }
0x10fb   : > { %7341 = vmatprep.subr.msk.bf16.mxu0 %vm3696_vm0, %v5642_v10 }
0x10fc   : > { %v5632_v22 = vpop.permute.xlu0 %5631 }
0x1102   : > { %7091 = vmatpush3.bf16.xpose.msra.mxu0 %v5663_v30 }
0x111b   : > { %v5522_v63 = vpop.xlane.xlu1 %5521 }
0x111c   : > { %7836 = vrcp.f32 %v5522_v63 }
0x111d   : > { %7838 = vrcp.f32 %v5519_v52 }
0x111e   : > { %7840 = vrcp.f32 %v5525_v3 }
0x111f   : > { %v5516_v47 = vpop.xlane.xlu1 %5515 }
0x1120   : > { %7842 = vrcp.f32 %v5516_v47 }
0x1123   : > { %v5644_v27 = vpop.permute.xlu1 %5643 }
0x1124   : > { %v5666_v51 = vsel %vm3696_vm0, %v5644_v27, 0  ;;  %7342 = vmatprep.subr.msk.bf16.mxu0 %vm3696_vm0, %v5644_v27  ;;  %v7890_v27 = vld [vmem:[#allocation8 + $0x8] sm:$0xff] }
0x1125   : > { %7093 = vmatpush3.bf16.xpose.msra.mxu0 %v5666_v51 }
0x1126   : > { %v7837_v39 = vpop.eup %7836 }
0x1127   : > { %v5646_v34 = vpop.permute.xlu1 %5645  ;;  %v7839_v1 = vpop.eup %7838  ;;  %v5540_v57 = vmul.f32 %v7837_v39, %v7825_v25 }
0x1128   : > { %7343 = vmatprep.subr.msk.bf16.mxu0 %vm3696_vm0, %v5646_v34  ;;  %v7841_v54 = vpop.eup %7840  ;;  %v5539_v61 = vmul.f32 %v7839_v1, %v9850_v2  ;;  %v5669_v28 = vsel %vm3696_vm0, %v5646_v34, 0  ;;  %v7891_v1 = vld [vmem:[#allocation8 + $0x18] sm:$0xff] }
0x1129   : > { %v5541_v48 = vmul.f32 %v7841_v54, %v9846_v53 }
0x112a   : > { %v7843_v0 = vpop.eup %7842 }
0x112b   : > { %v5538_v8 = vmul.f32 %v7843_v0, %v7827_v45  ;;  %v5545_v46 = vpack.c.bf16 %v5541_v48, %v5540_v57  ;;  %v5630_v37 = vpop.permute.xlu1 %5629 }
0x112d   : > { %7095 = vmatpush3.bf16.xpose.msra.mxu0 %v5669_v28  ;;  %v5544_v3 = vpack.c.bf16 %v5539_v61, %v5538_v8  ;;  %v7892_v61 = vld [vmem:[#allocation8 + $0x20] sm:$0xff] }
0x112f   : > { %7084 = vmatprep.mubr.msk.bf16.mxu0 %vm3696_vm0, %v5544_v3  ;;  %v5634_v2 = vpop.permute.xlu1 %5633 }
0x1130   : > { %7085 = vmatmul.mubr.msk.bf16.gmra.mrb[100].mxu0 %vm3696_vm0, %v5545_v46 }
0x1131   : > { %7096 = vmatprep.mubr.msk.bf16.mxu0 %vm3696_vm0, %v5628_v19 }
0x1138   : > { %7097 = vmatmul.mubr.msk.bf16.vlgmr.msra.gmra.mrb[104].mxu0 %vm3696_vm0, %v5630_v37 }
0x1139   : > { %7100 = vmatprep.mubr.msk.bf16.mxu0 %vm3696_vm0, %v5632_v22  ;;  %v7893_v22 = vld [vmem:[#allocation8 + $0x38] sm:$0xff] }
0x1140   : > { %7101 = vmatmul.mubr.msk.bf16.gmra.mrb[108].mxu0 %vm3696_vm0, %v5634_v2 }
0x11cc   : > { %v9891_v53 = vpop.f32.mrb[96].mxu0 }
0x11cd   : > { %v9893_v25 = vpop.f32.mrb[97].mxu0 }
0x11ce   : > { %v9895_v45 = vpop.f32.mrb[98].mxu0 }
0x11cf   : > { %v9897_v32 = vpop.f32.mrb[99].mxu0 }
0x1203   : > { %v9899_v52 = vpop.f32.mrb[100].mxu0 }
0x1204   : > { %v9901_v9 = vpop.f32.mrb[101].mxu0 }
0x1205   : > { %v9903_v4 = vpop.f32.mrb[102].mxu0 }
0x1206   : > { %v9905_v21 = vpop.f32.mrb[103].mxu0 }
0x120b   : > { %v7098_v14 = vpop.f32.mrb[104].mxu0 }
0x120c   : > { %v5705_v5 = vpop.f32.mrb[105].mxu0  ;;  %v5714_v47 = vadd.f32 %v9818_v60, %v7098_v14 }
0x120d   : > { %v5706_v10 = vadd.f32 %v7889_v58, %v5705_v5  ;;  %v7099_v30 = vpop.f32.mrb[106].mxu0 }
0x120e   : > { %v5708_v63 = vpop.f32.mrb[107].mxu0  ;;  %v5717_v54 = vadd.f32 %v7891_v1, %v7099_v30  ;;  %v5742_v57 = vsel %vm3696_vm0, %v5714_v47, -inf }
0x120f   : > { %v5709_v51 = vadd.f32 %v7890_v27, %v5708_v63  ;;  %v5736_v39 = vsel %vm3696_vm0, %v5706_v10, -inf }
0x1210   : > { %5737 = vmax.xlane.f32.xlu0 %v5736_v39  ;;  %v5745_v19 = vsel %vm3696_vm0, %v5717_v54, -inf }
0x1211   : > { %v5739_v34 = vsel %vm3696_vm0, %v5709_v51, -inf }
0x1212   : > { %5740 = vmax.xlane.f32.xlu1 %v5739_v34 }
0x1213   : > { %v7102_v0 = vpop.f32.mrb[108].mxu0 }
0x1214   : > { %5743 = vmax.xlane.f32.xlu0 %v5742_v57  ;;  %v5721_v8 = vpop.f32.mrb[109].mxu0  ;;  %v5730_v60 = vadd.f32 %v9830_v31, %v7102_v0 }
0x1215   : > { %v5722_v28 = vadd.f32 %v7892_v61, %v5721_v8  ;;  %v7103_v48 = vpop.f32.mrb[110].mxu0 }
0x1216   : > { %v5724_v3 = vpop.f32.mrb[111].mxu0  ;;  %v5733_v2 = vadd.f32 %v7893_v22, %v7103_v48  ;;  %v5754_v5 = vsel %vm3696_vm0, %v5730_v60, -inf }
0x1217   : > { %v5725_v46 = vadd.f32 %v9833_v41, %v5724_v3  ;;  %v5748_v37 = vsel %vm3696_vm0, %v5722_v28, -inf }
0x1218   : > { %5746 = vmax.xlane.f32.xlu0 %v5745_v19  ;;  %5749 = vmax.xlane.f32.xlu1 %v5748_v37  ;;  %v5757_v58 = vsel %vm3696_vm0, %v5733_v2, -inf }
0x1219   : > { %v5751_v14 = vsel %vm3696_vm0, %v5725_v46, -inf }
0x121c   : > { %5752 = vmax.xlane.f32.xlu0 %v5751_v14  ;;  %5755 = vmax.xlane.f32.xlu1 %v5754_v5 }
0x1220   : > { %5758 = vmax.xlane.f32.xlu0 %v5757_v58 }
0x122d   : > { %5832 = vrot.lane.b32.xlu1 %v9355_v12, %s8124_s13 }
0x129d   : > { %v5738_v31 = vpop.xlane.xlu0 %5737 }
0x129e   : > { %v5760_v41 = vsub.f32 %v5706_v10, %v5738_v31 }
0x129f   : > { %v5741_v30 = vpop.xlane.xlu1 %5740 }
0x12a0   : > { %v5768_v39 = vmul.f32 1.442695, %v5760_v41  ;;  %v5761_v34 = vsub.f32 %v5709_v51, %v5741_v30 }
0x12a1   : > { %v5744_v63 = vpop.xlane.xlu0 %5743 }
0x12a2   : > { %v5762_v27 = vsub.f32 %v5714_v47, %v5744_v63  ;;  %v5770_v61 = vmul.f32 1.442695, %v5761_v34 }
0x12a4   : > { %v5772_v1 = vmul.f32 1.442695, %v5762_v27 }
0x12a5   : > { %v5747_v0 = vpop.xlane.xlu0 %5746  ;;  %v5750_v57 = vpop.xlane.xlu1 %5749 }
0x12a6   : > { %7844 = vpow2.f32 %v5772_v1  ;;  %v5763_v8 = vsub.f32 %v5717_v54, %v5747_v0  ;;  %v5764_v3 = vsub.f32 %v5722_v28, %v5750_v57 }
0x12a7   : > { %7846 = vpow2.f32 %v5768_v39 }
0x12a8   : > { %v5774_v48 = vmul.f32 1.442695, %v5763_v8  ;;  %v5776_v14 = vmul.f32 1.442695, %v5764_v3 }
0x12a9   : > { %v5753_v19 = vpop.xlane.xlu0 %5752  ;;  %v5756_v37 = vpop.xlane.xlu1 %5755 }
0x12aa   : > { %7848 = vpow2.f32 %v5774_v48  ;;  %v5766_v12 = vsub.f32 %v5730_v60, %v5756_v37  ;;  %v5765_v10 = vsub.f32 %v5725_v46, %v5753_v19  ;;  %v10284_v19 = vld [vmem:[#allocation22_spill] sm:$0xff] }
0x12ab   : > { %7850 = vpow2.f32 %v5770_v61 }
0x12ac   : > { %v5780_v22 = vmul.f32 1.442695, %v5766_v12  ;;  %v5778_v54 = vmul.f32 1.442695, %v5765_v10 }
0x12ad   : > { %v5759_v47 = vpop.xlane.xlu0 %5758  ;;  %v5833_v5 = vpop.permute.xlu1 %5832 }
0x12ae   : > { %v5767_v51 = vsub.f32 %v5733_v2, %v5759_v47  ;;  %7104 = vmatprep.subr.bf16.mxu1 %v5833_v5  ;;  %7852 = vpow2.f32 %v5780_v22  ;;  %v7894_v22 = vld [vmem:[%s8361_s8] sm:$0xff]  ;;  %v10285_v47 = vld [vmem:[#allocation24_spill] sm:$0xff] }
0x12af   : > { %7105 = vmatpush3.bf16.msra.mxu1 %v5833_v5  ;;  %7854 = vpow2.f32 %v5776_v14 }
0x12b0   : > { %v9920_v58 = vpop.eup %7844  ;;  %v5782_v31 = vmul.f32 1.442695, %v5767_v51 }
0x12b1   : > { %v5790_v28 = vsel %vm3696_vm0, %v9920_v58, 0.0  ;;  %v9924_v41 = vpop.eup %7846 }
0x12b2   : > { %7856 = vpow2.f32 %v5782_v31  ;;  %5791 = vadd.xlane.f32.xlu1 %v5790_v28  ;;  %v5784_v2 = vsel %vm3696_vm0, %v9924_v41, 0.0  ;;  %v7895_v31 = vld [vmem:[%s8361_s8 + $0x20] sm:$0xff] }
0x12b3   : > { %7858 = vpow2.f32 %v5778_v54 }
0x12b4   : > { %v9926_v60 = vpop.eup %7848 }
0x12b5   : > { %v5793_v46 = vsel %vm3696_vm0, %v9926_v60, 0.0  ;;  %v9932_v30 = vpop.eup %7850 }
0x12b6   : > { %5794 = vadd.xlane.f32.xlu0 %v5793_v46  ;;  %5785 = vadd.xlane.f32.xlu1 %v5784_v2  ;;  %v5787_v27 = vsel %vm3696_vm0, %v9932_v30, 0.0 }
0x12b8   : > { %v9934_v63 = vpop.eup %7852 }
0x12b9   : > { %v5802_v39 = vsel %vm3696_vm0, %v9934_v63, 0.0  ;;  %v9940_v34 = vpop.eup %7854 }
0x12ba   : > { %5788 = vadd.xlane.f32.xlu0 %v5787_v27  ;;  %5803 = vadd.xlane.f32.xlu1 %v5802_v39  ;;  %v5796_v8 = vsel %vm3696_vm0, %v9940_v34, 0.0  ;;  %v7896_v39 = vld [vmem:[%s8361_s8 + $0x40] sm:$0xff] }
0x12bc   : > { %v9942_v1 = vpop.eup %7856 }
0x12bd   : > { %v5805_v0 = vsel %vm3696_vm0, %v9942_v1, 0.0  ;;  %v9946_v57 = vpop.eup %7858 }
0x12be   : > { %5806 = vadd.xlane.f32.xlu0 %v5805_v0  ;;  %5797 = vadd.xlane.f32.xlu1 %v5796_v8  ;;  %v5799_v61 = vsel %vm3696_vm0, %v9946_v57, 0.0  ;;  %v10287_v8 = vld [vmem:[#allocation23_spill] sm:$0xff] }
0x12c2   : > { %5800 = vadd.xlane.f32.xlu0 %v5799_v61 }
0x12cf   : > { %5836 = vrot.lane.b32.xlu1 %v9363_v62, %s8124_s13  ;;  %v10280_v62 = vld [vmem:[#allocation16_spill] sm:$0xff] }
0x12d3   : > { %5838 = vrot.lane.b32.xlu1 %v9367_v56, %s8124_s13  ;;  %v10281_v56 = vld [vmem:[#allocation38_spill] sm:$0xff] }
0x12d7   : > { %5931 = vrot.lane.b32.xlu1 %v9427_v36, %s8124_s13 }
0x12d8   : > { %5834 = vrot.lane.b32.xlu0 %v9359_v26, %s8124_s13  ;;  %v10279_v26 = vld [vmem:[#allocation39_spill] sm:$0xff] }
0x12db   : > { %5935 = vrot.lane.b32.xlu1 %v9425_v18, %s8124_s13 }
0x12dc   : > { %5929 = vrot.lane.b32.xlu0 %v9423_v17, %s8124_s13  ;;  %v10283_v17 = vld [vmem:[#allocation19_spill] sm:$0xff] }
0x12df   : > { %5939 = vrot.lane.b32.xlu1 %v9435_v38, %s8124_s13 }
0x12e0   : > { %5933 = vrot.lane.b32.xlu0 %v9421_v15, %s8124_s13  ;;  %v10282_v15 = vld [vmem:[#allocation37_spill] sm:$0xff] }
0x12e3   : > { %5943 = vrot.lane.b32.xlu1 %v9433_v6, %s8124_s13 }
0x12e4   : > { %5937 = vrot.lane.b32.xlu0 %v9431_v23, %s8124_s13 }
0x12e7   : > { %5963 = vrot.lane.b32.xlu1 %v9627_v42, %s8124_s13 }
0x12e8   : > { %5941 = vrot.lane.b32.xlu0 %v9429_v29, %s8124_s13 }
0x12eb   : > { %5967 = vrot.lane.b32.xlu1 %v9625_v59, %s8124_s13 }
0x12ec   : > { %5961 = vrot.lane.b32.xlu0 %v9623_v7, %s8124_s13 }
0x12ef   : > { %5971 = vrot.lane.b32.xlu1 %v10279_v26, %s8124_s13 }
0x12f0   : > { %5965 = vrot.lane.b32.xlu0 %v10280_v62, %s8124_s13 }
0x12f3   : > { %5975 = vrot.lane.b32.xlu1 %v10281_v56, %s8124_s13 }
0x12f4   : > { %5969 = vrot.lane.b32.xlu0 %v10282_v15, %s8124_s13 }
0x12f7   : > { %5995 = vrot.lane.b32.xlu1 %v9807_v11, %s8124_s13 }
0x12f8   : > { %5973 = vrot.lane.b32.xlu0 %v10283_v17, %s8124_s13 }
0x12fb   : > { %5999 = vrot.lane.b32.xlu1 %v9805_v44, %s8124_s13 }
0x12fc   : > { %5993 = vrot.lane.b32.xlu0 %v9803_v24, %s8124_s13 }
0x12ff   : > { %6003 = vrot.lane.b32.xlu1 %v9815_v43, %s8124_s13 }
0x1300   : > { %5997 = vrot.lane.b32.xlu0 %v9801_v50, %s8124_s13 }
0x1303   : > { %6007 = vrot.lane.b32.xlu1 %v9813_v33, %s8124_s13 }
0x1304   : > { %6001 = vrot.lane.b32.xlu0 %v9811_v35, %s8124_s13 }
0x1308   : > { %6005 = vrot.lane.b32.xlu0 %v9809_v16, %s8124_s13 }
0x133f   : > { %v5792_v18 = vpop.xlane.xlu1 %5791 }
0x1343   : > { %v5795_v36 = vpop.xlane.xlu0 %5794  ;;  %v5786_v29 = vpop.xlane.xlu1 %5785 }
0x1344   : > { %7860 = vrcp.f32 %v5786_v29 }
0x1347   : > { %v5789_v23 = vpop.xlane.xlu0 %5788  ;;  %v5804_v6 = vpop.xlane.xlu1 %5803 }
0x1348   : > { %7862 = vrcp.f32 %v5789_v23 }
0x1349   : > { %7864 = vrcp.f32 %v5795_v36 }
0x134a   : > { %7866 = vrcp.f32 %v5792_v18  ;;  %v10288_v18 = vld [vmem:[#allocation26_spill] sm:$0xff] }
0x134b   : > { %v5807_v38 = vpop.xlane.xlu0 %5806  ;;  %v5798_v7 = vpop.xlane.xlu1 %5797 }
0x134c   : > { %7868 = vrcp.f32 %v5798_v7 }
0x134e   : > { %v7861_v42 = vpop.eup %7860 }
0x134f   : > { %v5801_v59 = vpop.xlane.xlu0 %5800  ;;  %v5837_v50 = vpop.permute.xlu1 %5836  ;;  %v5816_v11 = vmul.f32 %v7861_v42, %v9924_v41 }
0x1350   : > { %7870 = vrcp.f32 %v5801_v59  ;;  %v7899_v59 = vld [vmem:[%s8361_s8 + $0xa0] sm:$0xff] }
0x1351   : > { %7872 = vrcp.f32 %v5807_v38  ;;  %v10289_v38 = vld [vmem:[#allocation28_spill] sm:$0xff] }
0x1352   : > { %v7863_v24 = vpop.eup %7862  ;;  %7874 = vrcp.f32 %v5804_v6 }
0x1353   : > { %v5835_v44 = vpop.permute.xlu0 %5834  ;;  %v5817_v16 = vmul.f32 %v7863_v24, %v9932_v30  ;;  %v5839_v35 = vpop.permute.xlu1 %5838  ;;  %v10286_v30 = vld [vmem:[#allocation21_spill] sm:$0xff] }
0x1354   : > { %7106 = vmatprep.subr.bf16.mxu1 %v5835_v44  ;;  %v7865_v43 = vpop.eup %7864 }
0x1355   : > { %7107 = vmatpush3.bf16.msra.mxu1 %v5835_v44  ;;  %v5824_v33 = vpack.c.bf16 %v5817_v16, %v5816_v11  ;;  %v7867_v3 = vpop.eup %7866  ;;  %v5819_v54 = vmul.f32 %v7865_v43, %v9926_v60  ;;  %v10290_v44 = vld [vmem:[#allocation25_spill] sm:$0xff] }
0x1356   : > { %7108 = vmatprep.subr.bf16.mxu1 %v5837_v50  ;;  %v7869_v10 = vpop.eup %7868  ;;  %v5818_v2 = vmul.f32 %v7867_v3, %v9920_v58 }
0x1357   : > { %v5930_v48 = vpop.permute.xlu0 %5929  ;;  %7112 = vmatprep.mubr.msk.bf16.mxu1 %vm3696_vm0, %v5824_v33  ;;  %v5932_v12 = vpop.permute.xlu1 %5931  ;;  %v5820_v26 = vmul.f32 %v7869_v10, %v9940_v34  ;;  %v7898_v34 = vld [vmem:[%s8361_s8 + $0x80] sm:$0xff] }
0x1358   : > { %v6049_v37 = vsel %vm3696_vm0, %v10284_v19, %v5930_v48  ;;  %v6050_v5 = vsel %vm3696_vm0, %v10285_v47, %v5932_v12  ;;  %v5825_v62 = vpack.c.bf16 %v5819_v54, %v5818_v2  ;;  %v7900_v33 = vld [vmem:[%s8361_s8 + $0xc0] sm:$0xff]  ;;  %v7903_v54 = vld [vmem:[%s8361_s8 + $0x28] sm:$0xff] }
0x1359   : > { %v6081_v14 = vadd.f32 %v7894_v22, %v6049_v37  ;;  %7109 = vmatpush3.bf16.msra.mxu1 %v5837_v50  ;;  %v6085_v28 = vadd.f32 %v7895_v31, %v6050_v5  ;;  %v10291_v48 = vld [vmem:[#allocation27_spill] sm:$0xff]  ;;  %v10292_v10 = vld [vmem:[#allocation30_spill] sm:$0xff]  ;;  %v10293_v5 = vld [vmem:[#allocation32_spill] sm:$0xff] }
0x135a   : > { %v7871_v51 = vpop.eup %7870  ;;  %7110 = vmatprep.subr.bf16.mxu1 %v5839_v35  ;;  %v7901_v19 = vld [vmem:[%s8361_s8 + $0xe0] sm:$0xff] }
0x135b   : > { %6113 = vst [vmem:[%s10018_s12] sm:$0xff] %v6081_v14  ;;  %v5934_v41 = vpop.permute.xlu0 %5933  ;;  %v5821_v46 = vmul.f32 %v7871_v51, %v9946_v57  ;;  %6117 = vst [vmem:[%s10018_s12 + $0x20] sm:$0xff] %v6085_v28  ;;  %v5936_v27 = vpop.permute.xlu1 %5935  ;;  %v7897_v57 = vld [vmem:[%s8361_s8 + $0x60] sm:$0xff]  ;;  %v7902_v14 = vld [vmem:[%s8361_s8 + $0x8] sm:$0xff] }
0x135c   : > { %v6051_v60 = vsel %vm3696_vm0, %v10286_v30, %v5934_v41  ;;  %v6052_v61 = vsel %vm3696_vm0, %v10287_v8, %v5936_v27  ;;  %v7873_v58 = vpop.eup %7872  ;;  %v10294_v41 = vld [vmem:[#allocation29_spill] sm:$0xff]  ;;  %v7904_v30 = vld [vmem:[%s8361_s8 + $0x48] sm:$0xff] }
0x135d   : > { %v6089_v0 = vadd.f32 %v7896_v39, %v6051_v60  ;;  %7111 = vmatpush3.bf16.msra.mxu1 %v5839_v35  ;;  %v6093_v56 = vadd.f32 %v7897_v57, %v6052_v61  ;;  %v5826_v17 = vpack.c.bf16 %v5821_v46, %v5820_v26  ;;  %v7875_v23 = vpop.eup %7874  ;;  %v5823_v50 = vmul.f32 %v7873_v58, %v9942_v1  ;;  %v10295_v27 = vld [vmem:[#allocation31_spill] sm:$0xff]  ;;  %v10296_v26 = vld [vmem:[#allocation34_spill] sm:$0xff] }
0x135e   : > { %v5822_v35 = vmul.f32 %v7875_v23, %v9934_v63  ;;  %v10298_v23 = vld [vmem:[#allocation33_spill] sm:$0xff] }
0x135f   : > { %6121 = vst [vmem:[%s10018_s12 + $0x40] sm:$0xff] %v6089_v0  ;;  %v5938_v15 = vpop.permute.xlu0 %5937  ;;  %6125 = vst [vmem:[%s10018_s12 + $0x60] sm:$0xff] %v6093_v56  ;;  %v5940_v29 = vpop.permute.xlu1 %5939  ;;  %v7905_v0 = vld [vmem:[%s8361_s8 + $0x68] sm:$0xff] }
0x1360   : > { %v6053_v36 = vsel %vm3696_vm0, %v10288_v18, %v5938_v15  ;;  %7113 = vmatmul.mubr.msk.bf16.vlgmr.msra.gmra.mrb[104].mxu1 %vm3696_vm0, %v5825_v62  ;;  %v6054_v7 = vsel %vm3696_vm0, %v10289_v38, %v5940_v29  ;;  %v5827_v37 = vpack.c.bf16 %v5823_v50, %v5822_v35  ;;  %v7906_v56 = vld [vmem:[%s8361_s8 + $0x88] sm:$0xff]  ;;  %v7910_v35 = vld [vmem:[%s8361_s8 + $0x10] sm:$0xff] }
0x1361   : > { %v6097_v6 = vadd.f32 %v7898_v34, %v6053_v36  ;;  %7116 = vmatprep.mubr.msk.bf16.mxu1 %vm3696_vm0, %v5826_v17  ;;  %v6101_v42 = vadd.f32 %v7899_v59, %v6054_v7  ;;  %v10297_v15 = vld [vmem:[#allocation36_spill] sm:$0xff]  ;;  %v10299_v59 = vld [vmem:[#allocation35_spill] sm:$0xff] }
0x1362   : > { %v7907_v18 = vld [vmem:[%s8361_s8 + $0xa8] sm:$0xff] }
0x1363   : > { %6129 = vst [vmem:[%s10018_s12 + $0x80] sm:$0xff] %v6097_v6  ;;  %v5942_v24 = vpop.permute.xlu0 %5941  ;;  %6133 = vst [vmem:[%s10018_s12 + $0xa0] sm:$0xff] %v6101_v42  ;;  %v5944_v16 = vpop.permute.xlu1 %5943  ;;  %v7908_v38 = vld [vmem:[%s8361_s8 + $0xc8] sm:$0xff] }
0x1364   : > { %v6055_v11 = vsel %vm3696_vm0, %v10290_v44, %v5942_v24  ;;  %v6056_v3 = vsel %vm3696_vm0, %v10291_v48, %v5944_v16  ;;  %v7909_v50 = vld [vmem:[%s8361_s8 + $0xe8] sm:$0xff]  ;;  %v7911_v48 = vld [vmem:[%s8361_s8 + $0x30] sm:$0xff] }
0x1365   : > { %v6105_v43 = vadd.f32 %v7900_v33, %v6055_v11  ;;  %v6109_v1 = vadd.f32 %v7901_v19, %v6056_v3 }
0x1367   : > { %6137 = vst [vmem:[%s10018_s12 + $0xc0] sm:$0xff] %v6105_v43  ;;  %v5962_v12 = vpop.permute.xlu0 %5961  ;;  %6141 = vst [vmem:[%s10018_s12 + $0xe0] sm:$0xff] %v6109_v1  ;;  %v5964_v63 = vpop.permute.xlu1 %5963 }
0x1368   : > { %v6057_v22 = vsel %vm3696_vm0, %v10292_v10, %v5962_v12  ;;  %7117 = vmatmul.mubr.msk.bf16.gmra.mrb[108].mxu1 %vm3696_vm0, %v5827_v37  ;;  %v6058_v51 = vsel %vm3696_vm0, %v10293_v5, %v5964_v63 }
0x1369   : > { %v6082_v47 = vadd.f32 %v7902_v14, %v6057_v22  ;;  %v6086_v31 = vadd.f32 %v7903_v54, %v6058_v51  ;;  %v7913_v22 = vld [vmem:[%s8361_s8 + $0x70] sm:$0xff]  ;;  %v10300_v51 = vld [vmem:[#allocation42_spill] sm:$0xff] }
0x136b   : > { %6114 = vst [vmem:[%s10018_s12 + $0x8] sm:$0xff] %v6082_v47  ;;  %v5966_v28 = vpop.permute.xlu0 %5965  ;;  %6118 = vst [vmem:[%s10018_s12 + $0x28] sm:$0xff] %v6086_v31  ;;  %v5968_v2 = vpop.permute.xlu1 %5967  ;;  %v7915_v31 = vld [vmem:[%s8361_s8 + $0xb0] sm:$0xff] }
0x136c   : > { %v6059_v46 = vsel %vm3696_vm0, %v10294_v41, %v5966_v28  ;;  %v6060_v39 = vsel %vm3696_vm0, %v10295_v27, %v5968_v2  ;;  %v10301_v41 = vld [vmem:[#allocation40_spill] sm:$0xff] }
0x136d   : > { %v6090_v60 = vadd.f32 %v7904_v30, %v6059_v46  ;;  %v6094_v8 = vadd.f32 %v7905_v0, %v6060_v39  ;;  %v7916_v30 = vld [vmem:[%s8361_s8 + $0xd0] sm:$0xff] }
0x136e   : > { %v7917_v39 = vld [vmem:[%s8361_s8 + $0xf0] sm:$0xff] }
0x136f   : > { %6122 = vst [vmem:[%s10018_s12 + $0x48] sm:$0xff] %v6090_v60  ;;  %v5970_v61 = vpop.permute.xlu0 %5969  ;;  %6126 = vst [vmem:[%s10018_s12 + $0x68] sm:$0xff] %v6094_v8  ;;  %v5972_v57 = vpop.permute.xlu1 %5971 }
0x1370   : > { %v6061_v62 = vsel %vm3696_vm0, %v10296_v26, %v5970_v61  ;;  %v6062_v17 = vsel %vm3696_vm0, %v10297_v15, %v5972_v57 }
0x1371   : > { %v6098_v58 = vadd.f32 %v7906_v56, %v6061_v62  ;;  %v6102_v36 = vadd.f32 %v7907_v18, %v6062_v17 }
0x1373   : > { %6130 = vst [vmem:[%s10018_s12 + $0x88] sm:$0xff] %v6098_v58  ;;  %v5974_v29 = vpop.permute.xlu0 %5973  ;;  %6134 = vst [vmem:[%s10018_s12 + $0xa8] sm:$0xff] %v6102_v36  ;;  %v5976_v6 = vpop.permute.xlu1 %5975  ;;  %v7918_v36 = vld [vmem:[%s8361_s8 + $0x58] sm:$0xff] }
0x1374   : > { %v6063_v34 = vsel %vm3696_vm0, %v10298_v23, %v5974_v29  ;;  %v6064_v42 = vsel %vm3696_vm0, %v10299_v59, %v5976_v6  ;;  %v7919_v6 = vld [vmem:[%s8361_s8 + $0x78] sm:$0xff] }
0x1375   : > { %v6106_v7 = vadd.f32 %v7908_v38, %v6063_v34  ;;  %v6110_v24 = vadd.f32 %v7909_v50, %v6064_v42 }
0x1377   : > { %6138 = vst [vmem:[%s10018_s12 + $0xc8] sm:$0xff] %v6106_v7  ;;  %v5994_v44 = vpop.permute.xlu0 %5993  ;;  %6142 = vst [vmem:[%s10018_s12 + $0xe8] sm:$0xff] %v6110_v24  ;;  %v5996_v16 = vpop.permute.xlu1 %5995 }
0x1378   : > { %v6065_v11 = vsel %vm3696_vm0, %v9715_v55, %v5994_v44  ;;  %v6066_v43 = vsel %vm3696_vm0, %v9719_v40, %v5996_v16  ;;  %v7912_v55 = vld [vmem:[%s8361_s8 + $0x50] sm:$0xff]  ;;  %v7922_v16 = vld [vmem:[%s8361_s8 + $0x98] sm:$0xff] }
0x1379   : > { %v6083_v33 = vadd.f32 %v7910_v35, %v6065_v11  ;;  %v6087_v3 = vadd.f32 %v7911_v48, %v6066_v43 }
0x137b   : > { %6115 = vst [vmem:[%s10018_s12 + $0x10] sm:$0xff] %v6083_v33  ;;  %v5998_v19 = vpop.permute.xlu0 %5997  ;;  %6119 = vst [vmem:[%s10018_s12 + $0x30] sm:$0xff] %v6087_v3  ;;  %v6000_v37 = vpop.permute.xlu1 %5999 }
0x137c   : > { %v6067_v1 = vsel %vm3696_vm0, %v9713_v49, %v5998_v19  ;;  %v6068_v10 = vsel %vm3696_vm0, %v9717_v20, %v6000_v37  ;;  %v7914_v49 = vld [vmem:[%s8361_s8 + $0x90] sm:$0xff]  ;;  %v7924_v19 = vld [vmem:[%s8361_s8 + $0xd8] sm:$0xff] }
0x137d   : > { %v6091_v12 = vadd.f32 %v7912_v55, %v6067_v1  ;;  %v6095_v40 = vadd.f32 %v7913_v22, %v6068_v10  ;;  %v7925_v55 = vld [vmem:[%s8361_s8 + $0xf8] sm:$0xff] }
0x137f   : > { %6123 = vst [vmem:[%s10018_s12 + $0x50] sm:$0xff] %v6091_v12  ;;  %v6002_v63 = vpop.permute.xlu0 %6001  ;;  %6127 = vst [vmem:[%s10018_s12 + $0x70] sm:$0xff] %v6095_v40  ;;  %v6004_v47 = vpop.permute.xlu1 %6003 }
0x1380   : > { %v6069_v14 = vsel %vm3696_vm0, %v9723_v13, %v6002_v63  ;;  %v6070_v54 = vsel %vm3696_vm0, %v10300_v51, %v6004_v47  ;;  %v10302_v13 = vld [vmem:[#allocation41_spill] sm:$0xff] }
0x1381   : > { %v6099_v5 = vadd.f32 %v7914_v49, %v6069_v14  ;;  %v6103_v20 = vadd.f32 %v7915_v31, %v6070_v54 }
0x1383   : > { %6131 = vst [vmem:[%s10018_s12 + $0x90] sm:$0xff] %v6099_v5  ;;  %v6006_v28 = vpop.permute.xlu0 %6005  ;;  %6135 = vst [vmem:[%s10018_s12 + $0xb0] sm:$0xff] %v6103_v20  ;;  %v6008_v2 = vpop.permute.xlu1 %6007 }
0x1384   : > { %v6071_v46 = vsel %vm3696_vm0, %v10301_v41, %v6006_v28  ;;  %v6072_v27 = vsel %vm3696_vm0, %v10302_v13, %v6008_v2 }
0x1385   : > { %v6107_v60 = vadd.f32 %v7916_v30, %v6071_v46  ;;  %v6111_v0 = vadd.f32 %v7917_v39, %v6072_v27 }
0x1387   : > { %6139 = vst [vmem:[%s10018_s12 + $0xd0] sm:$0xff] %v6107_v60  ;;  %6143 = vst [vmem:[%s10018_s12 + $0xf0] sm:$0xff] %v6111_v0 }
0x1433   : > { %v7114_v8 = vpop.f32.mrb[104].mxu1 }
0x1434   : > { %6029 = vrot.lane.b32.xlu0 %v7114_v8, %s8124_s13  ;;  %v5890_v61 = vpop.f32.mrb[105].mxu1 }
0x1435   : > { %v7115_v26 = vpop.f32.mrb[106].mxu1 }
0x1436   : > { %6031 = vrot.lane.b32.xlu1 %v7115_v26, %s8124_s13  ;;  %v5893_v62 = vpop.f32.mrb[107].mxu1 }
0x1438   : > { %6025 = vrot.lane.b32.xlu0 %v5890_v61, %s8124_s13 }
0x143a   : > { %6027 = vrot.lane.b32.xlu1 %v5893_v62, %s8124_s13 }
0x143b   : > { %v7118_v57 = vpop.f32.mrb[108].mxu1 }
0x143c   : > { %v5906_v56 = vpop.f32.mrb[109].mxu1 }
0x143d   : > { %6033 = vrot.lane.b32.xlu0 %v5906_v56, %s8124_s13  ;;  %v7119_v58 = vpop.f32.mrb[110].mxu1 }
0x143e   : > { %v5909_v15 = vpop.f32.mrb[111].mxu1 }
0x143f   : > { %6035 = vrot.lane.b32.xlu1 %v5909_v15, %s8124_s13 }
0x1441   : > { %6037 = vrot.lane.b32.xlu0 %v7118_v57, %s8124_s13 }
0x1443   : > { %6039 = vrot.lane.b32.xlu1 %v7119_v58, %s8124_s13 }
0x14a6   : > { %v6030_v17 = vpop.permute.xlu0 %6029 }
0x14a7   : > { %v6075_v18 = vsel %vm3696_vm0, %v9891_v53, %v6030_v17  ;;  %v7920_v53 = vld [vmem:[%s8361_s8 + $0x18] sm:$0xff] }
0x14a8   : > { %v6092_v29 = vadd.f32 %v7918_v36, %v6075_v18  ;;  %v6032_v23 = vpop.permute.xlu1 %6031 }
0x14a9   : > { %v6076_v34 = vsel %vm3696_vm0, %v9895_v45, %v6032_v23  ;;  %v7921_v45 = vld [vmem:[%s8361_s8 + $0x38] sm:$0xff] }
0x14aa   : > { %6124 = vst [vmem:[%s10018_s12 + $0x58] sm:$0xff] %v6092_v29  ;;  %v6096_v38 = vadd.f32 %v7919_v6, %v6076_v34  ;;  %v6026_v7 = vpop.permute.xlu0 %6025 }
0x14ab   : > { %v6073_v59 = vsel %vm3696_vm0, %v9893_v25, %v6026_v7 }
0x14ac   : > { %6128 = vst [vmem:[%s10018_s12 + $0x78] sm:$0xff] %v6096_v38  ;;  %v6084_v42 = vadd.f32 %v7920_v53, %v6073_v59  ;;  %v6028_v50 = vpop.permute.xlu1 %6027 }
0x14ad   : > { %v6074_v24 = vsel %vm3696_vm0, %v9897_v32, %v6028_v50  ;;  %v7923_v32 = vld [vmem:[%s8361_s8 + $0xb8] sm:$0xff] }
0x14ae   : > { %6116 = vst [vmem:[%s10018_s12 + $0x18] sm:$0xff] %v6084_v42  ;;  %v6088_v44 = vadd.f32 %v7921_v45, %v6074_v24 }
0x14af   : > { %v6034_v11 = vpop.permute.xlu0 %6033 }
0x14b0   : > { %6120 = vst [vmem:[%s10018_s12 + $0x38] sm:$0xff] %v6088_v44  ;;  %v6077_v25 = vsel %vm3696_vm0, %v9901_v9, %v6034_v11 }
0x14b1   : > { %v6100_v35 = vadd.f32 %v7922_v16, %v6077_v25  ;;  %v6036_v33 = vpop.permute.xlu1 %6035 }
0x14b2   : > { %v6078_v43 = vsel %vm3696_vm0, %v9905_v21, %v6036_v33 }
0x14b3   : > { %6132 = vst [vmem:[%s10018_s12 + $0x98] sm:$0xff] %v6100_v35  ;;  %v6104_v48 = vadd.f32 %v7923_v32, %v6078_v43  ;;  %v6038_v3 = vpop.permute.xlu0 %6037 }
0x14b4   : > { %v6079_v9 = vsel %vm3696_vm0, %v9899_v52, %v6038_v3 }
0x14b5   : > { %6136 = vst [vmem:[%s10018_s12 + $0xb8] sm:$0xff] %v6104_v48  ;;  %v6108_v1 = vadd.f32 %v7924_v19, %v6079_v9  ;;  %v6040_v37 = vpop.permute.xlu1 %6039 }
0x14b6   : > { %v6080_v21 = vsel %vm3696_vm0, %v9903_v4, %v6040_v37 }
0x14b7   : > { %6140 = vst [vmem:[%s10018_s12 + $0xd8] sm:$0xff] %v6108_v1  ;;  %v6112_v52 = vadd.f32 %v7925_v55, %v6080_v21 }
0x14b9   : > { %6144 = vst [vmem:[%s10018_s12 + $0xf8] sm:$0xff] %v6112_v52 }
0x14ba   : > { %8053 = shalt.err (!%p8050_p13)
}
0x14bb   : > { %s8054_s8 = scalar_lea.hbm %s10160_s20, 4096  ;;  %s8058_s17 = scalar_lea.hbm %s10215_s6, 8192 }
0x14bc   : > { %p8055_p0 = scmp.ne.s32.totalorder %s10160_s20, %s8054_s8  ;;  %p8059_p9 = scmp.lt.u32.totalorder %s10160_s20, %s10215_s6 }
0x14bd   : > { %p8060_p12 = scmp.lt.u32.totalorder %s8058_s17, %s8054_s8  ;;  %p8062_p1 = scmp.lt.u32.totalorder %s8054_s8, %s10160_s20 }
0x14be   : > { %p8056_p5 = pnand %p8055_p0, %p8304_p6 }
0x14bf   : > { %p8061_p2 = por %p8060_p12, %p8059_p9 }
0x14c0   : > { %p8057_p11 = pneg %p8056_p5 }
0x14c1   : > { %p8063_p4 = por %p8062_p1, %p8061_p2 }
0x14c3   : > { %p8064_p8 = pnand %p8063_p4, %p8057_p11 }
0x14c5   : > { %8067 = shalt.err (!%p8064_p8)
}
0x14c6   : > { %s8126_s18 = smov 512   ;;  %s8127_s29 = smov 32  }
0x14c7   : > { %7358 = dma.vmem_to_hbm [thread:$0]  (%p8304_p6), %s10162_s7, 4096, %s10160_s20, %s6146_s25, %s8126_s18, %s8126_s18, %s8127_s29  }
0x14c8 PF: > { %s6175_s26 = sand.u32 1, %s8102_s21   ;;  %p10303_p3 = scmp.ne.s32.totalorder %s10228_s28, 0 }
0x14c9   : > { %p10304_p7 = scmp.ge.s32.totalorder %s8114_s24, 2  ;;  %s6176_s9 = scalar_lea.sflag [#allocation4], %s6175_s26 }
0x14cb   : > { %p7375_p10 = pnand %p10304_p7, %p10303_p3 }
0x14cd   : > { %8097 = dma.done.wait (!%p7375_p10), %s6176_s9, 4096  }
0x14ce   : > { %8099 = vsyncadd (!%p7375_p10), %s6176_s9, 4294963200  ;;  %p21_p13 = scmp.ge.s32.totalorder %s8290_s11, 4   ;;  %s10305_s21 = smov %s8106_s22 }
0x14cf   : > { %s10306_s22 = smov %s8110_s23  ;;  %s10307_s23 = smov %s8300_s15 }
0x14d0   : > { %s10308_s24 = smov %s8290_s11  ;;  %23 = sbr.rel (!%p21_p13) target bundleno = 7 (0x7), region = 101 }
0x14d7   :  { %6181 = vsyncpa [#allocation3], 1 }
0x14d8   :  { %6183 = vsyncpa [#allocation3 + $0x1], 1 }
0x14d9   :  { %6184 = vsyncpa [#allocation6], 1 }
0x14da   :  { %6185 = vsyncpa [#allocation9], 1 }
0x14db   :  { %6186 = vsyncpa [#allocation4], 1 }
0x14dc   :  { %6188 = vsyncpa [#allocation4 + $0x1], 1 }

</bundles_post_ra>
